<compile_context>
chip_gen: v5e
topology: v5e:2x2
jax: 0.10.0
libtpu: 0.0.40
codegen_flags: <defaults>
</compile_context>

<pallas_src>
import jax
import jax.numpy as jnp
from jax.experimental import pallas as pl
from jax.experimental.pallas import tpu as pltpu

K = 3            # kernel_size
P = K // 2       # padding
F = 16           # feature_dim
C2 = 2 * F       # stacked channels of the two branches

# Packed-weight row layout (all offsets are multiples of 8).
_R_W1 = 0                        # (2F, 8)   layer-1 taps, bias in column 2K
_R_W2 = _R_W1 + C2               # 3 x (2F, 2F) layer-2 taps (left, center, right)
_R_D1 = _R_W2 + K * C2           # 3 x (F, 2F)  deconv-1 taps
_R_D2 = _R_D1 + K * F            # 3 x (8, F)   deconv-2 taps (row 0 used)
_R_B2 = _R_D2 + K * 8            # (2F, 1) layer-2 bias
_R_BD1 = _R_B2 + C2              # (F, 1)  deconv-1 bias
_R_BD2 = _R_BD1 + F              # (8, 1)  deconv-2 bias (row 0 used)
_PACK_ROWS = _R_BD2 + 8          # 256
_PACK_COLS = C2                  # 32


# --------------------------- Pallas kernel ---------------------------------
def _make_kernel(BtL):
    f32 = jnp.float32
    shift_r = BtL - 1            # roll by -1 lane (pltpu.roll needs shift >= 0)

    def kernel(yo_ref, yl_ref, m_ref, wp_ref, out_ref):
        xo = yo_ref[0].astype(f32)                    # (1, BtL)
        xl = yl_ref[0].astype(f32)

        is_start = m_ref[0:1, :] != 0                 # (1, BtL) segment starts
        is_end = m_ref[1:2, :] != 0                   # (1, BtL) segment ends

        def left_rep(x):     # x[l-1], replicate at segment start
            return jnp.where(is_start, x, pltpu.roll(x, shift=1, axis=1))

        def right_rep(x):    # x[l+1], replicate at segment end
            return jnp.where(is_end, x, pltpu.roll(x, shift=shift_r, axis=1))

        def left_zero(x):    # x[l-1], zero at segment start
            return jnp.where(is_start, 0.0, pltpu.roll(x, shift=1, axis=1))

        def right_zero(x):   # x[l+1], zero at segment end
            return jnp.where(is_end, 0.0, pltpu.roll(x, shift=shift_r, axis=1))

        # --- Layer 1: Conv1d(1->F) of both branches, one (2F,8)@(8,BtL) dot.
        ones = jnp.ones((1, BtL), f32)
        zero = jnp.zeros((1, BtL), f32)
        r1 = jnp.concatenate(
            [left_rep(xo), xo, right_rep(xo),
             left_rep(xl), xl, right_rep(xl), ones, zero], axis=0)   # (8, BtL)
        w1 = wp_ref[_R_W1:_R_W1 + C2, 0:8]                           # (2F, 8)
        h1 = jnp.dot(w1, r1, preferred_element_type=f32)             # (2F, BtL)

        # --- Layer 2: both Conv1d(F->F) as three block-diag per-tap dots.
        w2l_ = wp_ref[_R_W2:_R_W2 + C2, :]                           # (2F, 2F)
        w2c_ = wp_ref[_R_W2 + C2:_R_W2 + 2 * C2, :]
        w2r_ = wp_ref[_R_W2 + 2 * C2:_R_W2 + 3 * C2, :]
        b2_ = wp_ref[_R_B2:_R_B2 + C2, 0:1]                          # (2F, 1)
        h2 = (jnp.dot(w2l_, left_zero(h1), preferred_element_type=f32)
              + jnp.dot(w2c_, h1, preferred_element_type=f32)
              + jnp.dot(w2r_, right_zero(h1), preferred_element_type=f32)
              + b2_)                                                 # (2F, BtL)

        # --- Deconv1: ConvTranspose1d(2F->F) as flipped conv, per-tap dots.
        d1l_ = wp_ref[_R_D1:_R_D1 + F, :]                            # (F, 2F)
        d1c_ = wp_ref[_R_D1 + F:_R_D1 + 2 * F, :]
        d1r_ = wp_ref[_R_D1 + 2 * F:_R_D1 + 3 * F, :]
        bd1_ = wp_ref[_R_BD1:_R_BD1 + F, 0:1]                        # (F, 1)
        d1 = (jnp.dot(d1l_, left_zero(h2), preferred_element_type=f32)
              + jnp.dot(d1c_, h2, preferred_element_type=f32)
              + jnp.dot(d1r_, right_zero(h2), preferred_element_type=f32)
              + bd1_)                                                # (F, BtL)

        # --- Deconv2: ConvTranspose1d(F->1), 8-row (zero-padded) LHS.
        d2l_ = wp_ref[_R_D2:_R_D2 + 8, 0:F]                          # (8, F)
        d2c_ = wp_ref[_R_D2 + 8:_R_D2 + 16, 0:F]
        d2r_ = wp_ref[_R_D2 + 16:_R_D2 + 24, 0:F]
        bd2_ = wp_ref[_R_BD2:_R_BD2 + 8, 0:1]                        # (8, 1)
        d2 = (jnp.dot(d2l_, left_zero(d1), preferred_element_type=f32)
              + jnp.dot(d2c_, d1, preferred_element_type=f32)
              + jnp.dot(d2r_, right_zero(d1), preferred_element_type=f32)
              + bd2_)                                                # (8, BtL)

        out_ref[0] = d2[0:1, :].astype(out_ref.dtype)

    return kernel


# ------------------------ host-side packing ---------------------------------
def _pack_weights(params):
    (w1o, b1o, w2o, b2o, w1l, b1l, w2l, b2l, wd1, bd1, wd2, bd2) = params
    f32 = jnp.float32
    buf = jnp.zeros((_PACK_ROWS, _PACK_COLS), f32)

    # Layer 1: cols [0:K]=out-branch taps, [K:2K]=label-branch taps, [2K]=bias.
    buf = buf.at[_R_W1:_R_W1 + F, 0:K].set(w1o[:, 0, :].astype(f32))
    buf = buf.at[_R_W1 + F:_R_W1 + C2, K:2 * K].set(w1l[:, 0, :].astype(f32))
    buf = buf.at[_R_W1:_R_W1 + F, 2 * K].set(b1o.astype(f32))
    buf = buf.at[_R_W1 + F:_R_W1 + C2, 2 * K].set(b1l.astype(f32))

    # Layer 2: per-tap block-diag(out, label); tap 0 = left, 1 = center, 2 = right.
    for t in range(K):
        r = _R_W2 + t * C2
        buf = buf.at[r:r + F, 0:F].set(w2o[:, :, t].astype(f32))
        buf = buf.at[r + F:r + C2, F:C2].set(w2l[:, :, t].astype(f32))

    # ConvTranspose1d(stride=1) == Conv1d with flipped taps & swapped channels.
    wd1_eff = jnp.transpose(jnp.flip(wd1, axis=-1), (1, 0, 2)).astype(f32)  # (F,2F,K)
    for t in range(K):
        r = _R_D1 + t * F
        buf = buf.at[r:r + F, 0:C2].set(wd1_eff[:, :, t])

    wd2_eff = jnp.transpose(jnp.flip(wd2, axis=-1), (1, 0, 2)).astype(f32)  # (1,F,K)
    for t in range(K):
        r = _R_D2 + t * 8
        buf = buf.at[r, 0:F].set(wd2_eff[0, :, t])

    # Biases (column 0, 8-aligned row blocks).
    buf = buf.at[_R_B2:_R_B2 + F, 0].set(b2o.astype(f32))
    buf = buf.at[_R_B2 + F:_R_B2 + C2, 0].set(b2l.astype(f32))
    buf = buf.at[_R_BD1:_R_BD1 + F, 0].set(bd1.astype(f32))
    buf = buf.at[_R_BD2, 0].set(bd2[0].astype(f32))
    return buf


def _segment_masks(Bt, L):
    # Row 0: 1 at each packed-segment start lane; row 1: 1 at each segment end.
    pos = jnp.arange(Bt * L, dtype=jnp.int32) % L
    m = jnp.zeros((8, Bt * L), jnp.int32)
    m = m.at[0].set((pos == 0).astype(jnp.int32))
    m = m.at[1].set((pos == L - 1).astype(jnp.int32))
    return m


# ------------------------------- wrapper ------------------------------------
def metanet_forward(y_out, y_label, params, *, batch_tile=None):
    B, C, L = y_out.shape
    assert C == 1, "expected (batch, 1, length) inputs"

    # Pick Bt so Bt*L is a few thousand lanes, but keep >= 2 grid steps when
    # possible (v7x has 2 TensorCores and the grid axis is 'parallel').
    if batch_tile is None:
        batch_tile = max(1, 4096 // L)
    Bt = max(1, min(batch_tile, B))
    if B >= 2:
        Bt = max(1, min(Bt, B // 2))

    Bpad = (-B) % Bt
    if Bpad:
        pad = ((0, Bpad), (0, 0), (0, 0))
        y_out = jnp.pad(y_out, pad)
        y_label = jnp.pad(y_label, pad)
    Bp = B + Bpad
    G = Bp // Bt
    BtL = Bt * L

    # Pack Bt batch elements along the lane axis (contiguous, free reshape).
    yo = y_out.reshape(G, 1, BtL)
    yl = y_label.reshape(G, 1, BtL)
    masks = _segment_masks(Bt, L)
    wp = _pack_weights(params)

    grid_spec = pltpu.PrefetchScalarGridSpec(
        num_scalar_prefetch=0,
        grid=(G,),
        in_specs=[
            pl.BlockSpec((1, 1, BtL), lambda g: (g, 0, 0)),
            pl.BlockSpec((1, 1, BtL), lambda g: (g, 0, 0)),
            pl.BlockSpec((8, BtL), lambda g: (0, 0)),                   # masks (constant)
            pl.BlockSpec((_PACK_ROWS, _PACK_COLS), lambda g: (0, 0)),   # weights (constant)
        ],
        out_specs=pl.BlockSpec((1, 1, BtL), lambda g: (g, 0, 0)),
    )

    out = pl.pallas_call(
        _make_kernel(BtL),
        out_shape=jax.ShapeDtypeStruct((G, 1, BtL), y_out.dtype),
        grid_spec=grid_spec,
        compiler_params=pltpu.CompilerParams(
            dimension_semantics=("parallel",)),
    )(yo, yl, masks, wp)

    return out.reshape(Bp, 1, L)[:B]


# ---------------- pure-JAX reference (PyTorch semantics) --------------------
def conv1d_ref(x, w, b, pad):
    out = jax.lax.conv_general_dilated(
        x, w, window_strides=(1,), padding=[(pad, pad)],
        dimension_numbers=('NCH', 'OIH', 'NCH'),
        precision=jax.lax.Precision.HIGHEST)
    return out + b[None, :, None]


def convT1d_ref(x, w, b, pad):
    w_eff = jnp.transpose(jnp.flip(w, -1), (1, 0, 2))     # (Cout, Cin, K)
    return conv1d_ref(x, w_eff, b, K - 1 - pad)


def forward_ref(y_out, y_label, params):
    (w1o, b1o, w2o, b2o, w1l, b1l, w2l, b2l, wd1, bd1, wd2, bd2) = params
    yo = jnp.pad(y_out, ((0, 0), (0, 0), (P, P)), mode='edge')
    yl = jnp.pad(y_label, ((0, 0), (0, 0), (P, P)), mode='edge')
    ho = conv1d_ref(yo, w1o, b1o, 0)
    ho = conv1d_ref(ho, w2o, b2o, P)
    hl = conv1d_ref(yl, w1l, b1l, 0)
    hl = conv1d_ref(hl, w2l, b2l, P)
    comb = jnp.concatenate([ho, hl], axis=1)
    d1 = convT1d_ref(comb, wd1, bd1, P)
    d2 = convT1d_ref(d1, wd2, bd2, P)
    return d2


def init_params(key):
    ks = jax.random.split(key, 12)
    s = 0.1
    w1o = s * jax.random.normal(ks[0], (F, 1, K), jnp.float32)
    b1o = s * jax.random.normal(ks[1], (F,), jnp.float32)
    w2o = s * jax.random.normal(ks[2], (F, F, K), jnp.float32)
    b2o = s * jax.random.normal(ks[3], (F,), jnp.float32)
    w1l = s * jax.random.normal(ks[4], (F, 1, K), jnp.float32)
    b1l = s * jax.random.normal(ks[5], (F,), jnp.float32)
    w2l = s * jax.random.normal(ks[6], (F, F, K), jnp.float32)
    b2l = s * jax.random.normal(ks[7], (F,), jnp.float32)
    wd1 = s * jax.random.normal(ks[8], (2 * F, F, K), jnp.float32)  # ConvT layout (Cin, Cout, K)
    bd1 = s * jax.random.normal(ks[9], (F,), jnp.float32)
    wd2 = s * jax.random.normal(ks[10], (F, 1, K), jnp.float32)
    bd2 = s * jax.random.normal(ks[11], (1,), jnp.float32)
    return (w1o, b1o, w2o, b2o, w1l, b1l, w2l, b2l, wd1, bd1, wd2, bd2)


if __name__ == "__main__":
    key = jax.random.PRNGKey(0)
    kp, ki1, ki2 = jax.random.split(key, 3)

    B, L = 8, 256
    params = init_params(kp)
    y_out = jax.random.normal(ki1, (B, 1, L), jnp.float32)
    y_label = jax.random.normal(ki2, (B, 1, L), jnp.float32)

    out = jax.block_until_ready(metanet_forward(y_out, y_label, params))
    ref = jax.block_until_ready(forward_ref(y_out, y_label, params))

    assert out.shape == (B, 1, L)
    # Tolerance allows for MXU f32 pass-decomposition differences across TPU
    # generations; any structural/tap/boundary bug would be >= 1e-2.
    err = float(jnp.max(jnp.abs(out - ref)))
    assert jnp.allclose(out, ref, rtol=5e-3, atol=5e-3), err

    print("KERNEL_OK")
</pallas_src>

<mosaic_0001>
module attributes {stable_mosaic.version = 11 : i64} {
  func.func @kernel(%arg0: i32, %arg1: memref<1x1x1024xf32, #tpu.memory_space<vmem>>, %arg2: memref<1x1x1024xf32, #tpu.memory_space<vmem>>, %arg3: memref<8x1024xi32, #tpu.memory_space<vmem>>, %arg4: memref<256x32xf32, #tpu.memory_space<vmem>>, %arg5: memref<1x1x1024xf32, #tpu.memory_space<vmem>>) attributes {dimension_semantics = [#tpu.dimension_semantics<parallel>], iteration_bounds = array<i64: 2>, scalar_prefetch = 0 : i64, scratch_operands = 0 : i64, tpu.core_type = #tpu.core_type<tc>, window_params = [{transform_indices = @transform_0, window_bounds = array<i64: 1, 1, 1024>}, {transform_indices = @transform_1, window_bounds = array<i64: 1, 1, 1024>}, {pipeline_mode = #tpu.pipeline_mode<synchronous>, transform_indices = @transform_2, window_bounds = array<i64: 8, 1024>}, {pipeline_mode = #tpu.pipeline_mode<synchronous>, transform_indices = @transform_3, window_bounds = array<i64: 256, 32>}, {transform_indices = @transform_4, window_bounds = array<i64: 1, 1, 1024>}]} {
    %c0 = arith.constant 0 : index
    %c0_0 = arith.constant 0 : index
    %c0_1 = arith.constant 0 : index
    %0 = vector.load %arg1[%c0, %c0_0, %c0_1] : memref<1x1x1024xf32, #tpu.memory_space<vmem>>, vector<1x1x1024xf32>
    %1 = vector.shape_cast %0 : vector<1x1x1024xf32> to vector<1x1024xf32>
    %c0_2 = arith.constant 0 : index
    %c0_3 = arith.constant 0 : index
    %c0_4 = arith.constant 0 : index
    %2 = vector.load %arg2[%c0_2, %c0_3, %c0_4] : memref<1x1x1024xf32, #tpu.memory_space<vmem>>, vector<1x1x1024xf32>
    %3 = vector.shape_cast %2 : vector<1x1x1024xf32> to vector<1x1024xf32>
    %c0_5 = arith.constant 0 : index
    %c0_6 = arith.constant 0 : index
    %4 = vector.load %arg3[%c0_5, %c0_6] : memref<8x1024xi32, #tpu.memory_space<vmem>>, vector<1x1024xi32>
    %c0_i32 = arith.constant 0 : i32
    %5 = vector.broadcast %c0_i32 : i32 to vector<1x1024xi32>
    %6 = arith.cmpi ne, %4, %5 : vector<1x1024xi32>
    %c1 = arith.constant 1 : index
    %c0_7 = arith.constant 0 : index
    %7 = vector.load %arg3[%c1, %c0_7] : memref<8x1024xi32, #tpu.memory_space<vmem>>, vector<1x1024xi32>
    %c0_i32_8 = arith.constant 0 : i32
    %8 = vector.broadcast %c0_i32_8 : i32 to vector<1x1024xi32>
    %9 = arith.cmpi ne, %7, %8 : vector<1x1024xi32>
    %cst = arith.constant 1.000000e+00 : f32
    %10 = vector.broadcast %cst : f32 to vector<1x1024xf32>
    %cst_9 = arith.constant 0.000000e+00 : f32
    %11 = vector.broadcast %cst_9 : f32 to vector<1x1024xf32>
    %c1_i32 = arith.constant 1 : i32
    %12 = tpu.dynamic_rotate %1 by %c1_i32 dim 1 : vector<1x1024xf32>, i32 -> vector<1x1024xf32>
    %13 = arith.select %6, %1, %12 : vector<1x1024xi1>, vector<1x1024xf32>
    %c1023_i32 = arith.constant 1023 : i32
    %14 = tpu.dynamic_rotate %1 by %c1023_i32 dim 1 : vector<1x1024xf32>, i32 -> vector<1x1024xf32>
    %15 = arith.select %9, %1, %14 : vector<1x1024xi1>, vector<1x1024xf32>
    %c1_i32_10 = arith.constant 1 : i32
    %16 = tpu.dynamic_rotate %3 by %c1_i32_10 dim 1 : vector<1x1024xf32>, i32 -> vector<1x1024xf32>
    %17 = arith.select %6, %3, %16 : vector<1x1024xi1>, vector<1x1024xf32>
    %c1023_i32_11 = arith.constant 1023 : i32
    %18 = tpu.dynamic_rotate %3 by %c1023_i32_11 dim 1 : vector<1x1024xf32>, i32 -> vector<1x1024xf32>
    %19 = arith.select %9, %3, %18 : vector<1x1024xi1>, vector<1x1024xf32>
    %20 = tpu.concatenate %13, %1, %15, %17, %3, %19, %10, %11 in 0 : vector<1x1024xf32>, vector<1x1024xf32>, vector<1x1024xf32>, vector<1x1024xf32>, vector<1x1024xf32>, vector<1x1024xf32>, vector<1x1024xf32>, vector<1x1024xf32> -> vector<8x1024xf32>
    %c0_12 = arith.constant 0 : index
    %c0_13 = arith.constant 0 : index
    %21 = vector.load %arg4[%c0_12, %c0_13] : memref<256x32xf32, #tpu.memory_space<vmem>>, vector<32x8xf32>
    %cst_14 = arith.constant dense<0.000000e+00> : vector<32x1024xf32>
    %22 = tpu.matmul %21, %20, %cst_14 {dimension_numbers = #tpu.dot_dimension_numbers<[1], [0], [0], [1], [0, 0, 1, 1], [], []>} : vector<32x8xf32>, vector<8x1024xf32>, vector<32x1024xf32> -> vector<32x1024xf32>
    %c32 = arith.constant 32 : index
    %c0_15 = arith.constant 0 : index
    %23 = vector.load %arg4[%c32, %c0_15] : memref<256x32xf32, #tpu.memory_space<vmem>>, vector<32x32xf32>
    %c64 = arith.constant 64 : index
    %c0_16 = arith.constant 0 : index
    %24 = vector.load %arg4[%c64, %c0_16] : memref<256x32xf32, #tpu.memory_space<vmem>>, vector<32x32xf32>
    %c96 = arith.constant 96 : index
    %c0_17 = arith.constant 0 : index
    %25 = vector.load %arg4[%c96, %c0_17] : memref<256x32xf32, #tpu.memory_space<vmem>>, vector<32x32xf32>
    %c200 = arith.constant 200 : index
    %c0_18 = arith.constant 0 : index
    %26 = vector.load %arg4[%c200, %c0_18] : memref<256x32xf32, #tpu.memory_space<vmem>>, vector<32x1xf32>
    %c1_i32_19 = arith.constant 1 : i32
    %27 = tpu.dynamic_rotate %22 by %c1_i32_19 dim 1 : vector<32x1024xf32>, i32 -> vector<32x1024xf32>
    %cst_20 = arith.constant 0.000000e+00 : f32
    %28 = vector.shape_cast %6 : vector<1x1024xi1> to vector<1x1024xi1>
    %29 = vector.broadcast %28 : vector<1x1024xi1> to vector<32x1024xi1>
    %30 = vector.broadcast %cst_20 : f32 to vector<32x1024xf32>
    %31 = arith.select %29, %30, %27 : vector<32x1024xi1>, vector<32x1024xf32>
    %cst_21 = arith.constant dense<0.000000e+00> : vector<32x1024xf32>
    %32 = tpu.matmul %23, %31, %cst_21 {dimension_numbers = #tpu.dot_dimension_numbers<[1], [0], [0], [1], [0, 0, 1, 1], [], []>} : vector<32x32xf32>, vector<32x1024xf32>, vector<32x1024xf32> -> vector<32x1024xf32>
    %cst_22 = arith.constant dense<0.000000e+00> : vector<32x1024xf32>
    %33 = tpu.matmul %24, %22, %cst_22 {dimension_numbers = #tpu.dot_dimension_numbers<[1], [0], [0], [1], [0, 0, 1, 1], [], []>} : vector<32x32xf32>, vector<32x1024xf32>, vector<32x1024xf32> -> vector<32x1024xf32>
    %34 = arith.addf %32, %33 : vector<32x1024xf32>
    %c1023_i32_23 = arith.constant 1023 : i32
    %35 = tpu.dynamic_rotate %22 by %c1023_i32_23 dim 1 : vector<32x1024xf32>, i32 -> vector<32x1024xf32>
    %cst_24 = arith.constant 0.000000e+00 : f32
    %36 = vector.shape_cast %9 : vector<1x1024xi1> to vector<1x1024xi1>
    %37 = vector.broadcast %36 : vector<1x1024xi1> to vector<32x1024xi1>
    %38 = vector.broadcast %cst_24 : f32 to vector<32x1024xf32>
    %39 = arith.select %37, %38, %35 : vector<32x1024xi1>, vector<32x1024xf32>
    %cst_25 = arith.constant dense<0.000000e+00> : vector<32x1024xf32>
    %40 = tpu.matmul %25, %39, %cst_25 {dimension_numbers = #tpu.dot_dimension_numbers<[1], [0], [0], [1], [0, 0, 1, 1], [], []>} : vector<32x32xf32>, vector<32x1024xf32>, vector<32x1024xf32> -> vector<32x1024xf32>
    %41 = arith.addf %34, %40 : vector<32x1024xf32>
    %42 = vector.broadcast %26 : vector<32x1xf32> to vector<32x1024xf32>
    %43 = arith.addf %41, %42 : vector<32x1024xf32>
    %c128 = arith.constant 128 : index
    %c0_26 = arith.constant 0 : index
    %44 = vector.load %arg4[%c128, %c0_26] : memref<256x32xf32, #tpu.memory_space<vmem>>, vector<16x32xf32>
    %c144 = arith.constant 144 : index
    %c0_27 = arith.constant 0 : index
    %45 = vector.load %arg4[%c144, %c0_27] : memref<256x32xf32, #tpu.memory_space<vmem>>, vector<16x32xf32>
    %c160 = arith.constant 160 : index
    %c0_28 = arith.constant 0 : index
    %46 = vector.load %arg4[%c160, %c0_28] : memref<256x32xf32, #tpu.memory_space<vmem>>, vector<16x32xf32>
    %c232 = arith.constant 232 : index
    %c0_29 = arith.constant 0 : index
    %47 = vector.load %arg4[%c232, %c0_29] : memref<256x32xf32, #tpu.memory_space<vmem>>, vector<16x1xf32>
    %c1_i32_30 = arith.constant 1 : i32
    %48 = tpu.dynamic_rotate %43 by %c1_i32_30 dim 1 : vector<32x1024xf32>, i32 -> vector<32x1024xf32>
    %cst_31 = arith.constant 0.000000e+00 : f32
    %49 = vector.shape_cast %6 : vector<1x1024xi1> to vector<1x1024xi1>
    %50 = vector.broadcast %49 : vector<1x1024xi1> to vector<32x1024xi1>
    %51 = vector.broadcast %cst_31 : f32 to vector<32x1024xf32>
    %52 = arith.select %50, %51, %48 : vector<32x1024xi1>, vector<32x1024xf32>
    %cst_32 = arith.constant dense<0.000000e+00> : vector<16x1024xf32>
    %53 = tpu.matmul %44, %52, %cst_32 {dimension_numbers = #tpu.dot_dimension_numbers<[1], [0], [0], [1], [0, 0, 1, 1], [], []>} : vector<16x32xf32>, vector<32x1024xf32>, vector<16x1024xf32> -> vector<16x1024xf32>
    %cst_33 = arith.constant dense<0.000000e+00> : vector<16x1024xf32>
    %54 = tpu.matmul %45, %43, %cst_33 {dimension_numbers = #tpu.dot_dimension_numbers<[1], [0], [0], [1], [0, 0, 1, 1], [], []>} : vector<16x32xf32>, vector<32x1024xf32>, vector<16x1024xf32> -> vector<16x1024xf32>
    %55 = arith.addf %53, %54 : vector<16x1024xf32>
    %c1023_i32_34 = arith.constant 1023 : i32
    %56 = tpu.dynamic_rotate %43 by %c1023_i32_34 dim 1 : vector<32x1024xf32>, i32 -> vector<32x1024xf32>
    %cst_35 = arith.constant 0.000000e+00 : f32
    %57 = vector.shape_cast %9 : vector<1x1024xi1> to vector<1x1024xi1>
    %58 = vector.broadcast %57 : vector<1x1024xi1> to vector<32x1024xi1>
    %59 = vector.broadcast %cst_35 : f32 to vector<32x1024xf32>
    %60 = arith.select %58, %59, %56 : vector<32x1024xi1>, vector<32x1024xf32>
    %cst_36 = arith.constant dense<0.000000e+00> : vector<16x1024xf32>
    %61 = tpu.matmul %46, %60, %cst_36 {dimension_numbers = #tpu.dot_dimension_numbers<[1], [0], [0], [1], [0, 0, 1, 1], [], []>} : vector<16x32xf32>, vector<32x1024xf32>, vector<16x1024xf32> -> vector<16x1024xf32>
    %62 = arith.addf %55, %61 : vector<16x1024xf32>
    %63 = vector.broadcast %47 : vector<16x1xf32> to vector<16x1024xf32>
    %64 = arith.addf %62, %63 : vector<16x1024xf32>
    %c176 = arith.constant 176 : index
    %c0_37 = arith.constant 0 : index
    %65 = vector.load %arg4[%c176, %c0_37] : memref<256x32xf32, #tpu.memory_space<vmem>>, vector<8x16xf32>
    %c184 = arith.constant 184 : index
    %c0_38 = arith.constant 0 : index
    %66 = vector.load %arg4[%c184, %c0_38] : memref<256x32xf32, #tpu.memory_space<vmem>>, vector<8x16xf32>
    %c192 = arith.constant 192 : index
    %c0_39 = arith.constant 0 : index
    %67 = vector.load %arg4[%c192, %c0_39] : memref<256x32xf32, #tpu.memory_space<vmem>>, vector<8x16xf32>
    %c248 = arith.constant 248 : index
    %c0_40 = arith.constant 0 : index
    %68 = vector.load %arg4[%c248, %c0_40] : memref<256x32xf32, #tpu.memory_space<vmem>>, vector<8x1xf32>
    %c1_i32_41 = arith.constant 1 : i32
    %69 = tpu.dynamic_rotate %64 by %c1_i32_41 dim 1 : vector<16x1024xf32>, i32 -> vector<16x1024xf32>
    %cst_42 = arith.constant 0.000000e+00 : f32
    %70 = vector.shape_cast %6 : vector<1x1024xi1> to vector<1x1024xi1>
    %71 = vector.broadcast %70 : vector<1x1024xi1> to vector<16x1024xi1>
    %72 = vector.broadcast %cst_42 : f32 to vector<16x1024xf32>
    %73 = arith.select %71, %72, %69 : vector<16x1024xi1>, vector<16x1024xf32>
    %cst_43 = arith.constant dense<0.000000e+00> : vector<8x1024xf32>
    %74 = tpu.matmul %65, %73, %cst_43 {dimension_numbers = #tpu.dot_dimension_numbers<[1], [0], [0], [1], [0, 0, 1, 1], [], []>} : vector<8x16xf32>, vector<16x1024xf32>, vector<8x1024xf32> -> vector<8x1024xf32>
    %cst_44 = arith.constant dense<0.000000e+00> : vector<8x1024xf32>
    %75 = tpu.matmul %66, %64, %cst_44 {dimension_numbers = #tpu.dot_dimension_numbers<[1], [0], [0], [1], [0, 0, 1, 1], [], []>} : vector<8x16xf32>, vector<16x1024xf32>, vector<8x1024xf32> -> vector<8x1024xf32>
    %76 = arith.addf %74, %75 : vector<8x1024xf32>
    %c1023_i32_45 = arith.constant 1023 : i32
    %77 = tpu.dynamic_rotate %64 by %c1023_i32_45 dim 1 : vector<16x1024xf32>, i32 -> vector<16x1024xf32>
    %cst_46 = arith.constant 0.000000e+00 : f32
    %78 = vector.shape_cast %9 : vector<1x1024xi1> to vector<1x1024xi1>
    %79 = vector.broadcast %78 : vector<1x1024xi1> to vector<16x1024xi1>
    %80 = vector.broadcast %cst_46 : f32 to vector<16x1024xf32>
    %81 = arith.select %79, %80, %77 : vector<16x1024xi1>, vector<16x1024xf32>
    %cst_47 = arith.constant dense<0.000000e+00> : vector<8x1024xf32>
    %82 = tpu.matmul %67, %81, %cst_47 {dimension_numbers = #tpu.dot_dimension_numbers<[1], [0], [0], [1], [0, 0, 1, 1], [], []>} : vector<8x16xf32>, vector<16x1024xf32>, vector<8x1024xf32> -> vector<8x1024xf32>
    %83 = arith.addf %76, %82 : vector<8x1024xf32>
    %84 = vector.broadcast %68 : vector<8x1xf32> to vector<8x1024xf32>
    %85 = arith.addf %83, %84 : vector<8x1024xf32>
    %86 = vector.extract_strided_slice %85 {offsets = [0, 0], sizes = [1, 1024], strides = [1, 1]} : vector<8x1024xf32> to vector<1x1024xf32>
    %c0_48 = arith.constant 0 : index
    %c0_49 = arith.constant 0 : index
    %c0_50 = arith.constant 0 : index
    %87 = vector.load %arg5[%c0_48, %c0_49, %c0_50] : memref<1x1x1024xf32, #tpu.memory_space<vmem>>, vector<1x1x1024xf32>
    %88 = vector.shape_cast %87 : vector<1x1x1024xf32> to vector<1x1024xf32>
    %89 = vector.shape_cast %86 : vector<1x1024xf32> to vector<1x1x1024xf32>
    tpu.vector_store %arg5[%c0_48, %c0_49, %c0_50], %89 {strides = array<i32>} : memref<1x1x1024xf32, #tpu.memory_space<vmem>>, vector<1x1x1024xf32>,
    return
  }
  func.func @transform_0(%arg0: i32) -> (i32, i32, i32) {
    %c0_i32 = arith.constant 0 : i32
    %c0_i32_0 = arith.constant 0 : i32
    %c0_i32_1 = arith.constant 0 : i32
    return %arg0, %c0_i32, %c0_i32_0 : i32, i32, i32
  }
  func.func @transform_1(%arg0: i32) -> (i32, i32, i32) {
    %c0_i32 = arith.constant 0 : i32
    %c0_i32_0 = arith.constant 0 : i32
    %c0_i32_1 = arith.constant 0 : i32
    return %arg0, %c0_i32, %c0_i32_0 : i32, i32, i32
  }
  func.func @transform_2(%arg0: i32) -> (i32, i32) {
    %c0_i32 = arith.constant 0 : i32
    %c0_i32_0 = arith.constant 0 : i32
    %c0_i32_1 = arith.constant 0 : i32
    return %c0_i32, %c0_i32_0 : i32, i32
  }
  func.func @transform_3(%arg0: i32) -> (i32, i32) {
    %c0_i32 = arith.constant 0 : i32
    %c0_i32_0 = arith.constant 0 : i32
    %c0_i32_1 = arith.constant 0 : i32
    return %c0_i32, %c0_i32_0 : i32, i32
  }
  func.func @transform_4(%arg0: i32) -> (i32, i32, i32) {
    %c0_i32 = arith.constant 0 : i32
    %c0_i32_0 = arith.constant 0 : i32
    %c0_i32_1 = arith.constant 0 : i32
    return %arg0, %c0_i32, %c0_i32_0 : i32, i32, i32
  }
}

</mosaic_0001>

<bundles_post_ra>
// kernel: tpu_custom_call.1
= control target key start
LH: loop header
LB: loop body
LE: loop exit
PB: predicated region body
PF: predicated region fallthrough
CT: control target
= control target key end

     0   :  { %9 = vsyncpa [#allocation3], 0  ;;  %s6867_s0 = inlined_call_operand.vmem [shape: f32[2,1,1024], index: 0, kind: input, shape index: {}]   ;;  %s6868_s1 = inlined_call_operand.vmem [shape: f32[2,1,1024], index: 1, kind: input, shape index: {}]   ;;  %s6869_s2 = inlined_call_operand.vmem [shape: s32[8,1024], index: 2, kind: input, shape index: {}]   ;;  %s6870_s3 = inlined_call_operand.vmem [shape: f32[256,32], index: 3, kind: input, shape index: {}]   ;;  %s6871_s4 = inlined_call_operand.hbm [shape: f32[2,1,1024], index: 4, kind: output, shape index: {}]  }
   0x1   :  { %11 = vsyncpa [#allocation3 + $0x1], 0  ;;  %s4282_s15 = smov 0   ;;  %s4284_s16 = smov 0  }
   0x2   :  { %s4286_s17 = smov 0   ;;  %s4288_s18 = smov 0  }
   0x3 LB: > { %s4303_s19 = sadd.s32 4294967295, %s4252_s18   ;;  %s3588_s20 = sadd.s32 4294967294, %s4252_s18   ;;  %s4252_s18 = sphi %s4288_s18, %s7172_s18   ;;  %s4248_s17 = sphi %s4286_s17, %s7171_s17   ;;  %s4244_s16 = sphi %s4284_s16, %s7170_s16   ;;  %s4240_s15 = sphi %s4282_s15, %s7169_s15  }
   0x4   : > { %s4307_s21 = sadd.s32 1, %s4252_s18   ;;  %s118_s22 = sadd.s32 1, %s4248_s17 }
   0x5   : > { %s115_s23 = ssub.s32 %s4252_s18, %s4307_s21  ;;  %p128_p0 = scmp.ne.s32.totalorder %s4248_s17, %s4244_s16 }
   0x6   : > { %p116_p1 = scmp.eq.s32.totalorder %s115_s23, 0  ;;  %p129_p2 = scmp.eq.s32.totalorder %s4303_s19, 1 }
   0x7   : > { %p134_p3 = scmp.ne.s32.totalorder %s4244_s16, %s4240_s15  ;;  %p135_p4 = scmp.eq.s32.totalorder %s3588_s20, 1 }
   0x8   : > { %s4318_s24 = scalar_select %p116_p1, %s4248_s17, %s118_s22  }
   0x9   : > { %p4320_p5 = por %p129_p2, %p128_p0  ;;  %p4324_p6 = por %p135_p4, %p134_p3 }
   0xa   : > { %p3591_p7 = scmp.ge.s32.totalorder %s4252_s18, 1  ;;  %p173_p8 = scmp.lt.s32.totalorder %s4252_s18, 3 }
   0xc   : > { %p174_p9 = pnand %p3591_p7, %p173_p8 }
   0xe   : > { %177 = sbr.rel (%p174_p9) target bundleno = 1474 (0x5c2), region = 36 }
  0x13   : > { %p202_p10 = scmp.lt.s32.totalorder %s4303_s19, 1  ;;  %s4254_s6 = smov 1   ;;  %v4256_v19 = vmov 0   ;;  %v254_v34 = vlaneseq  ;;  %vm6875_vm1 = vcmask 1044484   ;;  %vm6877_vm2 = vcmask 1042434  }
  0x14   : > { %s4255_s7 = smov 127   ;;  %4188 = vset.pattern.permute.xlu1 %v4256_v19  ;;  %4187 = vset.pattern.permute.xlu0 %v4256_v19  ;;  %vm6878_vm3 = vcmask 1040384   ;;  %v212_v48 = vld [vmem:[%s6869_s2] ss:$8 sm:$0xf]  ;;  %vm6874_vm4 = vcmask 1041408  }
  0x15   : > { %s203_s27 = scalar_select %p202_p10, %s4303_s19, 1  ;;  %4189 = vset.pattern.permute.xlu2 %v4256_v19  ;;  %v4463_v36 = vand.u32 127, %v254_v34  ;;  %v213_v50 = vld [vmem:[%s6869_s2] ss:$8 sm:$0xf0]  ;;  %vm6876_vm5 = vcmask 1046534  }
  0x16   : > { %vm6873_vm6 = vcmask 1045508   ;;  %v214_v59 = vor.u32 %v213_v50, %v212_v48  ;;  %vm6872_vm8 = vcmask 1043456   ;;  %vm542_vm11 = vcmask 1042432   ;;  %s199_s30 = sand.u32 1, %s4244_s16   ;;  %s4126_s8 = sshll.u32 %s4303_s19, 3 }
  0x17   : > { %s3593_s28 = sshll.u32 %s203_s27, 3  ;;  %6937 = vst [vmem:[#allocation5_spill] sm:$0xff] %v4463_v36  ;;  %vm6879_vm0 = vcmp.lt.s32.totalorder %v4463_v36, 1  ;;  %vm6882_vm7 = vcmp.lt.s32.totalorder %v4463_v36, 127  ;;  %vm559_vm12 = vcmask 1044480   ;;  %vm568_vm13 = vcmask 1045504   ;;  %s3512_s11 = scalar_lea.hbm %s6871_s4, %s4126_s8 }
  0x18   : > { %s205_s5 = scalar_lea.vmem %s6867_s0, %s3593_s28  ;;  %s209_s10 = scalar_lea.vmem %s6868_s1, %s3593_s28  ;;  %vm4518_vm9 = vcmp.ne.s32.totalorder %v214_v59, 0  ;;  %vm577_vm14 = vcmask 1046528   ;;  %vm590_vm15 = vcmask 64512  }
  0x19   : > { %v4335_v0 = vld [vmem:[%s205_s5] sm:$0xff]  ;;  %s6824_s5 = sshll.u32 %s199_s30, 3  ;;  %s3516_s13 = sshll.u32 %s3512_s11, 4  ;;  %s3517_s13 = int_to_ptr.hbm [resolvable:$true] %s3516_s13 }
  0x1a   : > { %v4338_v1 = vperm.slane %v4335_v0, 2  ;;  %v4341_v2 = vperm.slane %v4335_v0, 0  ;;  %v4344_v3 = vperm.slane %v4335_v0, 4  ;;  %v4353_v4 = vperm.slane %v4335_v0, 3  ;;  %v4392_v9 = vld [vmem:[%s209_s10] sm:$0xff]  ;;  %s201_s19 = scalar_lea.vmem [#allocation2], %s6824_s5 }
  0x1b   : > { %v4356_v5 = vperm.slane %v4335_v0, 1  ;;  %v4359_v6 = vperm.slane %v4335_v0, 5  ;;  %v4368_v7 = vperm.slane %v4335_v0, 7  ;;  %v4371_v8 = vperm.slane %v4335_v0, 6  ;;  %s3514_s12 = sshll.u32 %s201_s19, 4  ;;  %s3502_s14 = scalar_lea.sflag [#allocation3], %s199_s30  ;;  %s3515_s12 = int_to_ptr.vmem [resolvable:$true] %s3514_s12 }
  0x1c   : > { %242 = vrot.lane.b32.xlu1 %v4338_v1, %s4254_s6  ;;  %238 = vrot.lane.b32.xlu0 %v4341_v2, %s4254_s6  ;;  %v4397_v10 = vperm.slane %v4392_v9, 0  ;;  %v4400_v11 = vperm.slane %v4392_v9, 1  ;;  %v4409_v12 = vperm.slane %v4392_v9, 3  ;;  %v4412_v13 = vperm.slane %v4392_v9, 2  ;;  %s4204_s20 = sshra.s32 %s3517_s13, 4  ;;  %s4205_s20 = int_to_ptr.hbm [resolvable:$true] %s4204_s20 }
  0x1d   : > { %246 = vrot.lane.b32.xlu2 %v4344_v3, %s4254_s6  ;;  %v4415_v14 = vperm.slane %v4392_v9, 4  ;;  %v4424_v15 = vperm.slane %v4392_v9, 6  ;;  %v4427_v16 = vperm.slane %v4392_v9, 5  ;;  %v4430_v17 = vperm.slane %v4392_v9, 7  ;;  %s4206_s22 = scalar_lea.hbm %s4205_s20, 8  ;;  %p4211_p0 = scmp.lt.s32.totalorder %s4205_s20, %s6871_s4 }
  0x1e   : > { %p4207_p11 = scmp.ne.s32.totalorder %s4205_s20, %s4206_s22 }
  0x20   : > { %p4208_p12 = pnand %p4207_p11, %p4320_p5 }
  0x22   : > { %p4209_p13 = pneg %p4208_p12 }
  0x24   : > { %244 = vrot.lane.b32.xlu1 %v4353_v4, %s4254_s6  ;;  %240 = vrot.lane.b32.xlu0 %v4356_v5, %s4254_s6 }
  0x25   : > { %248 = vrot.lane.b32.xlu2 %v4359_v6, %s4254_s6 }
  0x2c   : > { %252 = vrot.lane.b32.xlu1 %v4368_v7, %s4254_s6  ;;  %250 = vrot.lane.b32.xlu0 %v4371_v8, %s4254_s6 }
  0x2d   : > { %296 = vrot.lane.b32.xlu2 %v4341_v2, %s4255_s7 }
  0x34   : > { %300 = vrot.lane.b32.xlu1 %v4338_v1, %s4255_s7  ;;  %298 = vrot.lane.b32.xlu0 %v4356_v5, %s4255_s7 }
  0x35   : > { %302 = vrot.lane.b32.xlu2 %v4353_v4, %s4255_s7 }
  0x3c   : > { %306 = vrot.lane.b32.xlu1 %v4359_v6, %s4255_s7  ;;  %304 = vrot.lane.b32.xlu0 %v4344_v3, %s4255_s7 }
  0x3d   : > { %308 = vrot.lane.b32.xlu2 %v4371_v8, %s4255_s7 }
  0x44   : > { %362 = vrot.lane.b32.xlu1 %v4397_v10, %s4254_s6  ;;  %310 = vrot.lane.b32.xlu0 %v4368_v7, %s4255_s7 }
  0x45   : > { %364 = vrot.lane.b32.xlu2 %v4400_v11, %s4254_s6 }
  0x4c   : > { %368 = vrot.lane.b32.xlu1 %v4409_v12, %s4254_s6  ;;  %366 = vrot.lane.b32.xlu0 %v4412_v13, %s4254_s6 }
  0x4d   : > { %370 = vrot.lane.b32.xlu2 %v4415_v14, %s4254_s6 }
  0x54   : > { %374 = vrot.lane.b32.xlu1 %v4424_v15, %s4254_s6  ;;  %372 = vrot.lane.b32.xlu0 %v4427_v16, %s4254_s6 }
  0x55   : > { %376 = vrot.lane.b32.xlu2 %v4430_v17, %s4254_s6 }
  0x5c   : > { %412 = vrot.lane.b32.xlu1 %v4400_v11, %s4255_s7  ;;  %410 = vrot.lane.b32.xlu0 %v4397_v10, %s4255_s7 }
  0x5d   : > { %414 = vrot.lane.b32.xlu2 %v4412_v13, %s4255_s7 }
  0x64   : > { %418 = vrot.lane.b32.xlu1 %v4415_v14, %s4255_s7  ;;  %416 = vrot.lane.b32.xlu0 %v4409_v12, %s4255_s7 }
  0x65   : > { %420 = vrot.lane.b32.xlu2 %v4427_v16, %s4255_s7 }
  0x6c   : > { %424 = vrot.lane.b32.xlu1 %v4430_v17, %s4255_s7  ;;  %422 = vrot.lane.b32.xlu0 %v4424_v15, %s4255_s7 }
  0x77   : > { %v247_v18 = vpop.permute.xlu2 %246 }
  0x7f   : > { %v249_v20 = vpop.permute.xlu2 %248 }
  0x80   : > { %v259_v39 = vsel %vm6879_vm0, %v247_v18, %v249_v20 }
  0x81   : > { %v277_v44 = vrot.slane %v259_v39, 3 }
  0x87   : > { %v4457_v23 = vpop.permute.xlu2 %296 }
  0x8e   : > { %v243_v21 = vpop.permute.xlu1 %242  ;;  %v239_v22 = vpop.permute.xlu0 %238 }
  0x8f   : > { %v303_v26 = vpop.permute.xlu2 %302 }
  0x96   : > { %v245_v24 = vpop.permute.xlu1 %244  ;;  %v241_v25 = vpop.permute.xlu0 %240 }
  0x97   : > { %v309_v31 = vpop.permute.xlu2 %308  ;;  %v260_v40 = vsel %vm6879_vm0, %v245_v24, %v247_v18  ;;  %v261_v45 = vsel %vm6879_vm0, %v243_v21, %v245_v24  ;;  %v262_v46 = vsel %vm6879_vm0, %v241_v25, %v243_v21  ;;  %v263_v47 = vsel %vm6879_vm0, %v239_v22, %v241_v25  ;;  %v3596_v21 = vld [vmem:[%s6869_s2 + $0x1] ss:$8 sm:$0xf0] }
  0x98   : > { %v276_v49 = vrot.slane %v260_v40, 4  ;;  %v275_v56 = vrot.slane %v261_v45, 5  ;;  %v273_v57 = vrot.slane %v263_v47, 7  ;;  %v274_v58 = vrot.slane %v262_v46, 6 }
  0x9a   : > { %v287_v62 = vsel %vm6875_vm1, %v276_v49, %v277_v44 }
  0x9e   : > { %v253_v27 = vpop.permute.xlu1 %252  ;;  %v251_v28 = vpop.permute.xlu0 %250 }
  0x9f   : > { %v4461_v35 = vpop.permute.xlu2 %364  ;;  %v257_v41 = vsel %vm6879_vm0, %v251_v28, %v253_v27  ;;  %v258_v42 = vsel %vm6879_vm0, %v249_v20, %v251_v28  ;;  %v264_v55 = vsel %vm6879_vm0, %v253_v27, %v239_v22  ;;  %v3595_v20 = vld [vmem:[%s6869_s2 + $0x1] ss:$8 sm:$0xf]  ;;  %v283_v28 = vsel %vm6877_vm2, %v274_v58, %v275_v56 }
  0xa0   : > { %v278_v51 = vrot.slane %v258_v42, 2  ;;  %v279_v52 = vrot.slane %v257_v41, 1  ;;  %v281_v63 = vsel %vm6878_vm3, %v264_v55, %v273_v57  ;;  %v219_v42 = vor.u32 %v3596_v21, %v3595_v20 }
  0xa1   : > { %v285_v40 = vsel %vm6874_vm4, %v281_v63, %v283_v28  ;;  %v6942_v41 = vmov 0 }
  0xa2   : > { %v289_v18 = vsel %vm6876_vm5, %v278_v51, %v279_v52  ;;  %vm4556_vm10 = vcmp.ne.s32.totalorder %v219_v42, 0 }
  0xa6   : > { %v301_v29 = vpop.permute.xlu1 %300  ;;  %v4459_v30 = vpop.permute.xlu0 %298 }
  0xa7   : > { %v371_v43 = vpop.permute.xlu2 %370  ;;  %v317_v22 = vsel %vm6882_vm7, %v301_v29, %v303_v26  ;;  %v318_v34 = vsel %vm6882_vm7, %v4459_v30, %v301_v29 }
  0xa8   : > { %v330_v44 = vrot.slane %v317_v22, 6  ;;  %v329_v48 = vrot.slane %v318_v34, 7 }
  0xae   : > { %v307_v32 = vpop.permute.xlu1 %306  ;;  %v305_v33 = vpop.permute.xlu0 %304 }
  0xaf   : > { %v314_v24 = vsel %vm6882_vm7, %v307_v32, %v309_v31  ;;  %v315_v25 = vsel %vm6882_vm7, %v305_v33, %v307_v32  ;;  %v316_v27 = vsel %vm6882_vm7, %v303_v26, %v305_v33  ;;  %v377_v32 = vpop.permute.xlu2 %376 }
  0xb0   : > { %v333_v26 = vrot.slane %v314_v24, 3  ;;  %v331_v33 = vrot.slane %v316_v27, 5  ;;  %v332_v45 = vrot.slane %v315_v25, 4 }
  0xb6   : > { %v4465_v37 = vpop.permute.xlu1 %362  ;;  %v311_v38 = vpop.permute.xlu0 %310 }
  0xb7   : > { %v313_v60 = vsel %vm6882_vm7, %v309_v31, %v311_v38  ;;  %v320_v61 = vsel %vm6882_vm7, %v311_v38, %v4457_v23  ;;  %v291_v31 = vsel %vm6873_vm6, %v287_v62, %v289_v18  ;;  %v337_v62 = vsel %vm6877_vm2, %v330_v44, %v331_v33 }
  0xb8   : > { %v334_v38 = vrot.slane %v313_v60, 2  ;;  %v335_v39 = vrot.slane %v320_v61, 1  ;;  %v293_v57 = vsel %vm6872_vm8, %v285_v40, %v291_v31  ;;  %v319_v61 = vsel %vm6882_vm7, %v4457_v23, %v4459_v30 }
  0xb9   : > { %v295_v21 = vsel %vm4518_vm9, %v4335_v0, %v293_v57  ;;  %v336_v23 = vsel %vm6878_vm3, %v319_v61, %v329_v48  ;;  %v385_v31 = vsel %vm6879_vm0, %v377_v32, %v4465_v37 }
  0xba   : > { %v340_v51 = vsel %vm6876_vm5, %v334_v38, %v335_v39  ;;  %v338_v30 = vsel %vm6874_vm4, %v336_v23, %v337_v62  ;;  %v415_v39 = vpop.permute.xlu2 %414  ;;  %v459_v40 = vperm.slane %v295_v21, 0  ;;  %v461_v42 = vperm.slane %v295_v21, 2 }
  0xbe   : > { %v369_v53 = vpop.permute.xlu1 %368  ;;  %v367_v54 = vpop.permute.xlu0 %366 }
  0xbf   : > { %v381_v52 = vsel %vm6879_vm0, %v369_v53, %v371_v43  ;;  %v382_v55 = vsel %vm6879_vm0, %v367_v54, %v369_v53  ;;  %v383_v56 = vsel %vm6879_vm0, %v4461_v35, %v367_v54  ;;  %v384_v53 = vsel %vm6879_vm0, %v4465_v37, %v4461_v35 }
  0xc0   : > { %v397_v63 = vrot.slane %v381_v52, 4  ;;  %v395_v18 = vrot.slane %v383_v56, 6  ;;  %v396_v20 = vrot.slane %v382_v55, 5  ;;  %v394_v22 = vrot.slane %v384_v53, 7 }
  0xc1   : > { %v526_v37 = vsel %vm6878_vm3, %v459_v40, %v4341_v2 }
  0xc2   : > { %v402_v38 = vsel %vm6877_vm2, %v395_v18, %v396_v20  ;;  %v401_v33 = vsel %vm6878_vm3, %v385_v31, %v394_v22  ;;  %v421_v20 = vpop.permute.xlu2 %420 }
  0xc3   : > { %v403_v48 = vsel %vm6874_vm4, %v401_v33, %v402_v38 }
  0xc6   : > { %v375_v46 = vpop.permute.xlu1 %374  ;;  %v373_v47 = vpop.permute.xlu0 %372 }
  0xc7   : > { %v378_v29 = vsel %vm6879_vm0, %v375_v46, %v377_v32  ;;  %v379_v49 = vsel %vm6879_vm0, %v373_v47, %v375_v46  ;;  %v380_v50 = vsel %vm6879_vm0, %v371_v43, %v373_v47  ;;  %v339_v43 = vsel %vm6875_vm1, %v332_v45, %v333_v26 }
  0xc8   : > { %v400_v58 = vrot.slane %v378_v29, 1  ;;  %v398_v59 = vrot.slane %v380_v50, 3  ;;  %v399_v60 = vrot.slane %v379_v49, 2  ;;  %v341_v54 = vsel %vm6873_vm6, %v339_v43, %v340_v51 }
  0xc9   : > { %v342_v27 = vsel %vm6872_vm8, %v338_v30, %v341_v54  ;;  %v460_v26 = vperm.slane %v295_v21, 1  ;;  %v462_v46 = vperm.slane %v295_v21, 3  ;;  %v463_v47 = vperm.slane %v295_v21, 4 }
  0xca   : > { %v404_v24 = vsel %vm6875_vm1, %v397_v63, %v398_v59  ;;  %v405_v25 = vsel %vm6876_vm5, %v399_v60, %v400_v58  ;;  %v344_v45 = vsel %vm4556_vm10, %v4335_v0, %v342_v27  ;;  %v464_v29 = vperm.slane %v295_v21, 5 }
  0xcb   : > { %v406_v44 = vsel %vm6873_vm6, %v404_v24, %v405_v25  ;;  %v465_v49 = vperm.slane %v295_v21, 6  ;;  %v466_v32 = vperm.slane %v295_v21, 7  ;;  %v476_v51 = vperm.slane %v344_v45, 0 }
  0xcc   : > { %v407_v50 = vsel %vm6872_vm8, %v403_v48, %v406_v44  ;;  %v477_v52 = vperm.slane %v344_v45, 1  ;;  %v527_v55 = vsel %vm6878_vm3, %v460_v26, %v4356_v5  ;;  %v478_v56 = vperm.slane %v344_v45, 2 }
  0xcd   : > { %v528_v0 = vsel %vm6878_vm3, %v461_v42, %v4338_v1  ;;  %v479_v57 = vperm.slane %v344_v45, 3  ;;  %v529_v58 = vsel %vm6878_vm3, %v462_v46, %v4353_v4  ;;  %v530_v59 = vsel %vm6878_vm3, %v463_v47, %v4344_v3 }
  0xce   : > { %v413_v28 = vpop.permute.xlu1 %412  ;;  %v4561_v34 = vpop.permute.xlu0 %410  ;;  %v409_v2 = vsel %vm4518_vm9, %v4392_v9, %v407_v50  ;;  %v480_v62 = vperm.slane %v344_v45, 4  ;;  %v531_v5 = vsel %vm6878_vm3, %v464_v29, %v4359_v6  ;;  %v532_v1 = vsel %vm6878_vm3, %v465_v49, %v4371_v8 }
  0xcf   : > { %v481_v43 = vperm.slane %v344_v45, 5  ;;  %v482_v53 = vperm.slane %v344_v45, 6  ;;  %v483_v54 = vperm.slane %v344_v45, 7  ;;  %v533_v4 = vsel %vm6878_vm3, %v466_v32, %v4368_v7 }
  0xd0   : > { %v534_v3 = vsel %vm6874_vm4, %v526_v37, %v476_v51  ;;  %v535_v63 = vsel %vm6874_vm4, %v527_v55, %v477_v52  ;;  %v536_v18 = vsel %vm6874_vm4, %v528_v0, %v478_v56  ;;  %v493_v21 = vperm.slane %v409_v2, 0 }
  0xd1   : > { %v537_v23 = vsel %vm6874_vm4, %v529_v58, %v479_v57  ;;  %v431_v7 = vsel %vm6882_vm7, %v413_v28, %v415_v39  ;;  %v494_v30 = vperm.slane %v409_v2, 1  ;;  %v495_v22 = vperm.slane %v409_v2, 2 }
  0xd2   : > { %v538_v24 = vsel %vm6874_vm4, %v530_v59, %v480_v62  ;;  %v496_v25 = vperm.slane %v409_v2, 3  ;;  %v539_v27 = vsel %vm6874_vm4, %v531_v5, %v481_v43  ;;  %v540_v38 = vsel %vm6874_vm4, %v532_v1, %v482_v53 }
  0xd3   : > { %v541_v40 = vsel %vm6874_vm4, %v533_v4, %v483_v54  ;;  %v432_v31 = vsel %vm6882_vm7, %v4561_v34, %v413_v28  ;;  %v442_v42 = vrot.slane %v431_v7, 7  ;;  %v543_v33 = vsel %vm542_vm11, %v534_v3, %v493_v21 }
  0xd4   : > { %v497_v45 = vperm.slane %v409_v2, 4  ;;  %v498_v46 = vperm.slane %v409_v2, 5  ;;  %v544_v29 = vsel %vm542_vm11, %v535_v63, %v494_v30  ;;  %v545_v49 = vsel %vm542_vm11, %v536_v18, %v495_v22 }
  0xd5   : > { %v499_v50 = vperm.slane %v409_v2, 6  ;;  %v500_v28 = vperm.slane %v409_v2, 7  ;;  %v449_v58 = vsel %vm6878_vm3, %v432_v31, %v442_v42  ;;  %v546_v59 = vsel %vm542_vm11, %v537_v23, %v496_v25 }
  0xd6   : > { %v419_v60 = vpop.permute.xlu1 %418  ;;  %v417_v61 = vpop.permute.xlu0 %416  ;;  %v547_v2 = vsel %vm542_vm11, %v538_v24, %v497_v45  ;;  %v551_v53 = vsel %vm6872_vm8, %v543_v33, %v4397_v10  ;;  %v552_v54 = vsel %vm6872_vm8, %v544_v29, %v4400_v11  ;;  %v553_v3 = vsel %vm6872_vm8, %v545_v49, %v4412_v13 }
  0xd7   : > { %v429_v6 = vsel %vm6882_vm7, %v417_v61, %v419_v60  ;;  %v430_v8 = vsel %vm6882_vm7, %v415_v39, %v417_v61  ;;  %v428_v44 = vsel %vm6882_vm7, %v419_v60, %v421_v20  ;;  %v549_v62 = vsel %vm542_vm11, %v540_v38, %v499_v50  ;;  %v586_v38 = vld [vmem:[%s6870_s3] sm:$0xff] }
  0xd8   : > { %v443_v26 = vrot.slane %v430_v8, 6  ;;  %v444_v39 = vrot.slane %v429_v6, 5  ;;  %v445_v37 = vrot.slane %v428_v44, 4  ;;  %v550_v5 = vsel %vm542_vm11, %v541_v40, %v500_v28 }
  0xd9   : > { %v554_v63 = vsel %vm6872_vm8, %v546_v59, %v4409_v12  ;;  %v555_v18 = vsel %vm6872_vm8, %v547_v2, %v4415_v14  ;;  %v557_v11 = vsel %vm6872_vm8, %v549_v62, %v4424_v15  ;;  %v558_v6 = vsel %vm6872_vm8, %v550_v5, %v4430_v17 }
  0xda   : > { %v450_v55 = vsel %vm6877_vm2, %v443_v26, %v444_v39 }
  0xdb   : > { %v451_v1 = vsel %vm6874_vm4, %v449_v58, %v450_v55 }
  0xde   : > { %v425_v47 = vpop.permute.xlu1 %424  ;;  %v423_v48 = vpop.permute.xlu0 %422 }
  0xdf   : > { %v433_v32 = vsel %vm6882_vm7, %v425_v47, %v4561_v34  ;;  %v426_v51 = vsel %vm6882_vm7, %v423_v48, %v425_v47  ;;  %v427_v52 = vsel %vm6882_vm7, %v421_v20, %v423_v48  ;;  %v548_v34 = vsel %vm542_vm11, %v539_v27, %v498_v46  ;;  %v587_v46 = vld [vmem:[%s6870_s3 + $0x8] sm:$0xff]  ;;  %v588_v47 = vld [vmem:[%s6870_s3 + $0x10] sm:$0xff]  ;;  %v589_v48 = vld [vmem:[%s6870_s3 + $0x18] sm:$0xff] }
  0xe0   : > { %v448_v56 = vrot.slane %v433_v32, 1  ;;  %v446_v0 = vrot.slane %v427_v52, 3  ;;  %v447_v57 = vrot.slane %v426_v51, 2  ;;  %v556_v10 = vsel %vm6872_vm8, %v548_v34, %v4427_v16 }
  0xe1   : > { %vm6925_vm11 = vcmask 261120  }
  0xe2   : > { %v452_v60 = vsel %vm6875_vm1, %v445_v37, %v446_v0  ;;  %v453_v61 = vsel %vm6876_vm5, %v447_v57, %v448_v56 }
  0xe3   : > { %v454_v43 = vsel %vm6873_vm6, %v452_v60, %v453_v61 }
  0xe4   : > { %v455_v4 = vsel %vm6872_vm8, %v451_v1, %v454_v43 }
  0xe5   : > { %v457_v20 = vsel %vm4556_vm10, %v4392_v9, %v455_v4 }
  0xe6   : > { %v510_v13 = vperm.slane %v457_v20, 0  ;;  %v511_v8 = vperm.slane %v457_v20, 1  ;;  %v512_v21 = vperm.slane %v457_v20, 2  ;;  %v513_v12 = vperm.slane %v457_v20, 3 }
  0xe7   : > { %v514_v23 = vperm.slane %v457_v20, 4  ;;  %v515_v7 = vperm.slane %v457_v20, 5  ;;  %v516_v14 = vperm.slane %v457_v20, 6  ;;  %v517_v30 = vperm.slane %v457_v20, 7 }
  0xe8   : > { %v560_v22 = vsel %vm559_vm12, %v551_v53, %v510_v13  ;;  %v561_v9 = vsel %vm559_vm12, %v552_v54, %v511_v8  ;;  %v562_v16 = vsel %vm559_vm12, %v553_v3, %v512_v21  ;;  %v563_v24 = vsel %vm559_vm12, %v554_v63, %v513_v12  ;;  %v840_v8 = vld [vmem:[%s6870_s3 + $0x48] sm:$0xff]  ;;  %v841_v21 = vld [vmem:[%s6870_s3 + $0x50] sm:$0xff]  ;;  %v842_v12 = vld [vmem:[%s6870_s3 + $0x58] sm:$0xff] }
  0xe9   : > { %v569_v15 = vsel %vm568_vm13, %v560_v22, 1.0  ;;  %v570_v17 = vsel %vm568_vm13, %v561_v9, 1.0  ;;  %v571_v25 = vsel %vm568_vm13, %v562_v16, 1.0  ;;  %v572_v27 = vsel %vm568_vm13, %v563_v24, 1.0 }
  0xea   : > { %3597 = vmatpush.msk.msra.mxu0 %vm577_vm14, %v569_v15  ;;  %3602 = vmatpush.msk.msra.mxu1 %vm577_vm14, %v570_v17  ;;  %v564_v40 = vsel %vm559_vm12, %v555_v18, %v514_v23  ;;  %v565_v31 = vsel %vm559_vm12, %v556_v10, %v515_v7  ;;  %v566_v44 = vsel %vm559_vm12, %v557_v11, %v516_v14  ;;  %v839_v11 = vld [vmem:[%s6870_s3 + $0x40] sm:$0xff] }
  0xeb   : > { %3607 = vmatpush.msk.msra.mxu2 %vm577_vm14, %v571_v25  ;;  %3612 = vmatpush.msk.msra.mxu3 %vm577_vm14, %v572_v27  ;;  %v573_v26 = vsel %vm568_vm13, %v564_v40, 1.0  ;;  %v574_v39 = vsel %vm568_vm13, %v565_v31, 1.0  ;;  %v567_v42 = vsel %vm559_vm12, %v558_v6, %v517_v30  ;;  %v575_v33 = vsel %vm568_vm13, %v566_v44, 1.0 }
  0xec   : > { %3598 = vmatmul.msk.f32.vlgmr.msra.gmra.mxu0 %vm590_vm15, %v586_v38  ;;  %3603 = vmatmul.msk.f32.vlgmr.msra.gmra.mxu1 %vm590_vm15, %v586_v38  ;;  %v576_v45 = vsel %vm568_vm13, %v567_v42, 1.0  ;;  %v4983_v40 = vsel %vm4518_vm9, 1, %v4256_v19  ;;  %v6945_v42 = vmov 0 }
  0xed   : > { %3608 = vmatmul.msk.f32.vlgmr.msra.gmra.mxu2 %vm590_vm15, %v586_v38  ;;  %3613 = vmatmul.msk.f32.vlgmr.msra.gmra.mxu3 %vm590_vm15, %v586_v38  ;;  %v949_v44 = vperm.slane %v4983_v40, 1 }
  0xee   : > { %3617 = vmatpush.msk.msrb.mxu0 %vm577_vm14, %v573_v26  ;;  %3622 = vmatpush.msk.msrb.mxu1 %vm577_vm14, %v574_v39  ;;  %v950_v26 = vperm.slane %v4983_v40, 2 }
  0xef   : > { %3627 = vmatpush.msk.msrb.mxu2 %vm577_vm14, %v575_v33  ;;  %3632 = vmatpush.msk.msrb.mxu3 %vm577_vm14, %v576_v45  ;;  %vm4997_vm12 = vcmp.ne.s32.totalorder %v949_v44, 1 }
  0xf0   : > { %v6943_v41 = vsel %vm4997_vm12, 4294967295, %v6942_v41  ;;  %vm5001_vm9 = vcmp.ne.s32.totalorder %v950_v26, 1 }
  0xf1   : > { %6944 = vst [vmem:[#allocation6_spill] sm:$0xff] %v6943_v41  ;;  %v6946_v42 = vsel %vm5001_vm9, 4294967295, %v6945_v42 }
  0xf2   : > { %6947 = vst [vmem:[#allocation7_spill] sm:$0xff] %v6946_v42 }
  0xf4   : > { %3599 = vmatmul.msk.f32.gmra.mxu0 %vm590_vm15, %v587_v46  ;;  %3604 = vmatmul.msk.f32.gmra.mxu1 %vm590_vm15, %v587_v46 }
  0xf5   : > { %3609 = vmatmul.msk.f32.gmra.mxu2 %vm590_vm15, %v587_v46  ;;  %3614 = vmatmul.msk.f32.gmra.mxu3 %vm590_vm15, %v587_v46 }
  0xfc   : > { %3600 = vmatmul.msk.f32.gmra.mxu0 %vm590_vm15, %v588_v47  ;;  %3605 = vmatmul.msk.f32.gmra.mxu1 %vm590_vm15, %v588_v47 }
  0xfd   : > { %3610 = vmatmul.msk.f32.gmra.mxu2 %vm590_vm15, %v588_v47  ;;  %3615 = vmatmul.msk.f32.gmra.mxu3 %vm590_vm15, %v588_v47 }
 0x104   : > { %3601 = vmatmul.msk.f32.gmra.mxu0 %vm590_vm15, %v589_v48  ;;  %3606 = vmatmul.msk.f32.gmra.mxu1 %vm590_vm15, %v589_v48 }
 0x105   : > { %3611 = vmatmul.msk.f32.gmra.mxu2 %vm590_vm15, %v589_v48  ;;  %3616 = vmatmul.msk.f32.gmra.mxu3 %vm590_vm15, %v589_v48 }
 0x10c   : > { %3618 = vmatmul.msk.f32.vlgmr.msrb.gmra.mxu0 %vm590_vm15, %v586_v38  ;;  %3623 = vmatmul.msk.f32.vlgmr.msrb.gmra.mxu1 %vm590_vm15, %v586_v38 }
 0x10d   : > { %3628 = vmatmul.msk.f32.vlgmr.msrb.gmra.mxu2 %vm590_vm15, %v586_v38  ;;  %3633 = vmatmul.msk.f32.vlgmr.msrb.gmra.mxu3 %vm590_vm15, %v586_v38 }
 0x114   : > { %3619 = vmatmul.msk.f32.gmra.mxu0 %vm590_vm15, %v587_v46  ;;  %3624 = vmatmul.msk.f32.gmra.mxu1 %vm590_vm15, %v587_v46 }
 0x115   : > { %3629 = vmatmul.msk.f32.gmra.mxu2 %vm590_vm15, %v587_v46  ;;  %3634 = vmatmul.msk.f32.gmra.mxu3 %vm590_vm15, %v587_v46 }
 0x11c   : > { %3620 = vmatmul.msk.f32.gmra.mxu0 %vm590_vm15, %v588_v47  ;;  %3625 = vmatmul.msk.f32.gmra.mxu1 %vm590_vm15, %v588_v47 }
 0x11d   : > { %3630 = vmatmul.msk.f32.gmra.mxu2 %vm590_vm15, %v588_v47  ;;  %3635 = vmatmul.msk.f32.gmra.mxu3 %vm590_vm15, %v588_v47 }
 0x124   : > { %3621 = vmatmul.msk.f32.gmra.mxu0 %vm590_vm15, %v589_v48  ;;  %3626 = vmatmul.msk.f32.gmra.mxu1 %vm590_vm15, %v589_v48 }
 0x125   : > { %3631 = vmatmul.msk.f32.gmra.mxu2 %vm590_vm15, %v589_v48  ;;  %3636 = vmatmul.msk.f32.gmra.mxu3 %vm590_vm15, %v589_v48  ;;  %v951_v48 = vperm.slane %v4983_v40, 3 }
 0x127   : > { %vm5041_vm13 = vcmp.ne.s32.totalorder %v951_v48, 1 }
 0x169   : > { %v4721_v29 = vpop.f32.mrf.mxu0  ;;  %v4723_v49 = vpop.f32.mrf.mxu1 }
 0x16a   : > { %859 = vrot.lane.b32.xlu1 %v4723_v49, %s4254_s6  ;;  %851 = vrot.lane.b32.xlu2 %v4721_v29, %s4254_s6 }
 0x170   : > { %v4729_v50 = vpop.f32.mrf.mxu2  ;;  %v4731_v28 = vpop.f32.mrf.mxu3 }
 0x171   : > { %875 = vrot.lane.b32.xlu0 %v4731_v28, %s4254_s6  ;;  %v4735_v37 = vpop.f32.mrf.mxu0  ;;  %v4737_v32 = vpop.f32.mrf.mxu1 }
 0x172   : > { %861 = vrot.lane.b32.xlu1 %v4737_v32, %s4254_s6  ;;  %867 = vrot.lane.b32.xlu2 %v4729_v50, %s4254_s6 }
 0x178   : > { %v4743_v51 = vpop.f32.mrf.mxu2  ;;  %v4745_v52 = vpop.f32.mrf.mxu3 }
 0x179   : > { %877 = vrot.lane.b32.xlu0 %v4745_v52, %s4254_s6  ;;  %v4749_v55 = vpop.f32.mrf.mxu0  ;;  %v4751_v56 = vpop.f32.mrf.mxu1 }
 0x17a   : > { %869 = vrot.lane.b32.xlu2 %v4743_v51, %s4254_s6  ;;  %853 = vrot.lane.b32.xlu1 %v4735_v37, %s4254_s6 }
 0x180   : > { %v4757_v0 = vpop.f32.mrf.mxu2  ;;  %v4759_v57 = vpop.f32.mrf.mxu3 }
 0x181   : > { %855 = vrot.lane.b32.xlu0 %v4749_v55, %s4254_s6  ;;  %v4763_v58 = vpop.f32.mrf.mxu0  ;;  %v4765_v59 = vpop.f32.mrf.mxu1 }
 0x182   : > { %1050 = vmatpush.msra.mxu1 %v4765_v59  ;;  %871 = vrot.lane.b32.xlu2 %v4757_v0, %s4254_s6 }
 0x183   : > { %863 = vrot.lane.b32.xlu1 %v4751_v56, %s4254_s6  ;;  %1021 = vmatpush.msra.mxu0 %v4763_v58 }
 0x184   : > { %1051 = vmatpush.msra.mxu1 %v4751_v56 }
 0x185   : > { %1022 = vmatpush.msra.mxu0 %v4749_v55 }
 0x186   : > { %1052 = vmatpush.msra.mxu1 %v4737_v32 }
 0x187   : > { %1023 = vmatpush.msra.mxu0 %v4735_v37 }
 0x188   : > { %v4777_v2 = vpop.f32.mrf.mxu2  ;;  %v4779_v34 = vpop.f32.mrf.mxu3  ;;  %1053 = vmatpush.msra.mxu1 %v4723_v49 }
 0x189   : > { %1079 = vmatpush.msra.mxu2 %v4777_v2  ;;  %1108 = vmatpush.msra.mxu3 %v4779_v34  ;;  %v4784_v60 = vpop.f32.mrf.mxu0  ;;  %v4786_v61 = vpop.f32.mrf.mxu1 }
 0x18a   : > { %879 = vrot.lane.b32.xlu0 %v4759_v57, %s4254_s6  ;;  %1024 = vmatpush.msra.mxu0 %v4721_v29 }
 0x18b   : > { %1080 = vmatpush.msra.mxu2 %v4757_v0  ;;  %1109 = vmatpush.msra.mxu3 %v4759_v57 }
 0x18c   : > { %865 = vrot.lane.b32.xlu1 %v4765_v59, %s4254_s6  ;;  %857 = vrot.lane.b32.xlu2 %v4763_v58, %s4254_s6 }
 0x18d   : > { %1081 = vmatpush.msra.mxu2 %v4743_v51  ;;  %1110 = vmatpush.msra.mxu3 %v4745_v52 }
 0x18e   : > { %3641 = vmatmul.msk.f32.vlgmr.msra.gmra.mxu1 %vm6925_vm11, %v839_v11  ;;  %3637 = vmatmul.msk.f32.vlgmr.msra.gmra.mxu0 %vm6925_vm11, %v839_v11 }
 0x18f   : > { %1082 = vmatpush.msra.mxu2 %v4729_v50  ;;  %1111 = vmatpush.msra.mxu3 %v4731_v28 }
 0x190   : > { %v4801_v62 = vpop.f32.mrf.mxu2  ;;  %v4803_v5 = vpop.f32.mrf.mxu3  ;;  %3645 = vmatmul.msk.f32.vlgmr.msra.gmra.mxu2 %vm6925_vm11, %v839_v11  ;;  %3649 = vmatmul.msk.f32.vlgmr.msra.gmra.mxu3 %vm6925_vm11, %v839_v11 }
 0x191   : > { %v4805_v1 = vpop.f32.mrf.mxu0  ;;  %v4807_v43 = vpop.f32.mrf.mxu1 }
 0x192   : > { %881 = vrot.lane.b32.xlu0 %v4779_v34, %s4254_s6 }
 0x194   : > { %899 = vrot.lane.b32.xlu1 %v4801_v62, %s4254_s6  ;;  %873 = vrot.lane.b32.xlu2 %v4777_v2, %s4254_s6 }
 0x196   : > { %3642 = vmatmul.msk.f32.gmra.mxu1 %vm6925_vm11, %v840_v8  ;;  %3638 = vmatmul.msk.f32.gmra.mxu0 %vm6925_vm11, %v840_v8 }
 0x198   : > { %v4815_v53 = vpop.f32.mrf.mxu2  ;;  %v4817_v54 = vpop.f32.mrf.mxu3  ;;  %3646 = vmatmul.msk.f32.gmra.mxu2 %vm6925_vm11, %v840_v8  ;;  %3650 = vmatmul.msk.f32.gmra.mxu3 %vm6925_vm11, %v840_v8 }
 0x199   : > { %v4819_v4 = vpop.f32.mrf.mxu0  ;;  %v4821_v3 = vpop.f32.mrf.mxu1 }
 0x19a   : > { %907 = vrot.lane.b32.xlu0 %v4803_v5, %s4254_s6 }
 0x19c   : > { %895 = vrot.lane.b32.xlu1 %v4821_v3, %s4254_s6  ;;  %891 = vrot.lane.b32.xlu2 %v4786_v61, %s4254_s6 }
 0x19e   : > { %3643 = vmatmul.msk.f32.gmra.mxu1 %vm6925_vm11, %v841_v21  ;;  %3639 = vmatmul.msk.f32.gmra.mxu0 %vm6925_vm11, %v841_v21 }
 0x1a0   : > { %v4829_v63 = vpop.f32.mrf.mxu2  ;;  %v4831_v18 = vpop.f32.mrf.mxu3  ;;  %3647 = vmatmul.msk.f32.gmra.mxu2 %vm6925_vm11, %v841_v21  ;;  %3651 = vmatmul.msk.f32.gmra.mxu3 %vm6925_vm11, %v841_v21 }
 0x1a1   : > { %v745_v20 = vpop.f32.mrf.mxu0  ;;  %v4833_v10 = vpop.f32.mrf.mxu1 }
 0x1a2   : > { %893 = vrot.lane.b32.xlu0 %v4807_v43, %s4254_s6  ;;  %1166 = vmatpush.msrb.mxu1 %v4833_v10 }
 0x1a3   : > { %1137 = vmatpush.msrb.mxu0 %v745_v20 }
 0x1a4   : > { %911 = vrot.lane.b32.xlu1 %v4831_v18, %s4254_s6  ;;  %909 = vrot.lane.b32.xlu2 %v4817_v54, %s4254_s6 }
 0x1a5   : > { %1138 = vmatpush.msrb.mxu0 %v4819_v4  ;;  %1167 = vmatpush.msrb.mxu1 %v4821_v3 }
 0x1a6   : > { %3644 = vmatmul.msk.f32.gmra.mxu1 %vm6925_vm11, %v842_v12  ;;  %3640 = vmatmul.msk.f32.gmra.mxu0 %vm6925_vm11, %v842_v12 }
 0x1a7   : > { %1139 = vmatpush.msrb.mxu0 %v4805_v1  ;;  %1168 = vmatpush.msrb.mxu1 %v4807_v43 }
 0x1a8   : > { %v4851_v6 = vpop.f32.mrf.mxu2  ;;  %v4853_v13 = vpop.f32.mrf.mxu3  ;;  %3648 = vmatmul.msk.f32.gmra.mxu2 %vm6925_vm11, %v842_v12  ;;  %3652 = vmatmul.msk.f32.gmra.mxu3 %vm6925_vm11, %v842_v12 }
 0x1a9   : > { %1169 = vmatpush.msrb.mxu1 %v4786_v61  ;;  %1195 = vmatpush.msrb.mxu2 %v4851_v6 }
 0x1aa   : > { %1224 = vmatpush.msrb.mxu3 %v4853_v13  ;;  %903 = vrot.lane.b32.xlu0 %v4829_v63, %s4254_s6 }
 0x1ab   : > { %1140 = vmatpush.msrb.mxu0 %v4784_v60  ;;  %1196 = vmatpush.msrb.mxu2 %v4829_v63 }
 0x1ac   : > { %1225 = vmatpush.msrb.mxu3 %v4831_v18  ;;  %901 = vrot.lane.b32.xlu2 %v4815_v53, %s4254_s6 }
 0x1ad   : > { %887 = vrot.lane.b32.xlu1 %v4819_v4, %s4254_s6  ;;  %1197 = vmatpush.msrb.mxu2 %v4815_v53 }
 0x1ae   : > { %1226 = vmatpush.msrb.mxu3 %v4817_v54  ;;  %3657 = vmatmul.msk.f32.vlgmr.msrb.gmra.mxu1 %vm6925_vm11, %v839_v11 }
 0x1af   : > { %1198 = vmatpush.msrb.mxu2 %v4801_v62  ;;  %3653 = vmatmul.msk.f32.vlgmr.msrb.gmra.mxu0 %vm6925_vm11, %v839_v11 }
 0x1b0   : > { %1227 = vmatpush.msrb.mxu3 %v4803_v5  ;;  %3661 = vmatmul.msk.f32.vlgmr.msrb.gmra.mxu2 %vm6925_vm11, %v839_v11 }
 0x1b1   : > { %3665 = vmatmul.msk.f32.vlgmr.msrb.gmra.mxu3 %vm6925_vm11, %v839_v11 }
 0x1b2   : > { %913 = vrot.lane.b32.xlu0 %v4853_v13, %s4254_s6 }
 0x1b4   : > { %897 = vrot.lane.b32.xlu2 %v4833_v10, %s4254_s6 }
 0x1b5   : > { %1515 = vrot.lane.b32.xlu1 %v4779_v34, %s4255_s7 }
 0x1b6   : > { %3658 = vmatmul.msk.f32.gmra.mxu1 %vm6925_vm11, %v840_v8 }
 0x1b7   : > { %3654 = vmatmul.msk.f32.gmra.mxu0 %vm6925_vm11, %v840_v8 }
 0x1b8   : > { %3662 = vmatmul.msk.f32.gmra.mxu2 %vm6925_vm11, %v840_v8 }
 0x1b9   : > { %3666 = vmatmul.msk.f32.gmra.mxu3 %vm6925_vm11, %v840_v8 }
 0x1ba   : > { %889 = vrot.lane.b32.xlu0 %v745_v20, %s4254_s6 }
 0x1bc   : > { %885 = vrot.lane.b32.xlu2 %v4805_v1, %s4254_s6 }
 0x1bd   : > { %905 = vrot.lane.b32.xlu1 %v4851_v6, %s4254_s6 }
 0x1be   : > { %3659 = vmatmul.msk.f32.gmra.mxu1 %vm6925_vm11, %v841_v21 }
 0x1bf   : > { %3655 = vmatmul.msk.f32.gmra.mxu0 %vm6925_vm11, %v841_v21 }
 0x1c0   : > { %3663 = vmatmul.msk.f32.gmra.mxu2 %vm6925_vm11, %v841_v21 }
 0x1c1   : > { %3667 = vmatmul.msk.f32.gmra.mxu3 %vm6925_vm11, %v841_v21  ;;  %v952_v21 = vperm.slane %v4983_v40, 4 }
 0x1c2   : > { %883 = vrot.lane.b32.xlu0 %v4784_v60, %s4254_s6 }
 0x1c3   : > { %vm5181_vm15 = vcmp.ne.s32.totalorder %v952_v21, 1  ;;  %v847_v21 = vld [vmem:[%s6870_s3 + $0xc8] sm:$0xff] }
 0x1c4   : > { %1523 = vrot.lane.b32.xlu2 %v745_v20, %s4255_s7  ;;  %v4908_v23 = vpop.permute.xlu2 %851  ;;  %v6951_v20 = vmov 0 }
 0x1c5   : > { %1513 = vrot.lane.b32.xlu1 %v4759_v57, %s4255_s7 }
 0x1c6   : > { %3660 = vmatmul.msk.f32.gmra.mxu1 %vm6925_vm11, %v842_v12 }
 0x1c7   : > { %3656 = vmatmul.msk.f32.gmra.mxu0 %vm6925_vm11, %v842_v12 }
 0x1c8   : > { %3664 = vmatmul.msk.f32.gmra.mxu2 %vm6925_vm11, %v842_v12 }
 0x1c9   : > { %3668 = vmatmul.msk.f32.gmra.mxu3 %vm6925_vm11, %v842_v12  ;;  %v953_v12 = vperm.slane %v4983_v40, 5 }
 0x1ca   : > { %1507 = vrot.lane.b32.xlu0 %v4777_v2, %s4255_s7 }
 0x1cb   : > { %vm5185_vm8 = vcmp.ne.s32.totalorder %v953_v12, 1 }
 0x1cc   : > { %1521 = vrot.lane.b32.xlu2 %v4819_v4, %s4255_s7  ;;  %v4920_v7 = vpop.permute.xlu2 %867 }
 0x1cd   : > { %1511 = vrot.lane.b32.xlu1 %v4745_v52, %s4255_s7 }
 0x1d2   : > { %1505 = vrot.lane.b32.xlu0 %v4757_v0, %s4255_s7 }
 0x1d4   : > { %1519 = vrot.lane.b32.xlu2 %v4805_v1, %s4255_s7  ;;  %v4932_v14 = vpop.permute.xlu2 %869 }
 0x1d5   : > { %1509 = vrot.lane.b32.xlu1 %v4731_v28, %s4255_s7 }
 0x1da   : > { %1503 = vrot.lane.b32.xlu0 %v4743_v51, %s4255_s7  ;;  %v5048_v51 = vld [vmem:[%s6870_s3 + $0x20] sm:$0xff] }
 0x1dc   : > { %1517 = vrot.lane.b32.xlu2 %v4784_v60, %s4255_s7  ;;  %v860_v30 = vpop.permute.xlu1 %859  ;;  %v4944_v22 = vpop.permute.xlu2 %871  ;;  %v5100_v60 = vld [vmem:[%s6870_s3 + $0x28] sm:$0xff] }
 0x1dd   : > { %1499 = vrot.lane.b32.xlu1 %v4765_v59, %s4255_s7 }
 0x1e2   : > { %1501 = vrot.lane.b32.xlu0 %v4729_v50, %s4255_s7 }
 0x1e3   : > { %v4954_v9 = vpop.permute.xlu0 %875 }
 0x1e4   : > { %1497 = vrot.lane.b32.xlu2 %v4751_v56, %s4255_s7  ;;  %v862_v16 = vpop.permute.xlu1 %861  ;;  %v935_v56 = vsel %vm6879_vm0, %v860_v30, %v4920_v7  ;;  %v931_v34 = vsel %vm6879_vm0, %v4920_v7, %v4954_v9 }
 0x1e5   : > { %1491 = vrot.lane.b32.xlu1 %v4763_v58, %s4255_s7  ;;  %v936_v28 = vsel %vm6879_vm0, %v862_v16, %v4932_v14 }
 0x1e6   : > { %v4960_v24 = vpop.permute.xlu2 %857 }
 0x1ea   : > { %1495 = vrot.lane.b32.xlu0 %v4737_v32, %s4255_s7  ;;  %v6948_v32 = vmov 0 }
 0x1eb   : > { %v4964_v15 = vpop.permute.xlu0 %877  ;;  %v6949_v32 = vsel %vm5041_vm13, 4294967295, %v6948_v32 }
 0x1ec   : > { %1493 = vrot.lane.b32.xlu2 %v4723_v49, %s4255_s7  ;;  %v4968_v17 = vpop.permute.xlu1 %853  ;;  %6950 = vst [vmem:[#allocation8_spill] sm:$0xff] %v6949_v32  ;;  %v932_v59 = vsel %vm6879_vm0, %v4932_v14, %v4964_v15  ;;  %v954_v14 = vperm.slane %v4983_v40, 6 }
 0x1ed   : > { %1487 = vrot.lane.b32.xlu1 %v4735_v37, %s4255_s7  ;;  %v940_v50 = vsel %vm6879_vm0, %v4968_v17, %v862_v16  ;;  %v6954_v16 = vmov 0 }
 0x1ee   : > { %v874_v25 = vpop.permute.xlu2 %873  ;;  %v6955_v16 = vsel %vm5181_vm15, 4294967295, %v6954_v16  ;;  %vm5204_vm6 = vcmp.ne.s32.totalorder %v954_v14, 1 }
 0x1ef   : > { %6956 = vst [vmem:[#allocation10_spill] sm:$0xff] %v6955_v16 }
 0x1f2   : > { %1489 = vrot.lane.b32.xlu0 %v4749_v55, %s4255_s7  ;;  %v939_v55 = vsel %vm6879_vm0, %v4908_v23, %v860_v30  ;;  %v955_v30 = vperm.slane %v4983_v40, 7 }
 0x1f3   : > { %v4974_v27 = vpop.permute.xlu0 %855 }
 0x1f4   : > { %1485 = vrot.lane.b32.xlu2 %v4721_v29, %s4255_s7  ;;  %vm5208_vm4 = vcmp.ne.s32.totalorder %v955_v30, 1 }
 0x1f5   : > { %1543 = vrot.lane.b32.xlu1 %v4817_v54, %s4255_s7  ;;  %v864_v38 = vpop.permute.xlu1 %863 }
 0x1f6   : > { %v4985_v31 = vpop.permute.xlu2 %891  ;;  %v941_v29 = vsel %vm6879_vm0, %v4974_v27, %v864_v38  ;;  %v937_v49 = vsel %vm6879_vm0, %v864_v38, %v4944_v22  ;;  %v6960_v38 = vmov 0 }
 0x1f7   : > { %v6961_v38 = vsel %vm5204_vm6, 4294967295, %v6960_v38 }
 0x1f8   : > { %6962 = vst [vmem:[#allocation12_spill] sm:$0xff] %v6961_v38 }
 0x1fa   : > { %1537 = vrot.lane.b32.xlu0 %v4829_v63, %s4255_s7 }
 0x1fc   : > { %v4991_v39 = vpop.permute.xlu0 %879  ;;  %1545 = vrot.lane.b32.xlu2 %v4831_v18, %s4255_s7  ;;  %v948_v18 = vperm.slane %v4983_v40, 0  ;;  %v6963_v40 = vmov 0 }
 0x1fd   : > { %1539 = vrot.lane.b32.xlu1 %v4851_v6, %s4255_s7  ;;  %v933_v58 = vsel %vm6879_vm0, %v4944_v22, %v4991_v39  ;;  %v6964_v40 = vsel %vm5208_vm4, 4294967295, %v6963_v40 }
 0x1fe   : > { %v866_v33 = vpop.permute.xlu1 %865  ;;  %v5005_v45 = vpop.permute.xlu2 %909  ;;  %vm5147_vm14 = vcmp.ne.s32.totalorder %v948_v18, 1  ;;  %6965 = vst [vmem:[#allocation13_spill] sm:$0xff] %v6964_v40 }
 0x1ff   : > { %v938_v46 = vsel %vm6879_vm0, %v866_v33, %v874_v25  ;;  %v942_v47 = vsel %vm6879_vm0, %v4960_v24, %v866_v33  ;;  %v6952_v20 = vsel %vm5147_vm14, 4294967295, %v6951_v20  ;;  %v944_v7 = vsel %vm6879_vm0, %v5005_v45, %v4968_v17 }
 0x200   : > { %3682 = vmatpush.msk.msra.mxu1 %vm4997_vm12, %v942_v47  ;;  %3694 = vmatpush.msk.msra.mxu2 %vm5001_vm9, %v938_v46  ;;  %6953 = vst [vmem:[#allocation9_spill] sm:$0xff] %v6952_v20  ;;  %v5221_v46 = vsel %vm4556_vm10, 1, %v4256_v19 }
 0x201   : > { %v1583_v12 = vperm.slane %v5221_v46, 1 }
 0x202   : > { %3684 = vmatpush.msk.msra.mxu1 %vm4997_vm12, %v941_v29  ;;  %3696 = vmatpush.msk.msra.mxu2 %vm5001_vm9, %v937_v49 }
 0x203   : > { %1547 = vrot.lane.b32.xlu0 %v4853_v13, %s4255_s7  ;;  %vm5383_vm5 = vcmp.ne.s32.totalorder %v1583_v12, 1  ;;  %v1587_v12 = vperm.slane %v5221_v46, 5 }
 0x204   : > { %v5035_v37 = vpop.permute.xlu0 %881  ;;  %3686 = vmatpush.msk.msra.mxu1 %vm4997_vm12, %v940_v50  ;;  %3698 = vmatpush.msk.msra.mxu2 %vm5001_vm9, %v936_v28 }
 0x205   : > { %v934_v52 = vsel %vm6879_vm0, %v874_v25, %v5035_v37  ;;  %1533 = vrot.lane.b32.xlu1 %v4801_v62, %s4255_s7  ;;  %1535 = vrot.lane.b32.xlu2 %v4815_v53, %s4255_s7 }
 0x206   : > { %v5063_v0 = vpop.permute.xlu1 %899  ;;  %3688 = vmatpush.msk.msra.mxu1 %vm4997_vm12, %v939_v55  ;;  %3700 = vmatpush.msk.msra.mxu2 %vm5001_vm9, %v935_v56  ;;  %v5069_v57 = vpop.permute.xlu2 %901 }
 0x207   : > { %3706 = vmatpush.msk.msra.mxu3 %vm5041_vm13, %v934_v52  ;;  %3689 = vmatmul.msk.f32.vlgmr.msra.gmra.mxu1 %vm6925_vm11, %v5048_v51  ;;  %v916_v49 = vsel %vm6879_vm0, %v5069_v57, %v5005_v45  ;;  %v919_v52 = vsel %vm6879_vm0, %v4985_v31, %v5063_v0 }
 0x208   : > { %3701 = vmatmul.msk.f32.vlgmr.msra.gmra.mxu2 %vm6925_vm11, %v5048_v51 }
 0x209   : > { %3708 = vmatpush.msk.msra.mxu3 %vm5041_vm13, %v933_v58 }
 0x20b   : > { %3710 = vmatpush.msk.msra.mxu3 %vm5041_vm13, %v932_v59  ;;  %1541 = vrot.lane.b32.xlu0 %v4803_v5, %s4255_s7  ;;  %v6969_v59 = vmov 0 }
 0x20c   : > { %v5091_v2 = vpop.permute.xlu0 %907 }
 0x20d   : > { %3712 = vmatpush.msk.msra.mxu3 %vm5041_vm13, %v931_v34  ;;  %1527 = vrot.lane.b32.xlu1 %v4807_v43, %s4255_s7  ;;  %v5123_v43 = vld [vmem:[%s6870_s3 + $0x30] sm:$0xff]  ;;  %v943_v22 = vsel %vm6879_vm0, %v5091_v2, %v4908_v23  ;;  %v915_v55 = vsel %vm6879_vm0, %v5063_v0, %v5091_v2 }
 0x20e   : > { %1531 = vrot.lane.b32.xlu2 %v4833_v10, %s4255_s7  ;;  %3713 = vmatmul.msk.f32.vlgmr.msra.gmra.mxu3 %vm6925_vm11, %v5048_v51  ;;  %v5110_v62 = vpop.permute.xlu1 %895  ;;  %v898_v5 = vpop.permute.xlu2 %897 }
 0x20f   : > { %3690 = vmatmul.msk.f32.gmra.mxu1 %vm6925_vm11, %v5100_v60 }
 0x210   : > { %3702 = vmatmul.msk.f32.gmra.mxu2 %vm6925_vm11, %v5100_v60 }
 0x213   : > { %1529 = vrot.lane.b32.xlu0 %v4821_v3, %s4255_s7  ;;  %v5136_v3 = vld [vmem:[%s6870_s3 + $0x38] sm:$0xff] }
 0x214   : > { %v5118_v1 = vpop.permute.xlu0 %893 }
 0x215   : > { %v920_v50 = vsel %vm6879_vm0, %v5118_v1, %v5069_v57  ;;  %v6966_v57 = vmov 0 }
 0x216   : > { %1525 = vrot.lane.b32.xlu2 %v4786_v61, %s4255_s7  ;;  %3714 = vmatmul.msk.f32.gmra.mxu3 %vm6925_vm11, %v5100_v60  ;;  %v912_v53 = vpop.permute.xlu1 %911  ;;  %v886_v54 = vpop.permute.xlu2 %885 }
 0x217   : > { %3691 = vmatmul.msk.f32.gmra.mxu1 %vm6925_vm11, %v5123_v43  ;;  %v945_v13 = vsel %vm6879_vm0, %v912_v53, %v4974_v27  ;;  %v928_v19 = vsel %vm6879_vm0, %v4964_v15, %v886_v54  ;;  %v1585_v15 = vperm.slane %v5221_v46, 3 }
 0x218   : > { %3703 = vmatmul.msk.f32.gmra.mxu2 %vm6925_vm11, %v5123_v43 }
 0x219   : > { %vm5291_vm10 = vcmp.ne.s32.totalorder %v1585_v15, 1  ;;  %v6975_v15 = vmov 0 }
 0x21a   : > { %v6967_v57 = vsel %vm5291_vm10, 4294967295, %v6966_v57 }
 0x21b   : > { %6968 = vst [vmem:[#allocation14_spill] sm:$0xff] %v6967_v57 }
 0x21c   : > { %v904_v4 = vpop.permute.xlu0 %903 }
 0x21d   : > { %v917_v35 = vsel %vm6879_vm0, %v904_v4, %v912_v53  ;;  %v921_v29 = vsel %vm6879_vm0, %v5110_v62, %v904_v4  ;;  %v849_v53 = vld [vmem:[%s6870_s3 + $0xd8] sm:$0xff] }
 0x21e   : > { %3715 = vmatmul.msk.f32.gmra.mxu3 %vm6925_vm11, %v5123_v43  ;;  %v5140_v61 = vpop.permute.xlu2 %1523  ;;  %1918 = vperm.xlu1 %4188, %v849_v53   ;;  %v5486_v53 = vld [vmem:[%s6870_s3 + $0x70] sm:$0xff] }
 0x21f   : > { %v888_v63 = vpop.permute.xlu1 %887  ;;  %3692 = vmatmul.msk.f32.gmra.mxu1 %vm6925_vm11, %v5136_v3 }
 0x220   : > { %3704 = vmatmul.msk.f32.gmra.mxu2 %vm6925_vm11, %v5136_v3  ;;  %v925_v44 = vsel %vm6879_vm0, %v888_v63, %v5110_v62  ;;  %v929_v26 = vsel %vm6879_vm0, %v4991_v39, %v888_v63  ;;  %v924_v39 = vsel %vm6879_vm0, %v886_v54, %v5118_v1  ;;  %v5342_v54 = vpop.f32.mrf.mxu1  ;;  %v5344_v63 = vpop.f32.mrf.mxu2 }
 0x224   : > { %v914_v10 = vpop.permute.xlu0 %913 }
 0x225   : > { %v946_v11 = vsel %vm6879_vm0, %v914_v10, %v4960_v24  ;;  %v6957_v24 = vmov 0 }
 0x226   : > { %3716 = vmatmul.msk.f32.gmra.mxu3 %vm6925_vm11, %v5136_v3  ;;  %v5156_v6 = vpop.permute.xlu2 %1521  ;;  %3670 = vmatpush.msk.msra.mxu0 %vm5147_vm14, %v946_v11  ;;  %v6958_v24 = vsel %vm5185_vm8, 4294967295, %v6957_v24 }
 0x227   : > { %v5163_v8 = vpop.permute.xlu1 %1515  ;;  %6959 = vst [vmem:[#allocation11_spill] sm:$0xff] %v6958_v24  ;;  %1908 = vperm.xlu1 %4188, %v847_v21  }
 0x228   : > { %3672 = vmatpush.msk.msra.mxu0 %vm5147_vm14, %v945_v13  ;;  %v1564_v0 = vsel %vm6882_vm7, %v5163_v8, %v5140_v61  ;;  %v5371_v14 = vpop.f32.mrf.mxu1 }
 0x22a   : > { %3674 = vmatpush.msk.msra.mxu0 %vm5147_vm14, %v944_v7 }
 0x22c   : > { %v890_v17 = vpop.permute.xlu0 %889  ;;  %3676 = vmatpush.msk.msra.mxu0 %vm5147_vm14, %v943_v22 }
 0x22d   : > { %v926_v25 = vsel %vm6879_vm0, %v890_v17, %v898_v5  ;;  %v930_v27 = vsel %vm6879_vm0, %v5035_v37, %v890_v17  ;;  %3677 = vmatmul.msk.f32.vlgmr.msra.gmra.mxu0 %vm6925_vm11, %v5048_v51  ;;  %v5381_v17 = vpop.f32.mrf.mxu2 }
 0x22e   : > { %v5198_v23 = vpop.permute.xlu2 %1519  ;;  %3718 = vmatpush.msk.msrb.mxu0 %vm5181_vm15, %v930_v27  ;;  %3730 = vmatpush.msk.msrb.mxu1 %vm5185_vm8, %v926_v25  ;;  %v6972_v27 = vmov 0 }
 0x22f   : > { %v906_v33 = vpop.permute.xlu1 %905  ;;  %v6973_v27 = vsel %vm5383_vm5, 4294967295, %v6972_v27 }
 0x230   : > { %v918_v47 = vsel %vm6879_vm0, %v906_v33, %v914_v10  ;;  %v922_v48 = vsel %vm6879_vm0, %v898_v5, %v906_v33  ;;  %3720 = vmatpush.msk.msrb.mxu0 %vm5181_vm15, %v929_v26  ;;  %3732 = vmatpush.msk.msrb.mxu1 %vm5185_vm8, %v925_v44  ;;  %v5348_v10 = vpop.f32.mrf.mxu3  ;;  %6974 = vst [vmem:[#allocation16_spill] sm:$0xff] %v6973_v27  ;;  %v1582_v33 = vperm.slane %v5221_v46, 0 }
 0x231   : > { %3742 = vmatpush.msk.msrb.mxu2 %vm5204_vm6, %v922_v48  ;;  %3754 = vmatpush.msk.msrb.mxu3 %vm5208_vm4, %v918_v47 }
 0x232   : > { %3722 = vmatpush.msk.msrb.mxu0 %vm5181_vm15, %v928_v19  ;;  %3734 = vmatpush.msk.msrb.mxu1 %vm5185_vm8, %v924_v39  ;;  %v5416_v19 = vld [vmem:[%s6870_s3 + $0x60] sm:$0xff]  ;;  %vm5422_vm2 = vcmp.ne.s32.totalorder %v1582_v33, 1 }
 0x233   : > { %3744 = vmatpush.msk.msrb.mxu2 %vm5204_vm6, %v921_v29  ;;  %3756 = vmatpush.msk.msrb.mxu3 %vm5208_vm4, %v917_v35  ;;  %v5418_v35 = vpop.f32.mrf.mxu1  ;;  %v6976_v15 = vsel %vm5422_vm2, 4294967295, %v6975_v15 }
 0x234   : > { %v884_v28 = vpop.permute.xlu0 %883  ;;  %6977 = vst [vmem:[#allocation17_spill] sm:$0xff] %v6976_v15 }
 0x235   : > { %3746 = vmatpush.msk.msrb.mxu2 %vm5204_vm6, %v920_v50  ;;  %3758 = vmatpush.msk.msrb.mxu3 %vm5208_vm4, %v916_v49  ;;  %v923_v37 = vsel %vm6879_vm0, %v884_v28, %v4985_v31  ;;  %v927_v45 = vsel %vm6879_vm0, %v4954_v9, %v884_v28  ;;  %v1584_v31 = vperm.slane %v5221_v46, 2  ;;  %v5433_v49 = vpop.f32.mrf.mxu2  ;;  %v5439_v28 = vpop.f32.mrf.mxu0  ;;  %vm5536_vm0 = vcmp.ne.s32.totalorder %v1587_v12, 1 }
 0x236   : > { %3678 = vmatmul.msk.f32.gmra.mxu0 %vm6925_vm11, %v5100_v60  ;;  %v5283_v56 = vpop.permute.xlu2 %1517  ;;  %3736 = vmatpush.msk.msrb.mxu1 %vm5185_vm8, %v923_v37 }
 0x237   : > { %3748 = vmatpush.msk.msrb.mxu2 %vm5204_vm6, %v919_v52  ;;  %3760 = vmatpush.msk.msrb.mxu3 %vm5208_vm4, %v915_v55  ;;  %v1514_v9 = vpop.permute.xlu1 %1513  ;;  %vm5313_vm1 = vcmp.ne.s32.totalorder %v1584_v31, 1  ;;  %v5450_v52 = vld [vmem:[%s6870_s3 + $0x68] sm:$0xff] }
 0x238   : > { %3724 = vmatpush.msk.msrb.mxu0 %vm5181_vm15, %v927_v45  ;;  %3737 = vmatmul.msk.f32.vlgmr.msrb.gmra.mxu1 %vm6925_vm11, %v5048_v51  ;;  %v1563_v58 = vsel %vm6882_vm7, %v1514_v9, %v5156_v6  ;;  %v6970_v59 = vsel %vm5313_vm1, 4294967295, %v6969_v59  ;;  %v5387_v44 = vpop.f32.mrf.mxu3 }
 0x239   : > { %3749 = vmatmul.msk.f32.vlgmr.msrb.gmra.mxu2 %vm6925_vm11, %v5048_v51  ;;  %3761 = vmatmul.msk.f32.vlgmr.msrb.gmra.mxu3 %vm6925_vm11, %v5048_v51  ;;  %6971 = vst [vmem:[#allocation15_spill] sm:$0xff] %v6970_v59 }
 0x23a   : > { %3802 = vmatpush.msk.msra.mxu3 %vm5291_vm10, %v1564_v0 }
 0x23b   : > { %v5464_v0 = vpop.f32.mrf.mxu1 }
 0x23c   : > { %3804 = vmatpush.msk.msra.mxu3 %vm5291_vm10, %v1563_v58  ;;  %v1508_v2 = vpop.permute.xlu0 %1507 }
 0x23d   : > { %v1568_v34 = vsel %vm6882_vm7, %v1508_v2, %v5163_v8  ;;  %v5472_v58 = vpop.f32.mrf.mxu2 }
 0x23e   : > { %3679 = vmatmul.msk.f32.gmra.mxu0 %vm6925_vm11, %v5123_v43  ;;  %v5324_v62 = vpop.permute.xlu2 %1497  ;;  %3790 = vmatpush.msk.msra.mxu2 %vm5313_vm1, %v1568_v34 }
 0x23f   : > { %v1512_v5 = vpop.permute.xlu1 %1511 }
 0x240   : > { %v1562_v1 = vsel %vm6882_vm7, %v1512_v5, %v5198_v23  ;;  %3738 = vmatmul.msk.f32.gmra.mxu1 %vm6925_vm11, %v5100_v60  ;;  %v5435_v50 = vpop.f32.mrf.mxu3 }
 0x241   : > { %3750 = vmatmul.msk.f32.gmra.mxu2 %vm6925_vm11, %v5100_v60  ;;  %3762 = vmatmul.msk.f32.gmra.mxu3 %vm6925_vm11, %v5100_v60 }
 0x242   : > { %3806 = vmatpush.msk.msra.mxu3 %vm5291_vm10, %v1562_v1 }
 0x243   : > { %v5510_v21 = vpop.f32.mrf.mxu1 }
 0x244   : > { %v1506_v4 = vpop.permute.xlu0 %1505 }
 0x245   : > { %v1567_v18 = vsel %vm6882_vm7, %v1506_v4, %v1514_v9 }
 0x246   : > { %3680 = vmatmul.msk.f32.gmra.mxu0 %vm6925_vm11, %v5136_v3  ;;  %v5352_v11 = vpop.permute.xlu2 %1493  ;;  %3792 = vmatpush.msk.msra.mxu2 %vm5313_vm1, %v1567_v18 }
 0x247   : > { %v1510_v13 = vpop.permute.xlu1 %1509 }
 0x248   : > { %v1561_v8 = vsel %vm6882_vm7, %v1510_v13, %v5283_v56  ;;  %3739 = vmatmul.msk.f32.gmra.mxu1 %vm6925_vm11, %v5123_v43 }
 0x249   : > { %3751 = vmatmul.msk.f32.gmra.mxu2 %vm6925_vm11, %v5123_v43  ;;  %3763 = vmatmul.msk.f32.gmra.mxu3 %vm6925_vm11, %v5123_v43 }
 0x24a   : > { %3808 = vmatpush.msk.msra.mxu3 %vm5291_vm10, %v1561_v8 }
 0x24c   : > { %v1504_v7 = vpop.permute.xlu0 %1503 }
 0x24d   : > { %v1566_v30 = vsel %vm6882_vm7, %v1504_v7, %v1512_v5  ;;  %v5476_v5 = vpop.f32.mrf.mxu0 }
 0x24e   : > { %3725 = vmatmul.msk.f32.vlgmr.msrb.gmra.mxu0 %vm6925_vm11, %v5048_v51  ;;  %v5377_v22 = vpop.permute.xlu2 %1485  ;;  %3794 = vmatpush.msk.msra.mxu2 %vm5313_vm1, %v1566_v30  ;;  %v1571_v51 = vsel %vm6882_vm7, %v5324_v62, %v1506_v4  ;;  %v1586_v4 = vperm.slane %v5221_v46, 4 }
 0x24f   : > { %v1500_v25 = vpop.permute.xlu1 %1499 }
 0x250   : > { %v1572_v26 = vsel %vm6882_vm7, %v1500_v25, %v1508_v2  ;;  %3740 = vmatmul.msk.f32.gmra.mxu1 %vm6925_vm11, %v5136_v3  ;;  %v5474_v2 = vpop.f32.mrf.mxu3  ;;  %vm5502_vm3 = vcmp.ne.s32.totalorder %v1586_v4, 1 }
 0x251   : > { %3752 = vmatmul.msk.f32.gmra.mxu2 %vm6925_vm11, %v5136_v3  ;;  %3764 = vmatmul.msk.f32.gmra.mxu3 %vm6925_vm11, %v5136_v3 }
 0x252   : > { %3778 = vmatpush.msk.msra.mxu1 %vm5383_vm5, %v1572_v26  ;;  %v5521_v26 = vpop.f32.mrf.mxu2 }
 0x253   : > { %6981 = vst [vmem:[#allocation19_spill] sm:$0xff] %v5521_v26 }
 0x254   : > { %3780 = vmatpush.msk.msra.mxu1 %vm5383_vm5, %v1571_v51  ;;  %v1502_v47 = vpop.permute.xlu0 %1501 }
 0x255   : > { %v1565_v48 = vsel %vm6882_vm7, %v1502_v47, %v1510_v13  ;;  %v1569_v55 = vsel %vm6882_vm7, %v5352_v11, %v1502_v47  ;;  %v5534_v51 = vpop.f32.mrf.mxu0  ;;  %v6982_v47 = vmov 0 }
 0x256   : > { %3726 = vmatmul.msk.f32.gmra.mxu0 %vm6925_vm11, %v5100_v60  ;;  %v5409_v39 = vpop.permute.xlu2 %1545  ;;  %3796 = vmatpush.msk.msra.mxu2 %vm5313_vm1, %v1565_v48  ;;  %v6983_v47 = vsel %vm5536_vm0, 4294967295, %v6982_v47 }
 0x257   : > { %v5420_v29 = vpop.permute.xlu1 %1491  ;;  %6984 = vst [vmem:[#allocation20_spill] sm:$0xff] %v6983_v47 }
 0x258   : > { %v1576_v60 = vsel %vm6882_vm7, %v5420_v29, %v1500_v25  ;;  %v848_v25 = vld [vmem:[%s6870_s3 + $0xd0] sm:$0xff] }
 0x259   : > { %3797 = vmatmul.msk.f32.vlgmr.msra.gmra.mxu2 %vm6925_vm11, %v5416_v19  ;;  %3809 = vmatmul.msk.f32.vlgmr.msra.gmra.mxu3 %vm6925_vm11, %v5416_v19 }
 0x25a   : > { %3766 = vmatpush.msk.msra.mxu0 %vm5422_vm2, %v1576_v60  ;;  %1913 = vperm.xlu2 %4189, %v848_v25   ;;  %v1588_v60 = vperm.slane %v5221_v46, 6 }
 0x25c   : > { %v1496_v37 = vpop.permute.xlu0 %1495 }
 0x25d   : > { %v1570_v45 = vsel %vm6882_vm7, %v1496_v37, %v1504_v7  ;;  %v5583_v12 = vpop.f32.mrf.mxu0 }
 0x25e   : > { %3727 = vmatmul.msk.f32.gmra.mxu0 %vm6925_vm11, %v5123_v43  ;;  %3782 = vmatpush.msk.msra.mxu1 %vm5383_vm5, %v1570_v45  ;;  %v850_v43 = vld [vmem:[%s6870_s3 + $0xe0] sm:$0xff]  ;;  %v6985_v45 = vmov 0 }
 0x25f   : > { %v5455_v9 = vpop.permute.xlu1 %1487  ;;  %v5457_v31 = vpop.permute.xlu2 %1535  ;;  %1923 = vperm.xlu0 %4187, %v850_v43  }
 0x260   : > { %3784 = vmatpush.msk.msra.mxu1 %vm5383_vm5, %v1569_v55  ;;  %v1574_v13 = vsel %vm6882_vm7, %v5455_v9, %v1496_v37  ;;  %v1589_v37 = vperm.slane %v5221_v46, 7  ;;  %vm5552_vm5 = vcmp.ne.s32.totalorder %v1588_v60, 1  ;;  %v6988_v55 = vmov 0  ;;  %v5560_v46 = vpop.f32.mrf.mxu1 }
 0x261   : > { %3798 = vmatmul.msk.f32.gmra.mxu2 %vm6925_vm11, %v5450_v52  ;;  %3810 = vmatmul.msk.f32.gmra.mxu3 %vm6925_vm11, %v5450_v52  ;;  %v6986_v45 = vsel %vm5552_vm5, 4294967295, %v6985_v45  ;;  %6991 = vst [vmem:[#allocation23_spill] sm:$0xff] %v5560_v46 }
 0x262   : > { %3785 = vmatmul.msk.f32.vlgmr.msra.gmra.mxu1 %vm6925_vm11, %v5416_v19  ;;  %6987 = vst [vmem:[#allocation21_spill] sm:$0xff] %v6986_v45 }
 0x264   : > { %v1490_v34 = vpop.permute.xlu0 %1489 }
 0x265   : > { %v1575_v1 = vsel %vm6882_vm7, %v1490_v34, %v5324_v62  ;;  %v1573_v62 = vsel %vm6882_vm7, %v5377_v22, %v5352_v11  ;;  %v5532_v11 = vpop.f32.mrf.mxu3  ;;  %v5622_v60 = vpop.f32.mrf.mxu0 }
 0x266   : > { %3728 = vmatmul.msk.f32.gmra.mxu0 %vm6925_vm11, %v5136_v3  ;;  %v6978_v3 = vmov 0  ;;  %7001 = vst [vmem:[#allocation26_spill] sm:$0xff] %v5622_v60 }
 0x267   : > { %v1544_v18 = vpop.permute.xlu1 %1543  ;;  %3768 = vmatpush.msk.msra.mxu0 %vm5422_vm2, %v1575_v1  ;;  %v6979_v3 = vsel %vm5502_vm3, 4294967295, %v6978_v3 }
 0x268   : > { %v1532_v8 = vpop.permute.xlu2 %1531  ;;  %6980 = vst [vmem:[#allocation18_spill] sm:$0xff] %v6979_v3 }
 0x269   : > { %3799 = vmatmul.msk.f32.gmra.mxu2 %vm6925_vm11, %v5486_v53  ;;  %3811 = vmatmul.msk.f32.gmra.mxu3 %vm6925_vm11, %v5486_v53  ;;  %v1560_v7 = vsel %vm6882_vm7, %v5140_v61, %v1532_v8  ;;  %v5530_v61 = vld [vmem:[%s6870_s3 + $0x78] sm:$0xff] }
 0x26a   : > { %3770 = vmatpush.msk.msra.mxu0 %vm5422_vm2, %v1574_v13  ;;  %3786 = vmatmul.msk.f32.gmra.mxu1 %vm6925_vm11, %v5450_v52  ;;  %v5569_v13 = vpop.f32.mrf.mxu2 }
 0x26c   : > { %3772 = vmatpush.msk.msra.mxu0 %vm5422_vm2, %v1573_v62  ;;  %v1538_v30 = vpop.permute.xlu0 %1537  ;;  %vm6992_vm2 = vcmp.lt.s32.totalorder %v4463_v36, 127 }
 0x26d   : > { %vm6993_vm10 = vmmov %vm6992_vm2 }
 0x26e   : > { %3814 = vmatpush.msk.msrb.mxu0 %vm5502_vm3, %v1560_v7  ;;  %vm6994_vm1 = vmmov %vm6992_vm2 }
 0x26f   : > { %3773 = vmatmul.msk.f32.vlgmr.msra.gmra.mxu0 %vm6925_vm11, %v5416_v19  ;;  %v1540_v33 = vpop.permute.xlu1 %1539 }
 0x270   : > { %v1556_v48 = vsel %vm6882_vm7, %v1532_v8, %v1540_v33  ;;  %vm5556_vm7 = vcmp.ne.s32.totalorder %v1589_v37, 1  ;;  %v1579_v8 = vsel %vm6994_vm1, %v5409_v39, %v1490_v34  ;;  %v1578_v34 = vsel %vm6994_vm1, %v1544_v18, %v5455_v9  ;;  %v5608_v9 = vpop.f32.mrf.mxu1 }
 0x271   : > { %3800 = vmatmul.msk.f32.gmra.mxu2 %vm6925_vm11, %v5530_v61  ;;  %3812 = vmatmul.msk.f32.gmra.mxu3 %vm6925_vm11, %v5530_v61  ;;  %v6989_v55 = vsel %vm5556_vm7, 4294967295, %v6988_v55  ;;  %7000 = vst [vmem:[#allocation25_spill] sm:$0xff] %v5608_v9 }
 0x272   : > { %3826 = vmatpush.msk.msrb.mxu1 %vm5536_vm0, %v1556_v48  ;;  %6990 = vst [vmem:[#allocation22_spill] sm:$0xff] %v6989_v55 }
 0x273   : > { %3787 = vmatmul.msk.f32.gmra.mxu1 %vm6925_vm11, %v5486_v53 }
 0x275   : > { %v1548_v43 = vpop.permute.xlu0 %1547 }
 0x276   : > { %v1552_v1 = vsel %vm6992_vm2, %v1540_v33, %v1548_v43  ;;  %v1580_v4 = vsel %vm6993_vm10, %v1548_v43, %v5420_v29  ;;  %vm6995_vm2 = vmmov %vm6994_vm1  ;;  %v5581_v29 = vpop.f32.mrf.mxu3 }
 0x277   : > { %3774 = vmatmul.msk.f32.gmra.mxu0 %vm6925_vm11, %v5450_v52  ;;  %3838 = vmatpush.msk.msrb.mxu2 %vm5552_vm5, %v1552_v1  ;;  %v1551_v62 = vsel %vm6995_vm2, %v1538_v30, %v5409_v39  ;;  %6996 = vst [vmem:[#allocation24_spill] sm:$0xff] %v5581_v29  ;;  %vm6997_vm10 = vmmov %vm6994_vm1  ;;  %v1534_v25 = vpop.permute.xlu1 %1533 }
 0x278   : > { %3850 = vmatpush.msk.msrb.mxu3 %vm5556_vm7, %v1580_v4  ;;  %v1550_v7 = vsel %vm6997_vm10, %v5457_v31, %v1544_v18  ;;  %vm6998_vm2 = vmmov %vm6994_vm1  ;;  %v5618_v18 = vpop.f32.mrf.mxu2 }
 0x279   : > { %3840 = vmatpush.msk.msrb.mxu2 %vm5552_vm5, %v1551_v62  ;;  %vm6999_vm10 = vmmov %vm6994_vm1 }
 0x27a   : > { %3852 = vmatpush.msk.msrb.mxu3 %vm5556_vm7, %v1579_v8  ;;  %v1526_v8 = vpop.permute.xlu2 %1525 }
 0x27b   : > { %3788 = vmatmul.msk.f32.gmra.mxu1 %vm6925_vm11, %v5530_v61  ;;  %3842 = vmatpush.msk.msrb.mxu2 %vm5552_vm5, %v1550_v7 }
 0x27c   : > { %3854 = vmatpush.msk.msrb.mxu3 %vm5556_vm7, %v1578_v34 }
 0x27d   : > { %v1542_v39 = vpop.permute.xlu0 %1541 }
 0x27e   : > { %v1549_v33 = vsel %vm6998_vm2, %v1534_v25, %v1542_v39  ;;  %v1577_v48 = vsel %vm6999_vm10, %v1542_v39, %v5377_v22  ;;  %v5620_v22 = vpop.f32.mrf.mxu3  ;;  %vm7002_vm2 = vmmov %vm6994_vm1  ;;  %v5666_v39 = vpop.f32.mrf.mxu0 }
 0x27f   : > { %3775 = vmatmul.msk.f32.gmra.mxu0 %vm6925_vm11, %v5486_v53  ;;  %3844 = vmatpush.msk.msrb.mxu2 %vm5552_vm5, %v1549_v33  ;;  %v1528_v37 = vpop.permute.xlu1 %1527  ;;  %vm7003_vm10 = vmmov %vm6994_vm1  ;;  %7007 = vst [vmem:[#allocation28_spill] sm:$0xff] %v5666_v39 }
 0x280   : > { %3856 = vmatpush.msk.msrb.mxu3 %vm5556_vm7, %v1577_v48  ;;  %3845 = vmatmul.msk.f32.vlgmr.msrb.gmra.mxu2 %vm6925_vm11, %v5416_v19  ;;  %v1554_v62 = vsel %vm7003_vm10, %v1528_v37, %v5457_v31  ;;  %vm7006_vm10 = vmmov %vm6994_vm1  ;;  %v5656_v7 = vpop.f32.mrf.mxu2 }
 0x281   : > { %3857 = vmatmul.msk.f32.vlgmr.msrb.gmra.mxu3 %vm6925_vm11, %v5416_v19 }
 0x285   : > { %v1530_v43 = vpop.permute.xlu0 %1529 }
 0x286   : > { %v1555_v1 = vsel %vm6994_vm1, %v1530_v43, %v1538_v30  ;;  %v1559_v4 = vsel %vm7002_vm2, %v5156_v6, %v1530_v43  ;;  %v1558_v30 = vsel %vm6994_vm1, %v5198_v23, %v1528_v37  ;;  %v5645_v6 = vpop.f32.mrf.mxu1  ;;  %vm7005_vm2 = vmmov %vm6994_vm1  ;;  %v1553_v23 = vsel %vm7006_vm10, %v1526_v8, %v1534_v25  ;;  %v5662_v34 = vpop.f32.mrf.mxu3 }
 0x287   : > { %3776 = vmatmul.msk.f32.gmra.mxu0 %vm6925_vm11, %v5530_v61  ;;  %3828 = vmatpush.msk.msrb.mxu1 %vm5536_vm0, %v1555_v1  ;;  %7004 = vst [vmem:[#allocation27_spill] sm:$0xff] %v5645_v6  ;;  %v1557_v31 = vsel %vm7005_vm2, %v5283_v56, %v1526_v8  ;;  %v5678_v48 = vpop.f32.mrf.mxu0  ;;  %vm7039_vm10 = vmmov %vm6994_vm1 }
 0x288   : > { %3816 = vmatpush.msk.msrb.mxu0 %vm5502_vm3, %v1559_v4  ;;  %3846 = vmatmul.msk.f32.gmra.mxu2 %vm6925_vm11, %v5450_v52  ;;  %7008 = vst [vmem:[#allocation29_spill] sm:$0xff] %v5678_v48 }
 0x289   : > { %3858 = vmatmul.msk.f32.gmra.mxu3 %vm6925_vm11, %v5450_v52  ;;  %3830 = vmatpush.msk.msrb.mxu1 %vm5536_vm0, %v1554_v62 }
 0x28a   : > { %3818 = vmatpush.msk.msrb.mxu0 %vm5502_vm3, %v1558_v30 }
 0x28b   : > { %3832 = vmatpush.msk.msrb.mxu1 %vm5536_vm0, %v1553_v23  ;;  %v1328_v25 = vpop.f32.mrf.mxu2 }
 0x28c   : > { %3820 = vmatpush.msk.msrb.mxu0 %vm5502_vm3, %v1557_v31  ;;  %3833 = vmatmul.msk.f32.vlgmr.msrb.gmra.mxu1 %vm6925_vm11, %v5416_v19 }
 0x28e   : > { %v1299_v56 = vpop.f32.mrf.mxu1 }
 0x28f   : > { %3821 = vmatmul.msk.f32.vlgmr.msrb.gmra.mxu0 %vm6925_vm11, %v5416_v19  ;;  %v1300_v39 = vadd.f32 %v1299_v56, %v5342_v54  ;;  %v1329_v56 = vadd.f32 %v1328_v25, %v5344_v63 }
 0x290   : > { %3847 = vmatmul.msk.f32.gmra.mxu2 %vm6925_vm11, %v5486_v53  ;;  %v5736_v42 = vpop.permute.xlu1 %1918 }
 0x291   : > { %3859 = vmatmul.msk.f32.gmra.mxu3 %vm6925_vm11, %v5486_v53  ;;  %v1357_v33 = vpop.f32.mrf.mxu3 }
 0x293   : > { %v5688_v37 = vpop.f32.mrf.mxu2 }
 0x294   : > { %3834 = vmatmul.msk.f32.gmra.mxu1 %vm6925_vm11, %v5450_v52 }
 0x296   : > { %v1302_v19 = vpop.f32.mrf.mxu1 }
 0x297   : > { %3822 = vmatmul.msk.f32.gmra.mxu0 %vm6925_vm11, %v5450_v52  ;;  %v5692_v52 = vpop.f32.mrf.mxu0 }
 0x298   : > { %3848 = vmatmul.msk.f32.gmra.mxu2 %vm6925_vm11, %v5530_v61  ;;  %7009 = vst [vmem:[#allocation30_spill] sm:$0xff] %v5692_v52 }
 0x299   : > { %3860 = vmatmul.msk.f32.gmra.mxu3 %vm6925_vm11, %v5530_v61  ;;  %v5690_v43 = vpop.f32.mrf.mxu3  ;;  %v5741_v6 = vpop.permute.xlu1 %1908 }
 0x29b   : > { %v1334_v4 = vpop.f32.mrf.mxu2 }
 0x29c   : > { %3835 = vmatmul.msk.f32.gmra.mxu1 %vm6925_vm11, %v5486_v53  ;;  %v1335_v63 = vadd.f32 %v1334_v4, %v5433_v49 }
 0x29e   : > { %v1305_v1 = vpop.f32.mrf.mxu1 }
 0x29f   : > { %3823 = vmatmul.msk.f32.gmra.mxu0 %vm6925_vm11, %v5486_v53  ;;  %v1306_v29 = vadd.f32 %v1305_v1, %v5418_v35 }
 0x2a1   : > { %v1363_v8 = vpop.f32.mrf.mxu3 }
 0x2a3   : > { %v1337_v31 = vpop.f32.mrf.mxu2 }
 0x2a4   : > { %3836 = vmatmul.msk.f32.gmra.mxu1 %vm6925_vm11, %v5530_v61  ;;  %v1338_v25 = vadd.f32 %v1337_v31, %v5472_v58 }
 0x2a6   : > { %v5700_v30 = vpop.f32.mrf.mxu1 }
 0x2a7   : > { %3824 = vmatmul.msk.f32.gmra.mxu0 %vm6925_vm11, %v5530_v61 }
 0x2a9   : > { %v1366_v23 = vpop.f32.mrf.mxu3 }
 0x2aa   : > { %v5698_v62 = vpop.f32.mrf.mxu0 }
 0x2b3   : > { %v5702_v53 = vpop.f32.mrf.mxu0 }
 0x2b5   : > { %v5704_v3 = vpop.f32.mrf.mxu1 }
 0x2bb   : > { %v5706_v47 = vpop.f32.mrf.mxu0 }
 0x2bc   : > { %v5708_v45 = vpop.f32.mrf.mxu2  ;;  %v5710_v27 = vpop.f32.mrf.mxu3 }
 0x2bd   : > { %7010 = vst [vmem:[#allocation31_spill] sm:$0xff] %v5708_v45  ;;  %v5712_v61 = vpop.f32.mrf.mxu1  ;;  %v5751_v45 = vpop.permute.xlu2 %1913 }
 0x2be   : > { %7011 = vst [vmem:[#allocation32_spill] sm:$0xff] %v5712_v61 }
 0x2c3   : > { %v5714_v15 = vpop.f32.mrf.mxu0 }
 0x2c4   : > { %v5716_v55 = vpop.f32.mrf.mxu2  ;;  %v5718_v57 = vpop.f32.mrf.mxu3 }
 0x2c5   : > { %7012 = vst [vmem:[#allocation33_spill] sm:$0xff] %v5718_v57  ;;  %v5726_v38 = vpop.f32.mrf.mxu1 }
 0x2c6   : > { %7014 = vst [vmem:[#allocation35_spill] sm:$0xff] %v5726_v38 }
 0x2cb   : > { %v5720_v59 = vpop.f32.mrf.mxu0 }
 0x2cc   : > { %7013 = vst [vmem:[#allocation34_spill] sm:$0xff] %v5720_v59  ;;  %v5722_v16 = vpop.f32.mrf.mxu2  ;;  %v5724_v40 = vpop.f32.mrf.mxu3 }
 0x2cd   : > { %v5734_v32 = vpop.f32.mrf.mxu1 }
 0x2ce   : > { %7016 = vst [vmem:[#allocation37_spill] sm:$0xff] %v5734_v32 }
 0x2d1   : > { %v5768_v57 = vpop.permute.xlu0 %1923 }
 0x2d3   : > { %v5728_v20 = vpop.f32.mrf.mxu0 }
 0x2d4   : > { %7015 = vst [vmem:[#allocation36_spill] sm:$0xff] %v5728_v20  ;;  %v5730_v24 = vpop.f32.mrf.mxu2  ;;  %v5732_v41 = vpop.f32.mrf.mxu3 }
 0x2db   : > { %v5738_v36 = vpop.f32.mrf.mxu0 }
 0x2dc   : > { %7017 = vst [vmem:[#allocation38_spill] sm:$0xff] %v5738_v36  ;;  %v1717_v60 = vpop.f32.mrf.mxu2  ;;  %v1746_v59 = vpop.f32.mrf.mxu3  ;;  %v1303_v36 = vadd.f32 %v1302_v19, %v5371_v14 }
 0x2df   : > { %v1688_v52 = vpop.f32.mrf.mxu1 }
 0x2e0   : > { %v1875_v48 = vadd.f32 %v1688_v52, %v1300_v39 }
 0x2e2   : > { %v5744_v20 = vadd.f32 %v5741_v6, %v1875_v48  ;;  %v1358_v48 = vadd.f32 %v1357_v33, %v5348_v10  ;;  %v1364_v10 = vadd.f32 %v1363_v8, %v5435_v50  ;;  %v1367_v33 = vadd.f32 %v1366_v23, %v5474_v2 }
 0x2e3   : > { %v5746_v38 = vpop.f32.mrf.mxu0  ;;  %v1332_v2 = vadd.f32 %v5688_v37, %v5381_v17 }
 0x2e4   : > { %7018 = vst [vmem:[#allocation39_spill] sm:$0xff] %v5746_v38  ;;  %v1720_v9 = vpop.f32.mrf.mxu2  ;;  %v1749_v61 = vpop.f32.mrf.mxu3  ;;  %1974 = vrot.lane.b32.xlu2 %v5744_v20, %s4254_s6 }
 0x2e5   : > { %v1884_v31 = vadd.f32 %v1720_v9, %v1332_v2 }
 0x2e7   : > { %v1691_v32 = vpop.f32.mrf.mxu1 }
 0x2e8   : > { %v1883_v46 = vadd.f32 %v1691_v32, %v1303_v36  ;;  %v1876_v36 = vadd.f32 %v1717_v60, %v1329_v56  ;;  %v1877_v32 = vadd.f32 %v1746_v59, %v1358_v48  ;;  %v1361_v59 = vadd.f32 %v5690_v43, %v5387_v44 }
 0x2e9   : > { %v1309_v44 = vadd.f32 %v5700_v30, %v5464_v0  ;;  %v1936_v30 = vadd.f32 %v5751_v45, %v1884_v31 }
 0x2ea   : > { %v1935_v54 = vadd.f32 %v5751_v45, %v1883_v46  ;;  %v1928_v46 = vadd.f32 %v5741_v6, %v1876_v36  ;;  %v1929_v19 = vadd.f32 %v5741_v6, %v1877_v32  ;;  %v1885_v8 = vadd.f32 %v1749_v61, %v1361_v59 }
 0x2eb   : > { %v1277_v61 = vadd.f32 %v5706_v47, %v5534_v51 }
 0x2ec   : > { %v5754_v39 = vpop.f32.mrf.mxu0  ;;  %v1723_v52 = vpop.f32.mrf.mxu2  ;;  %2482 = vrot.lane.b32.xlu2 %v5744_v20, %s4255_s7  ;;  %2484 = vrot.lane.b32.xlu0 %v1935_v54, %s4255_s7 }
 0x2ed   : > { %v1752_v38 = vpop.f32.mrf.mxu3  ;;  %1976 = vrot.lane.b32.xlu1 %v1935_v54, %s4254_s6  ;;  %v1892_v49 = vadd.f32 %v1723_v52, %v1335_v63  ;;  %v1280_v52 = vadd.f32 %v5714_v15, %v5583_v12 }
 0x2ee   : > { %v1893_v50 = vadd.f32 %v1752_v38, %v1364_v10 }
 0x2ef   : > { %v5787_v23 = vadd.f32 %v5736_v42, %v1892_v49  ;;  %v1416_v49 = vadd.f32 %v5704_v3, %v5510_v21  ;;  %v7020_v3 = vld [vmem:[#allocation33_spill] sm:$0xff] }
 0x2f0   : > { %v1694_v14 = vpop.f32.mrf.mxu1  ;;  %v5790_v48 = vadd.f32 %v5736_v42, %v1893_v50  ;;  %v1480_v50 = vadd.f32 %v5724_v40, %v5620_v22  ;;  %v7019_v40 = vld [vmem:[#allocation24_spill] sm:$0xff] }
 0x2f1   : > { %v1891_v35 = vadd.f32 %v1694_v14, %v1306_v29  ;;  %v1937_v29 = vadd.f32 %v5751_v45, %v1885_v8  ;;  %v1448_v8 = vadd.f32 %v5716_v55, %v5569_v13 }
 0x2f3   : > { %v1943_v0 = vadd.f32 %v5736_v42, %v1891_v35 }
 0x2f4   : > { %v1662_v26 = vpop.f32.mrf.mxu0  ;;  %v1726_v60 = vpop.f32.mrf.mxu2  ;;  %1982 = vrot.lane.b32.xlu2 %v1928_v46, %s4254_s6  ;;  %1990 = vrot.lane.b32.xlu0 %v1929_v19, %s4254_s6 }
 0x2f5   : > { %v1755_v56 = vpop.f32.mrf.mxu3  ;;  %v1900_v4 = vadd.f32 %v1726_v60, %v1338_v25  ;;  %2498 = vrot.lane.b32.xlu1 %v1929_v19, %s4255_s7  ;;  %v1451_v60 = vadd.f32 %v5722_v16, %v5618_v18 }
 0x2f6   : > { %v1901_v58 = vadd.f32 %v1755_v56, %v1367_v33  ;;  %v1454_v56 = vadd.f32 %v5730_v24, %v5656_v7  ;;  %v1474_v24 = vadd.f32 %v5710_v27, %v5532_v11  ;;  %v7021_v7 = vld [vmem:[#allocation19_spill] sm:$0xff] }
 0x2f7   : > { %v5781_v43 = vadd.f32 %v5768_v57, %v1900_v4  ;;  %v1483_v4 = vadd.f32 %v5732_v41, %v5662_v34  ;;  %v1477_v41 = vadd.f32 %v7020_v3, %v7019_v40  ;;  %v7022_v34 = vld [vmem:[#allocation31_spill] sm:$0xff] }
 0x2f8   : > { %v5784_v1 = vadd.f32 %v5768_v57, %v1901_v58  ;;  %v1697_v38 = vpop.f32.mrf.mxu1  ;;  %v1445_v31 = vadd.f32 %v7022_v34, %v7021_v7  ;;  %v7023_v11 = vld [vmem:[#allocation23_spill] sm:$0xff]  ;;  %v1960_v7 = vld [vmem:[%s6870_s3 + $0x90] sm:$0xff] }
 0x2f9   : > { %v1899_v17 = vadd.f32 %v1697_v38, %v1309_v44  ;;  %2158 = vmatpush.msra.mxu2 %v5781_v43 }
 0x2fa   : > { %2181 = vmatpush.msra.mxu3 %v5784_v1 }
 0x2fb   : > { %v1951_v37 = vadd.f32 %v5768_v57, %v1899_v17  ;;  %2159 = vmatpush.msra.mxu2 %v5787_v23  ;;  %v7024_v17 = vld [vmem:[#allocation32_spill] sm:$0xff] }
 0x2fc   : > { %2182 = vmatpush.msra.mxu3 %v5790_v48  ;;  %v1665_v9 = vpop.f32.mrf.mxu0  ;;  %1992 = vrot.lane.b32.xlu0 %v1937_v29, %s4254_s6 }
 0x2fd   : > { %2486 = vrot.lane.b32.xlu2 %v1943_v0, %s4255_s7  ;;  %2490 = vrot.lane.b32.xlu1 %v1928_v46, %s4255_s7  ;;  %v1890_v14 = vadd.f32 %v1665_v9, %v1277_v61 }
 0x2fe   : > { %2135 = vmatpush.msra.mxu1 %v1951_v37  ;;  %2160 = vmatpush.msra.mxu2 %v1936_v30 }
 0x2ff   : > { %2183 = vmatpush.msra.mxu3 %v1937_v29  ;;  %v5821_v47 = vadd.f32 %v5736_v42, %v1890_v14  ;;  %v7030_v14 = vld [vmem:[#allocation38_spill] sm:$0xff] }
 0x300   : > { %2136 = vmatpush.msra.mxu1 %v1943_v0  ;;  %2161 = vmatpush.msra.mxu2 %v1928_v46 }
 0x301   : > { %2184 = vmatpush.msra.mxu3 %v1929_v19  ;;  %3865 = vmatmul.msk.f32.vlgmr.msra.gmra.mxu2 %vm6925_vm11, %v1960_v7 }
 0x302   : > { %2137 = vmatpush.msra.mxu1 %v1935_v54  ;;  %v1274_v54 = vadd.f32 %v5702_v53, %v5476_v5  ;;  %3867 = vmatmul.msk.f32.vlgmr.msra.gmra.mxu3 %vm6925_vm11, %v1960_v7 }
 0x303   : > { %v5808_v32 = vpop.f32.mrf.mxu2 }
 0x304   : > { %2138 = vmatpush.msra.mxu1 %v5744_v20  ;;  %v1668_v36 = vpop.f32.mrf.mxu0  ;;  %v1862_v10 = vpop.f32.mrf.mxu3  ;;  %2492 = vrot.lane.b32.xlu0 %v1936_v30, %s4255_s7  ;;  %v1271_v20 = vadd.f32 %v5698_v62, %v5439_v28  ;;  %v1882_v15 = vadd.f32 %v1662_v26, %v1274_v54  ;;  %v7032_v54 = vld [vmem:[#allocation39_spill] sm:$0xff] }
 0x305   : > { %v1898_v63 = vadd.f32 %v1668_v36, %v1280_v52  ;;  %1984 = vrot.lane.b32.xlu2 %v1936_v30, %s4254_s6  ;;  %1978 = vrot.lane.b32.xlu1 %v1943_v0, %s4254_s6  ;;  %v1881_v38 = vadd.f32 %v1862_v10, %v1474_v24  ;;  %v1419_v0 = vadd.f32 %v7024_v17, %v7023_v11  ;;  %v7028_v30 = vld [vmem:[#allocation37_spill] sm:$0xff]  ;;  %v7031_v10 = vld [vmem:[#allocation30_spill] sm:$0xff] }
 0x306   : > { %v1874_v12 = vadd.f32 %v5754_v39, %v1271_v20  ;;  %v5827_v5 = vadd.f32 %v5751_v45, %v1882_v15  ;;  %v7029_v36 = vld [vmem:[#allocation29_spill] sm:$0xff]  ;;  %v1396_v20 = vadd.f32 %v7032_v54, %v7031_v10  ;;  %v1880_v15 = vadd.f32 %v5808_v32, %v1445_v31  ;;  %v7036_v24 = vld [vmem:[#allocation34_spill] sm:$0xff]  ;;  %3863 = vmatmul.msk.f32.vlgmr.msra.gmra.mxu1 %vm6925_vm11, %v1960_v7  ;;  %v6118_v54 = vld [vmem:[%s6870_s3 + $0x80] sm:$0xff] }
 0x307   : > { %v5816_v51 = vadd.f32 %v5768_v57, %v1898_v63  ;;  %v1393_v63 = vadd.f32 %v7030_v14, %v7029_v36  ;;  %v1961_v11 = vld [vmem:[%s6870_s3 + $0x98] sm:$0xff] }
 0x308   : > { %v5835_v28 = vadd.f32 %v5741_v6, %v1874_v12 }
 0x309   : > { %2112 = vmatpush.msra.mxu0 %v5816_v51  ;;  %v1804_v46 = vpop.f32.mrf.mxu1  ;;  %3866 = vmatmul.msk.f32.gmra.mxu2 %vm6925_vm11, %v1961_v11 }
 0x30a   : > { %v1879_v55 = vadd.f32 %v1804_v46, %v1416_v49  ;;  %3868 = vmatmul.msk.f32.gmra.mxu3 %vm6925_vm11, %v1961_v11 }
 0x30b   : > { %2113 = vmatpush.msra.mxu0 %v5821_v47  ;;  %v1836_v19 = vpop.f32.mrf.mxu2 }
 0x30c   : > { %v5829_v53 = vpop.f32.mrf.mxu0  ;;  %v1865_v25 = vpop.f32.mrf.mxu3  ;;  %2488 = vrot.lane.b32.xlu0 %v1951_v37, %s4255_s7  ;;  %v1888_v13 = vadd.f32 %v1836_v19, %v1448_v8  ;;  %v5897_v19 = vadd.f32 %v5741_v6, %v1879_v55  ;;  %v7034_v8 = vld [vmem:[#allocation36_spill] sm:$0xff] }
 0x30d   : > { %1986 = vrot.lane.b32.xlu2 %v5787_v23, %s4254_s6  ;;  %2500 = vrot.lane.b32.xlu1 %v1937_v29, %s4255_s7  ;;  %v7025_v29 = vld [vmem:[#allocation25_spill] sm:$0xff] }
 0x30e   : > { %2114 = vmatpush.msra.mxu0 %v5827_v5  ;;  %3864 = vmatmul.msk.f32.gmra.mxu1 %vm6925_vm11, %v1961_v11 }
 0x310   : > { %2115 = vmatpush.msra.mxu0 %v5835_v28 }
 0x311   : > { %v1807_v26 = vpop.f32.mrf.mxu1  ;;  %3861 = vmatmul.msk.f32.vlgmr.msra.gmra.mxu0 %vm6925_vm11, %v1960_v7 }
 0x313   : > { %v1839_v39 = vpop.f32.mrf.mxu2 }
 0x314   : > { %v5840_v62 = vpop.f32.mrf.mxu0  ;;  %v1868_v33 = vpop.f32.mrf.mxu3  ;;  %1994 = vrot.lane.b32.xlu0 %v5790_v48, %s4254_s6  ;;  %v1896_v35 = vadd.f32 %v1839_v39, %v1451_v60  ;;  %v5904_v60 = vadd.f32 %v5741_v6, %v1881_v38  ;;  %v7037_v38 = vld [vmem:[#allocation5_spill] sm:$0xff] }
 0x315   : > { %1988 = vrot.lane.b32.xlu2 %v5781_v43, %s4254_s6  ;;  %1980 = vrot.lane.b32.xlu1 %v1951_v37, %s4254_s6  ;;  %v1897_v21 = vadd.f32 %v1868_v33, %v1480_v50  ;;  %v7026_v37 = vld [vmem:[#allocation35_spill] sm:$0xff]  ;;  %vm7038_vm2 = vcmp.lt.s32.totalorder %v7037_v38, 1 }
 0x316   : > { %v1422_v9 = vadd.f32 %v7026_v37, %v7025_v29  ;;  %v5884_v52 = vadd.f32 %v5736_v42, %v1896_v35 }
 0x317   : > { %v5893_v12 = vadd.f32 %v5736_v42, %v1897_v21 }
 0x319   : > { %v1810_v59 = vpop.f32.mrf.mxu1  ;;  %3862 = vmatmul.msk.f32.gmra.mxu0 %vm6925_vm11, %v1961_v11 }
 0x31a   : > { %v1895_v39 = vadd.f32 %v1810_v59, %v1422_v9  ;;  %v7033_v59 = vld [vmem:[#allocation28_spill] sm:$0xff] }
 0x31b   : > { %v1842_v2 = vpop.f32.mrf.mxu2  ;;  %v1390_v35 = vadd.f32 %v7034_v8, %v7033_v59  ;;  %v7046_v59 = vld [vmem:[#allocation8_spill] sm:$0xff] }
 0x31c   : > { %v1781_v58 = vpop.f32.mrf.mxu0  ;;  %v1904_v44 = vadd.f32 %v1842_v2, %v1454_v56  ;;  %v1871_v16 = vpop.f32.mrf.mxu3  ;;  %2494 = vrot.lane.b32.xlu0 %v5787_v23, %s4255_s7  ;;  %v1889_v23 = vadd.f32 %v1865_v25, %v1477_v41  ;;  %v5900_v25 = vadd.f32 %v5751_v45, %v1888_v13  ;;  %v1887_v56 = vadd.f32 %v1807_v26, %v1419_v0 }
 0x31d   : > { %1966 = vrot.lane.b32.xlu2 %v5835_v28, %s4254_s6  ;;  %v1905_v18 = vadd.f32 %v1871_v16, %v1483_v4  ;;  %2502 = vrot.lane.b32.xlu1 %v5790_v48, %s4255_s7  ;;  %v7027_v48 = vld [vmem:[#allocation27_spill] sm:$0xff]  ;;  %v1894_v50 = vadd.f32 %v1781_v58, %v1393_v63  ;;  %v5925_v26 = vadd.f32 %v5736_v42, %v1895_v39  ;;  %v7035_v16 = vld [vmem:[#allocation26_spill] sm:$0xff]  ;;  %v1964_v39 = vld [vmem:[%s6870_s3 + $0xe8] sm:$0xff] }
 0x31e   : > { %v5870_v22 = vadd.f32 %v5768_v57, %v1904_v44  ;;  %v1425_v61 = vadd.f32 %v7028_v30, %v7027_v48  ;;  %v5907_v32 = vadd.f32 %v5751_v45, %v1889_v23  ;;  %v5919_v44 = vadd.f32 %v5741_v6, %v1880_v15 }
 0x31f   : > { %v5875_v27 = vadd.f32 %v5768_v57, %v1905_v18  ;;  %v1387_v40 = vadd.f32 %v7036_v24, %v7035_v16  ;;  %v1886_v3 = vadd.f32 %v5840_v62, %v1390_v35  ;;  %v5937_v41 = vadd.f32 %v5751_v45, %v1887_v56 }
 0x320   : > { %2250 = vmatpush.msrb.mxu2 %v5870_v22  ;;  %v1946_v21 = vadd.f32 %v5736_v42, %v1894_v50 }
 0x321   : > { %2273 = vmatpush.msrb.mxu3 %v5875_v27  ;;  %v1813_v46 = vpop.f32.mrf.mxu1  ;;  %v1938_v18 = vadd.f32 %v5751_v45, %v1886_v3 }
 0x322   : > { %v1903_v33 = vadd.f32 %v1813_v46, %v1425_v61  ;;  %2251 = vmatpush.msrb.mxu2 %v5884_v52 }
 0x323   : > { %2274 = vmatpush.msrb.mxu3 %v5893_v12 }
 0x324   : > { %v1784_v49 = vpop.f32.mrf.mxu0  ;;  %v5911_v4 = vadd.f32 %v5768_v57, %v1903_v33  ;;  %2252 = vmatpush.msrb.mxu2 %v5900_v25  ;;  %2006 = vrot.lane.b32.xlu0 %v5897_v19, %s4254_s6  ;;  %v6149_v33 = vld [vmem:[%s6870_s3 + $0x88] sm:$0xff] }
 0x325   : > { %v1902_v2 = vadd.f32 %v1784_v49, %v1396_v20  ;;  %2275 = vmatpush.msrb.mxu3 %v5907_v32  ;;  %2504 = vrot.lane.b32.xlu1 %v5784_v1, %s4255_s7 }
 0x326   : > { %2022 = vrot.lane.b32.xlu2 %v5904_v60, %s4254_s6  ;;  %2227 = vmatpush.msrb.mxu1 %v5911_v4 }
 0x327   : > { %v1954_v58 = vadd.f32 %v5768_v57, %v1902_v2  ;;  %2253 = vmatpush.msrb.mxu2 %v5919_v44  ;;  %2276 = vmatpush.msrb.mxu3 %v5904_v60  ;;  %v1878_v57 = vadd.f32 %v5829_v53, %v1387_v40 }
 0x328   : > { %2228 = vmatpush.msrb.mxu1 %v5925_v26  ;;  %3873 = vmatmul.msk.f32.vlgmr.msrb.gmra.mxu2 %vm6925_vm11, %v1960_v7 }
 0x329   : > { %2204 = vmatpush.msrb.mxu0 %v1954_v58  ;;  %v1930_v62 = vadd.f32 %v5741_v6, %v1878_v57  ;;  %3875 = vmatmul.msk.f32.vlgmr.msrb.gmra.mxu3 %vm6925_vm11, %v1960_v7 }
 0x32a   : > { %2229 = vmatpush.msrb.mxu1 %v5937_v41 }
 0x32b   : > { %2205 = vmatpush.msrb.mxu0 %v1946_v21 }
 0x32c   : > { %1996 = vrot.lane.b32.xlu0 %v5784_v1, %s4254_s6  ;;  %2230 = vmatpush.msrb.mxu1 %v5897_v19 }
 0x32d   : > { %2014 = vrot.lane.b32.xlu1 %v5919_v44, %s4254_s6  ;;  %2206 = vmatpush.msrb.mxu0 %v1938_v18 }
 0x32e   : > { %2024 = vrot.lane.b32.xlu2 %v5907_v32, %s4254_s6  ;;  %3871 = vmatmul.msk.f32.vlgmr.msrb.gmra.mxu1 %vm6925_vm11, %v1960_v7 }
 0x32f   : > { %2207 = vmatpush.msrb.mxu0 %v1930_v62 }
 0x330   : > { %3869 = vmatmul.msk.f32.vlgmr.msrb.gmra.mxu0 %vm6925_vm11, %v1960_v7  ;;  %3874 = vmatmul.msk.f32.gmra.mxu2 %vm6925_vm11, %v1961_v11 }
 0x331   : > { %3876 = vmatmul.msk.f32.gmra.mxu3 %vm6925_vm11, %v1961_v11 }
 0x334   : > { %2496 = vrot.lane.b32.xlu0 %v5781_v43, %s4255_s7 }
 0x335   : > { %1968 = vrot.lane.b32.xlu1 %v5827_v5, %s4254_s6 }
 0x336   : > { %2026 = vrot.lane.b32.xlu2 %v5893_v12, %s4254_s6  ;;  %3872 = vmatmul.msk.f32.gmra.mxu1 %vm6925_vm11, %v1961_v11 }
 0x338   : > { %3870 = vmatmul.msk.f32.gmra.mxu0 %vm6925_vm11, %v1961_v11 }
 0x33c   : > { %2008 = vrot.lane.b32.xlu0 %v5937_v41, %s4254_s6 }
 0x33d   : > { %2016 = vrot.lane.b32.xlu1 %v5900_v25, %s4254_s6 }
 0x33e   : > { %2506 = vrot.lane.b32.xlu2 %v1930_v62, %s4255_s7  ;;  %v5963_v42 = vpop.permute.xlu2 %1974 }
 0x344   : > { %2010 = vrot.lane.b32.xlu0 %v5925_v26, %s4254_s6 }
 0x345   : > { %2018 = vrot.lane.b32.xlu1 %v5884_v52, %s4254_s6 }
 0x346   : > { %2000 = vrot.lane.b32.xlu2 %v1938_v18, %s4254_s6  ;;  %v5970_v45 = vpop.permute.xlu2 %2482 }
 0x34c   : > { %1970 = vrot.lane.b32.xlu0 %v5821_v47, %s4254_s6 }
 0x34d   : > { %1972 = vrot.lane.b32.xlu1 %v5816_v51, %s4254_s6 }
 0x34e   : > { %2508 = vrot.lane.b32.xlu2 %v1938_v18, %s4255_s7  ;;  %v5977_v6 = vpop.permute.xlu2 %1982 }
 0x354   : > { %2012 = vrot.lane.b32.xlu0 %v5911_v4, %s4254_s6 }
 0x355   : > { %2480 = vrot.lane.b32.xlu1 %v5816_v51, %s4255_s7 }
 0x356   : > { %2476 = vrot.lane.b32.xlu2 %v5827_v5, %s4255_s7 }
 0x357   : > { %v5985_v43 = vpop.permute.xlu2 %2486 }
 0x35c   : > { %2028 = vrot.lane.b32.xlu0 %v5875_v27, %s4254_s6 }
 0x35d   : > { %2020 = vrot.lane.b32.xlu1 %v5870_v22, %s4254_s6 }
 0x35e   : > { %2510 = vrot.lane.b32.xlu2 %v1946_v21, %s4255_s7  ;;  %v5994_v53 = vpop.permute.xlu0 %2484 }
 0x35f   : > { %v5992_v1 = vpop.permute.xlu2 %1984  ;;  %v5996_v55 = vpop.permute.xlu1 %1976 }
 0x364   : > { %2478 = vrot.lane.b32.xlu0 %v5821_v47, %s4255_s7 }
 0x365   : > { %2002 = vrot.lane.b32.xlu1 %v1946_v21, %s4254_s6 }
 0x366   : > { %2004 = vrot.lane.b32.xlu2 %v1954_v58, %s4254_s6  ;;  %v6004_v5 = vpop.permute.xlu0 %1990 }
 0x367   : > { %v6002_v51 = vpop.permute.xlu2 %1986  ;;  %v6006_v13 = vpop.permute.xlu1 %2498 }
 0x36c   : > { %1998 = vrot.lane.b32.xlu0 %v1930_v62, %s4254_s6 }
 0x36d   : > { %2536 = vrot.lane.b32.xlu1 %v5875_v27, %s4255_s7 }
 0x36e   : > { %2512 = vrot.lane.b32.xlu2 %v1954_v58, %s4255_s7  ;;  %v6021_v34 = vpop.permute.xlu0 %1992 }
 0x36f   : > { %v6019_v47 = vpop.permute.xlu2 %1988  ;;  %v6023_v31 = vpop.permute.xlu1 %2490 }
 0x370   : > { %v6029_v23 = vsel %vm6994_vm1, %v6023_v31, %v6006_v13  ;;  %vm7040_vm1 = vmmov %vm7038_vm2 }
 0x371   : > { %v2051_v10 = vsel %vm7040_vm1, %v5996_v55, %v5992_v1 }
 0x374   : > { %2528 = vrot.lane.b32.xlu0 %v5870_v22, %s4255_s7 }
 0x375   : > { %2534 = vrot.lane.b32.xlu1 %v5893_v12, %s4255_s7 }
 0x376   : > { %2474 = vrot.lane.b32.xlu2 %v5835_v28, %s4255_s7  ;;  %v6044_v27 = vpop.permute.xlu0 %2492 }
 0x377   : > { %v1967_v17 = vpop.permute.xlu2 %1966  ;;  %v6046_v0 = vpop.permute.xlu1 %1978 }
 0x378   : > { %v6051_v29 = vsel %vm7038_vm2, %v1967_v17, %v5963_v42  ;;  %vm7041_vm2 = vmmov %vm7040_vm1 }
 0x37c   : > { %2526 = vrot.lane.b32.xlu0 %v5884_v52, %s4255_s7 }
 0x37d   : > { %2532 = vrot.lane.b32.xlu1 %v5907_v32, %s4255_s7 }
 0x37e   : > { %2524 = vrot.lane.b32.xlu2 %v5900_v25, %s4255_s7  ;;  %v6063_v28 = vpop.permute.xlu0 %2488 }
 0x37f   : > { %v6065_v22 = vpop.permute.xlu1 %2500 }
 0x380   : > { %v6071_v37 = vsel %vm7039_vm10, %v6044_v27, %v6065_v22  ;;  %v6073_v9 = vpop.permute.xlu2 %2022  ;;  %vm7043_vm10 = vmmov %vm7040_vm1 }
 0x381   : > { %v6078_v48 = vsel %vm7040_vm1, %v6073_v9, %v1967_v17  ;;  %v2052_v63 = vsel %vm7043_vm10, %v6046_v0, %v6002_v51  ;;  %vm7045_vm10 = vcmp.lt.s32.totalorder %v7037_v38, 127 }
 0x384   : > { %2530 = vrot.lane.b32.xlu0 %v5904_v60, %s4255_s7 }
 0x385   : > { %2520 = vrot.lane.b32.xlu1 %v5911_v4, %s4255_s7 }
 0x386   : > { %2522 = vrot.lane.b32.xlu2 %v5919_v44, %s4255_s7  ;;  %v6090_v30 = vpop.permute.xlu0 %1994  ;;  %v2046_v44 = vsel %vm7040_vm1, %v5977_v6, %v6004_v5 }
 0x387   : > { %v1981_v61 = vpop.permute.xlu1 %1980 }
 0x388   : > { %v2053_v52 = vsel %vm7041_vm2, %v1981_v61, %v6019_v47  ;;  %v6095_v36 = vpop.permute.xlu2 %2024  ;;  %vm7044_vm2 = vmmov %vm7040_vm1 }
 0x389   : > { %3898 = vmatpush.msk.msra.mxu2 %vm5001_vm9, %v2053_v52  ;;  %v2050_v20 = vsel %vm7044_vm2, %v5963_v42, %v5977_v6  ;;  %vm7047_vm2 = vmmov %vm7040_vm1 }
 0x38a   : > { %v2048_v8 = vsel %vm7047_vm2, %v6002_v51, %v6090_v30  ;;  %vm7049_vm2 = vmmov %vm7040_vm1 }
 0x38b   : > { %3900 = vmatpush.msk.msra.mxu2 %vm5001_vm9, %v2052_v63 }
 0x38c   : > { %2518 = vrot.lane.b32.xlu0 %v5925_v26, %s4255_s7 }
 0x38d   : > { %3902 = vmatpush.msk.msra.mxu2 %vm5001_vm9, %v2051_v10  ;;  %2516 = vrot.lane.b32.xlu1 %v5937_v41, %s4255_s7 }
 0x38e   : > { %2514 = vrot.lane.b32.xlu2 %v5897_v19, %s4255_s7  ;;  %v6126_v15 = vpop.permute.xlu0 %2494  ;;  %v1965_v19 = vld [vmem:[%s6870_s3 + $0xf0] sm:$0xff] }
 0x38f   : > { %3904 = vmatpush.msk.msra.mxu2 %vm5001_vm9, %v2050_v20  ;;  %v6130_v12 = vpop.permute.xlu1 %2502  ;;  %v7056_v20 = vld [vmem:[#allocation9_spill] sm:$0xff] }
 0x390   : > { %v6136_v46 = vsel %vm7045_vm10, %v6126_v15, %v6130_v12  ;;  %v2027_v25 = vpop.permute.xlu2 %2026  ;;  %3905 = vmatmul.msk.f32.vlgmr.msra.gmra.mxu2 %vm6925_vm11, %v6118_v54  ;;  %vm7048_vm10 = vmmov %vm7040_vm1 }
 0x391   : > { %v2047_v35 = vsel %vm7048_vm10, %v5992_v1, %v6021_v34  ;;  %vm7051_vm10 = vmmov %vm7040_vm1 }
 0x394   : > { %2815 = vperm.xlu0 %4187, %v1965_v19  }
 0x395   : > { %2810 = vperm.xlu1 %4188, %v1964_v39   ;;  %v7059_v39 = vld [vmem:[#allocation13_spill] sm:$0xff] }
 0x396   : > { %v6151_v60 = vpop.permute.xlu0 %2006 }
 0x397   : > { %v6153_v32 = vpop.permute.xlu1 %2504 }
 0x398   : > { %v6155_v56 = vpop.permute.xlu2 %2506  ;;  %3906 = vmatmul.msk.f32.gmra.mxu2 %vm6925_vm11, %v6149_v33 }
 0x39e   : > { %v6159_v49 = vpop.permute.xlu0 %1996 }
 0x39f   : > { %v2015_v50 = vpop.permute.xlu1 %2014  ;;  %v2049_v4 = vsel %vm7040_vm1, %v6019_v47, %v6159_v49 }
 0x3a0   : > { %v6165_v2 = vpop.permute.xlu2 %2000  ;;  %3908 = vmatpush.msk.msra.mxu3 %vm5041_vm13, %v2049_v4 }
 0x3a2   : > { %3910 = vmatpush.msk.msra.mxu3 %vm5041_vm13, %v2048_v8 }
 0x3a4   : > { %3912 = vmatpush.msk.msra.mxu3 %vm5041_vm13, %v2047_v35 }
 0x3a6   : > { %3914 = vmatpush.msk.msra.mxu3 %vm5041_vm13, %v2046_v44  ;;  %v6187_v26 = vpop.permute.xlu0 %2496  ;;  %vm7057_vm13 = vmmov %vm7040_vm1 }
 0x3a7   : > { %v1969_v58 = vpop.permute.xlu1 %1968  ;;  %3915 = vmatmul.msk.f32.vlgmr.msra.gmra.mxu3 %vm6925_vm11, %v6118_v54 }
 0x3a8   : > { %v6191_v16 = vpop.permute.xlu2 %2508  ;;  %v2055_v51 = vsel %vm7040_vm1, %v1969_v58, %v5996_v55 }
 0x3ae   : > { %v6193_v24 = vpop.permute.xlu0 %2008 }
 0x3af   : > { %v2017_v40 = vpop.permute.xlu1 %2016  ;;  %3916 = vmatmul.msk.f32.gmra.mxu3 %vm6925_vm11, %v6149_v33 }
 0x3b0   : > { %v6197_v3 = vpop.permute.xlu2 %2476 }
 0x3b6   : > { %v2011_v41 = vpop.permute.xlu0 %2010 }
 0x3b7   : > { %v2019_v21 = vpop.permute.xlu1 %2018 }
 0x3b8   : > { %v6199_v57 = vpop.permute.xlu2 %2510  ;;  %v2036_v8 = vsel %vm7040_vm1, %v2011_v41, %v2019_v21 }
 0x3be   : > { %v1971_v18 = vpop.permute.xlu0 %1970 }
 0x3bf   : > { %v1973_v62 = vpop.permute.xlu1 %1972  ;;  %v2056_v1 = vsel %vm7051_vm10, %v1971_v18, %v6046_v0  ;;  %v7053_v0 = vld [vmem:[#allocation11_spill] sm:$0xff]  ;;  %vm7054_vm10 = vmmov %vm7040_vm1 }
 0x3c0   : > { %v2057_v42 = vsel %vm7049_vm2, %v1973_v62, %v1981_v61  ;;  %v2005_v7 = vpop.permute.xlu2 %2004  ;;  %vm7052_vm2 = vmmov %vm7040_vm1 }
 0x3c1   : > { %3888 = vmatpush.msk.msra.mxu1 %vm4997_vm12, %v2057_v42  ;;  %v7072_v42 = vld [vmem:[#allocation14_spill] sm:$0xff] }
 0x3c3   : > { %3890 = vmatpush.msk.msra.mxu1 %vm4997_vm12, %v2056_v1 }
 0x3c5   : > { %3892 = vmatpush.msk.msra.mxu1 %vm4997_vm12, %v2055_v51 }
 0x3c6   : > { %v2013_v47 = vpop.permute.xlu0 %2012 }
 0x3c7   : > { %v2041_v11 = vsel %vm7052_vm2, %v2005_v7, %v2013_v47  ;;  %v6217_v17 = vpop.permute.xlu1 %2480  ;;  %3894 = vmatpush.msk.msra.mxu1 %vm4997_vm12, %v6051_v29  ;;  %vm7055_vm2 = vmmov %vm7040_vm1  ;;  %v2060_v29 = vsel %vm7057_vm13, %v2027_v25, %v1971_v18 }
 0x3c8   : > { %3895 = vmatmul.msk.f32.vlgmr.msra.gmra.mxu1 %vm6925_vm11, %v6118_v54  ;;  %vm7061_vm13 = vmmov %vm7040_vm1 }
 0x3c9   : > { %3928 = vmatpush.msk.msrb.mxu1 %vm5185_vm8, %v2041_v11  ;;  %v2059_v35 = vsel %vm7061_vm13, %v6095_v36, %v1969_v58  ;;  %v2030_v58 = vsel %vm7040_vm1, %v2015_v50, %v6073_v9  ;;  %vm7064_vm13 = vmmov %vm7040_vm1  ;;  %v7089_v11 = vld [vmem:[#allocation16_spill] sm:$0xff] }
 0x3ce   : > { %v2029_v55 = vpop.permute.xlu0 %2028 }
 0x3cf   : > { %v2061_v61 = vsel %vm7054_vm10, %v2029_v55, %v1973_v62  ;;  %v2021_v52 = vpop.permute.xlu1 %2020  ;;  %vm7060_vm10 = vmmov %vm7040_vm1 }
 0x3d0   : > { %v2033_v63 = vsel %vm7040_vm1, %v2021_v52, %v2029_v55  ;;  %v2037_v10 = vsel %vm7055_vm2, %v2013_v47, %v2021_v52  ;;  %3878 = vmatpush.msk.msra.mxu0 %vm5147_vm14, %v2061_v61  ;;  %v2032_v4 = vsel %vm7060_vm10, %v2019_v21, %v2027_v25  ;;  %3896 = vmatmul.msk.f32.gmra.mxu1 %vm6925_vm11, %v6149_v33  ;;  %vm7062_vm2 = vmmov %vm7040_vm1  ;;  %v6273_v21 = vpop.permute.xlu2 %2512 }
 0x3d1   : > { %3938 = vmatpush.msk.msrb.mxu2 %vm5204_vm6, %v2037_v10  ;;  %3948 = vmatpush.msk.msrb.mxu3 %vm5208_vm4, %v2033_v63  ;;  %v2031_v25 = vsel %vm7062_vm2, %v2017_v40, %v6095_v36  ;;  %vm7063_vm10 = vmmov %vm7040_vm1  ;;  %v2034_v36 = vsel %vm7064_vm13, %v6151_v60, %v2015_v50  ;;  %vm7067_vm13 = vcmp.lt.s32.totalorder %v7037_v38, 127 }
 0x3d2   : > { %3880 = vmatpush.msk.msra.mxu0 %vm5147_vm14, %v2060_v29  ;;  %v2035_v44 = vsel %vm7063_vm10, %v6193_v24, %v2017_v40  ;;  %vm7065_vm2 = vmmov %vm7040_vm1  ;;  %v1963_v29 = vld [vmem:[%s6870_s3 + $0xa8] sm:$0xff] }
 0x3d3   : > { %3940 = vmatpush.msk.msrb.mxu2 %vm5204_vm6, %v2036_v8  ;;  %3950 = vmatpush.msk.msrb.mxu3 %vm5208_vm4, %v2032_v4  ;;  %v2045_v9 = vsel %vm7065_vm2, %v6159_v49, %v2005_v7  ;;  %vm7066_vm10 = vmmov %vm7040_vm1  ;;  %v7086_v7 = vld [vmem:[#allocation17_spill] sm:$0xff] }
 0x3d4   : > { %3882 = vmatpush.msk.msra.mxu0 %vm5147_vm14, %v2059_v35  ;;  %vm7068_vm2 = vmmov %vm7067_vm13 }
 0x3d5   : > { %3942 = vmatpush.msk.msrb.mxu2 %vm5204_vm6, %v2035_v44  ;;  %3952 = vmatpush.msk.msrb.mxu3 %vm5208_vm4, %v2031_v25  ;;  %v2553_v49 = vsel %vm7068_vm2, %v6153_v32, %v6273_v21 }
 0x3d6   : > { %v6275_v40 = vpop.permute.xlu0 %2478  ;;  %3884 = vmatpush.msk.msra.mxu0 %vm5147_vm14, %v6078_v48  ;;  %v2557_v48 = vsel %vm7067_vm13, %v6187_v26, %v6153_v32  ;;  %vm7074_vm13 = vmmov %vm7068_vm2  ;;  %vm7075_vm2 = vcmp.lt.s32.totalorder %v7037_v38, 1 }
 0x3d7   : > { %3944 = vmatpush.msk.msrb.mxu2 %vm5204_vm6, %v2034_v36  ;;  %v2003_v18 = vpop.permute.xlu1 %2002  ;;  %3954 = vmatpush.msk.msrb.mxu3 %vm5208_vm4, %v2030_v58  ;;  %v2552_v1 = vsel %vm7074_vm13, %v6130_v12, %v6199_v57  ;;  %v2043_v32 = vsel %vm7075_vm2, %v6021_v34, %v6165_v2  ;;  %v2551_v12 = vsel %vm7074_vm13, %v6065_v22, %v6191_v16 }
 0x3d8   : > { %v2040_v50 = vsel %vm7066_vm10, %v2003_v18, %v2011_v41  ;;  %v2044_v62 = vsel %vm7040_vm1, %v6090_v30, %v2003_v18  ;;  %3885 = vmatmul.msk.f32.vlgmr.msra.gmra.mxu0 %vm6925_vm11, %v6118_v54  ;;  %3945 = vmatmul.msk.f32.vlgmr.msrb.gmra.mxu2 %vm6925_vm11, %v6118_v54  ;;  %v7069_v41 = vld [vmem:[#allocation10_spill] sm:$0xff]  ;;  %v7070_v30 = vld [vmem:[#allocation15_spill] sm:$0xff]  ;;  %vm7073_vm1 = vnez %v7072_v42 }
 0x3d9   : > { %3918 = vmatpush.msk.msrb.mxu0 %vm5181_vm15, %v2045_v9  ;;  %3955 = vmatmul.msk.f32.vlgmr.msrb.gmra.mxu3 %vm6925_vm11, %v6118_v54  ;;  %vm7071_vm10 = vnez %v7070_v30  ;;  %vm7076_vm11 = vmmov %vm7075_vm2 }
 0x3da   : > { %3978 = vmatpush.msk.msra.mxu2 %vm7071_vm10, %v2557_v48  ;;  %3988 = vmatpush.msk.msra.mxu3 %vm7073_vm1, %v2553_v49  ;;  %v2039_v51 = vsel %vm7076_vm11, %v6165_v2, %v6193_v24  ;;  %vm7077_vm11 = vmmov %vm7074_vm13 }
 0x3db   : > { %3930 = vmatpush.msk.msrb.mxu1 %vm5185_vm8, %v2040_v50  ;;  %3920 = vmatpush.msk.msrb.mxu0 %vm5181_vm15, %v2044_v62  ;;  %vm7078_vm13 = vmmov %vm7075_vm2 }
 0x3dc   : > { %3980 = vmatpush.msk.msra.mxu2 %vm7071_vm10, %v6136_v46  ;;  %3990 = vmatpush.msk.msra.mxu3 %vm7073_vm1, %v2552_v1  ;;  %v2550_v46 = vsel %vm7077_vm11, %v6006_v13, %v6155_v56  ;;  %vm7079_vm4 = vmmov %vm7077_vm11  ;;  %vm7080_vm11 = vcmask 261120  }
 0x3dd   : > { %3932 = vmatpush.msk.msrb.mxu1 %vm5185_vm8, %v2039_v51  ;;  %3922 = vmatpush.msk.msrb.mxu0 %vm5181_vm15, %v2043_v32  ;;  %v2561_v24 = vsel %vm7079_vm4, %v6063_v28, %v6187_v26  ;;  %v2186_v32 = vpop.f32.mrf.mxu3  ;;  %v2140_v51 = vpop.f32.mrf.mxu1 }
 0x3de   : > { %3982 = vmatpush.msk.msra.mxu2 %vm7071_vm10, %v6071_v37  ;;  %3992 = vmatpush.msk.msra.mxu3 %vm7073_vm1, %v2551_v12  ;;  %v1999_v34 = vpop.permute.xlu0 %1998 }
 0x3df   : > { %v2042_v22 = vsel %vm7075_vm2, %v6004_v5, %v1999_v34  ;;  %v2537_v2 = vpop.permute.xlu1 %2536  ;;  %v2038_v37 = vsel %vm7078_vm13, %v1999_v34, %v6151_v60  ;;  %vm7081_vm2 = vmmov %vm7080_vm11  ;;  %v2475_v5 = vpop.permute.xlu2 %2474 }
 0x3e0   : > { %3984 = vmatpush.msk.msra.mxu2 %vm7071_vm10, %v6029_v23  ;;  %3994 = vmatpush.msk.msra.mxu3 %vm7073_vm1, %v2550_v46  ;;  %v2569_v13 = vsel %vm7079_vm4, %v2537_v2, %v6217_v17  ;;  %vm7082_vm14 = vmmov %vm7081_vm2  ;;  %v2117_v46 = vpop.f32.mrf.mxu0 }
 0x3e1   : > { %3886 = vmatmul.msk.f32.gmra.mxu0 %vm7080_vm11, %v6149_v33  ;;  %3946 = vmatmul.msk.f32.gmra.mxu2 %vm7081_vm2, %v6149_v33  ;;  %vm7083_vm13 = vmmov %vm7079_vm4  ;;  %vm7087_vm11 = vnez %v7086_v7 }
 0x3e2   : > { %3956 = vmatmul.msk.f32.gmra.mxu3 %vm7082_vm14, %v6149_v33  ;;  %3924 = vmatpush.msk.msrb.mxu0 %vm5181_vm15, %v2042_v22  ;;  %v2565_v23 = vsel %vm7083_vm13, %v6217_v17, %v6063_v28  ;;  %vm7085_vm14 = vmmov %vm7081_vm2  ;;  %vm7090_vm13 = vnez %v7089_v11 }
 0x3e3   : > { %3934 = vmatpush.msk.msrb.mxu1 %vm5185_vm8, %v2038_v37  ;;  %4028 = vmatpush.msk.msrb.mxu3 %vm5556_vm7, %v2569_v13  ;;  %vm7088_vm2 = vmmov %vm7079_vm4 }
 0x3e4   : > { %3935 = vmatmul.msk.f32.vlgmr.msrb.gmra.mxu1 %vm7085_vm14, %v6118_v54  ;;  %3958 = vmatpush.msk.msra.mxu0 %vm7087_vm11, %v2565_v23  ;;  %v2564_v47 = vsel %vm7088_vm2, %v6275_v40, %v5985_v43  ;;  %vm7091_vm8 = vmmov %vm7088_vm2  ;;  %v2562_v63 = vsel %vm7088_vm2, %v2475_v5, %v5970_v45 }
 0x3e5   : > { %3968 = vmatpush.msk.msra.mxu1 %vm7090_vm13, %v2561_v24  ;;  %v2560_v17 = vsel %vm7091_vm8, %v5985_v43, %v6126_v15  ;;  %vm7092_vm4 = vmmov %vm7088_vm2  ;;  %v6411_v43 = vld [vmem:[%s6870_s3 + $0xa0] sm:$0xff]  ;;  %v2189_v34 = vpop.f32.mrf.mxu3  ;;  %v2143_v22 = vpop.f32.mrf.mxu1 }
 0x3e6   : > { %3960 = vmatpush.msk.msra.mxu0 %vm7087_vm11, %v2564_v47  ;;  %v2529_v28 = vpop.permute.xlu0 %2528  ;;  %v2563_v26 = vsel %vm7092_vm4, %v6197_v3, %v5994_v53  ;;  %vm7093_vm14 = vmmov %vm7088_vm2 }
 0x3e7   : > { %3970 = vmatpush.msk.msra.mxu1 %vm7090_vm13, %v2560_v17  ;;  %v2541_v55 = vsel %vm7093_vm14, %v2529_v28, %v2537_v2  ;;  %v2535_v61 = vpop.permute.xlu1 %2534  ;;  %vm7094_vm8 = vmmov %vm7088_vm2  ;;  %vm7097_vm14 = vcmask 261120  }
 0x3e8   : > { %v2559_v15 = vsel %vm7094_vm8, %v5994_v53, %v6044_v27  ;;  %3962 = vmatpush.msk.msra.mxu0 %vm7087_vm11, %v2563_v26  ;;  %4018 = vmatpush.msk.msrb.mxu2 %vm5552_vm5, %v2541_v55  ;;  %vm7096_vm4 = vmmov %vm7088_vm2  ;;  %v2525_v27 = vpop.permute.xlu2 %2524  ;;  %v2120_v13 = vpop.f32.mrf.mxu0 }
 0x3e9   : > { %3972 = vmatpush.msk.msra.mxu1 %vm7090_vm13, %v2559_v15  ;;  %v2568_v10 = vsel %vm7096_vm4, %v2535_v61, %v6275_v40  ;;  %3925 = vmatmul.msk.f32.vlgmr.msrb.gmra.mxu0 %vm7097_vm14, %v6118_v54  ;;  %vm7098_vm8 = vmmov %vm7088_vm2 }
 0x3ea   : > { %v2558_v53 = vsel %vm7098_vm8, %v5970_v45, %v6023_v31  ;;  %3964 = vmatpush.msk.msra.mxu0 %vm7087_vm11, %v2562_v63  ;;  %vm7099_vm2 = vmmov %vm7097_vm14  ;;  %4030 = vmatpush.msk.msrb.mxu3 %vm5556_vm7, %v2568_v10 }
 0x3eb   : > { %3985 = vmatmul.msk.f32.vlgmr.msra.gmra.mxu2 %vm7099_vm2, %v6411_v43  ;;  %3974 = vmatpush.msk.msra.mxu1 %vm7090_vm13, %v2558_v53  ;;  %vm7100_vm15 = vmmov %vm7099_vm2 }
 0x3ec   : > { %3995 = vmatmul.msk.f32.vlgmr.msra.gmra.mxu3 %vm7100_vm15, %v6411_v43  ;;  %vm7101_vm4 = vmmov %vm7099_vm2 }
 0x3ed   : > { %3936 = vmatmul.msk.f32.gmra.mxu1 %vm7101_vm4, %v6149_v33  ;;  %vm7102_vm14 = vmmov %vm7098_vm8  ;;  %v6531_v37 = vpop.f32.mrf.mxu3 }
 0x3ee   : > { %v2527_v45 = vpop.permute.xlu0 %2526  ;;  %vm7103_vm15 = vmmov %vm7099_vm2 }
 0x3ef   : > { %v2540_v31 = vsel %vm7102_vm14, %v2527_v45, %v2535_v61  ;;  %v2533_v54 = vpop.permute.xlu1 %2532  ;;  %vm7104_vm2 = vmmov %vm7098_vm8 }
 0x3f0   : > { %v2567_v4 = vsel %vm7098_vm8, %v2533_v54, %v6197_v3  ;;  %4020 = vmatpush.msk.msrb.mxu2 %vm5552_vm5, %v2540_v31  ;;  %v2539_v8 = vsel %vm7104_vm2, %v2525_v27, %v2533_v54  ;;  %vm7105_vm14 = vmmov %vm7101_vm4  ;;  %v2523_v3 = vpop.permute.xlu2 %2522  ;;  %v6539_v47 = vpop.f32.mrf.mxu0 }
 0x3f1   : > { %3926 = vmatmul.msk.f32.gmra.mxu0 %vm7103_vm15, %v6149_v33  ;;  %4032 = vmatpush.msk.msrb.mxu3 %vm5556_vm7, %v2567_v4  ;;  %vm7106_vm8 = vmmov %vm7101_vm4 }
 0x3f2   : > { %4022 = vmatpush.msk.msrb.mxu2 %vm5552_vm5, %v2539_v8  ;;  %vm7107_vm15 = vmmov %vm7104_vm2 }
 0x3f3   : > { %3986 = vmatmul.msk.f32.gmra.mxu2 %vm7101_vm4, %v1963_v29  ;;  %vm7108_vm13 = vmmov %vm7104_vm2 }
 0x3f4   : > { %3996 = vmatmul.msk.f32.gmra.mxu3 %vm7105_vm14, %v1963_v29  ;;  %vm7109_vm4 = vmmov %vm7104_vm2 }
 0x3f5   : > { %3975 = vmatmul.msk.f32.vlgmr.msra.gmra.mxu1 %vm7106_vm8, %v6411_v43  ;;  %vm7110_vm14 = vmmov %vm7106_vm8  ;;  %v6537_v24 = vpop.f32.mrf.mxu3 }
 0x3f6   : > { %v2531_v35 = vpop.permute.xlu0 %2530 }
 0x3f7   : > { %v2538_v33 = vsel %vm7107_vm15, %v2523_v3, %v2531_v35  ;;  %v2566_v25 = vsel %vm7108_vm13, %v2531_v35, %v2475_v5  ;;  %v2521_v44 = vpop.permute.xlu1 %2520  ;;  %vm7113_vm13 = vmmov %vm7106_vm8  ;;  %v6533_v5 = vpop.f32.mrf.mxu1 }
 0x3f8   : > { %v2545_v58 = vsel %vm7104_vm2, %v2521_v44, %v2529_v28  ;;  %v2549_v36 = vsel %vm7109_vm4, %v6273_v21, %v2521_v44  ;;  %4024 = vmatpush.msk.msrb.mxu2 %vm5552_vm5, %v2538_v33  ;;  %4034 = vmatpush.msk.msrb.mxu3 %vm5556_vm7, %v2566_v25  ;;  %vm7114_vm15 = vmmov %vm7106_vm8  ;;  %v2515_v48 = vpop.permute.xlu2 %2514  ;;  %v6543_v55 = vpop.f32.mrf.mxu0 }
 0x3f9   : > { %3965 = vmatmul.msk.f32.vlgmr.msra.gmra.mxu0 %vm7110_vm14, %v6411_v43  ;;  %4008 = vmatpush.msk.msrb.mxu1 %vm5536_vm0, %v2545_v58  ;;  %vm7115_vm4 = vmmov %vm7104_vm2 }
 0x3fa   : > { %3998 = vmatpush.msk.msrb.mxu0 %vm5502_vm3, %v2549_v36  ;;  %vm7116_vm14 = vmmov %vm7104_vm2 }
 0x3fb   : > { %4025 = vmatmul.msk.f32.vlgmr.msrb.gmra.mxu2 %vm7113_vm13, %v6411_v43  ;;  %vm7117_vm13 = vmmov %vm7106_vm8 }
 0x3fc   : > { %4035 = vmatmul.msk.f32.vlgmr.msrb.gmra.mxu3 %vm7106_vm8, %v6411_v43  ;;  %vm7118_vm8 = vmmov %vm7104_vm2 }
 0x3fd   : > { %3976 = vmatmul.msk.f32.gmra.mxu1 %vm7114_vm15, %v1963_v29  ;;  %vm7119_vm15 = vmmov %vm7117_vm13 }
 0x3fe   : > { %v2519_v21 = vpop.permute.xlu0 %2518 }
 0x3ff   : > { %v2544_v9 = vsel %vm7104_vm2, %v2519_v21, %v2527_v45  ;;  %v2548_v50 = vsel %vm7115_vm4, %v6199_v57, %v2519_v21  ;;  %v2517_v62 = vpop.permute.xlu1 %2516  ;;  %v2546_v57 = vsel %vm7104_vm2, %v6155_v56, %v2515_v48  ;;  %vm7120_vm4 = vmmov %vm7117_vm13  ;;  %v2163_v56 = vpop.f32.mrf.mxu2 }
 0x400   : > { %4000 = vmatpush.msk.msrb.mxu0 %vm5502_vm3, %v2548_v50  ;;  %4010 = vmatpush.msk.msrb.mxu1 %vm5536_vm0, %v2544_v9  ;;  %v2547_v49 = vsel %vm7116_vm14, %v6191_v16, %v2517_v62  ;;  %v2543_v1 = vsel %vm7118_vm8, %v2517_v62, %v2525_v27  ;;  %vm7121_vm14 = vmmov %vm7104_vm2  ;;  %v6541_v17 = vpop.f32.mrf.mxu1 }
 0x401   : > { %3966 = vmatmul.msk.f32.gmra.mxu0 %vm7117_vm13, %v1963_v29  ;;  %v2542_v16 = vsel %vm7121_vm14, %v2515_v48, %v2523_v3  ;;  %vm7122_vm13 = vmmov %vm7120_vm4  ;;  %vm7126_vm14 = vcmp.lt.s32.totalorder %v7037_v38, 1 }
 0x402   : > { %4002 = vmatpush.msk.msrb.mxu0 %vm5502_vm3, %v2547_v49  ;;  %4012 = vmatpush.msk.msrb.mxu1 %vm5536_vm0, %v2543_v1  ;;  %vm7123_vm8 = vmmov %vm7120_vm4 }
 0x403   : > { %4026 = vmatmul.msk.f32.gmra.mxu2 %vm7119_vm15, %v1963_v29  ;;  %vm7124_vm15 = vmmov %vm7120_vm4 }
 0x404   : > { %4036 = vmatmul.msk.f32.gmra.mxu3 %vm7120_vm4, %v1963_v29  ;;  %4004 = vmatpush.msk.msrb.mxu0 %vm5502_vm3, %v2546_v57  ;;  %vm7125_vm2 = vmmov %vm7120_vm4  ;;  %vm2902_vm4 = vcmask 130048  }
 0x405   : > { %4014 = vmatpush.msk.msrb.mxu1 %vm5536_vm0, %v2542_v16 }
 0x406   : > { %4015 = vmatmul.msk.f32.vlgmr.msrb.gmra.mxu1 %vm7122_vm13, %v6411_v43  ;;  %vm7127_vm13 = vmmov %vm7126_vm14 }
 0x407   : > { %v2166_v12 = vpop.f32.mrf.mxu2  ;;  %v6553_v36 = vpop.permute.xlu1 %2810 }
 0x409   : > { %4005 = vmatmul.msk.f32.vlgmr.msrb.gmra.mxu0 %vm7123_vm8, %v6411_v43  ;;  %vm7128_vm8 = vmmov %vm7127_vm13 }
 0x40e   : > { %4016 = vmatmul.msk.f32.gmra.mxu1 %vm7124_vm15, %v1963_v29  ;;  %vm7129_vm15 = vmmov %vm7128_vm8 }
 0x40f   : > { %v6529_v2 = vpop.f32.mrf.mxu2 }
 0x411   : > { %4006 = vmatmul.msk.f32.gmra.mxu0 %vm7125_vm2, %v1963_v29  ;;  %vm7130_vm2 = vnez %v7046_v59 }
 0x417   : > { %v6535_v23 = vpop.f32.mrf.mxu2 }
 0x41f   : > { %v2353_v28 = vpop.f32.mrf.mxu2 }
 0x420   : > { %v2354_v3 = vadd.f32 %v2353_v28, %v2163_v56 }
 0x427   : > { %v2356_v43 = vpop.f32.mrf.mxu2 }
 0x428   : > { %v2357_v1 = vadd.f32 %v2356_v43, %v2166_v12 }
 0x42a   : > { %v2376_v26 = vpop.f32.mrf.mxu3 }
 0x42b   : > { %v2377_v35 = vadd.f32 %v2376_v26, %v2186_v32  ;;  %v6564_v26 = vpop.permute.xlu0 %2815 }
 0x432   : > { %v2379_v15 = vpop.f32.mrf.mxu3 }
 0x433   : > { %v2380_v16 = vadd.f32 %v2379_v15, %v2189_v34 }
 0x445   : > { %v2330_v61 = vpop.f32.mrf.mxu1 }
 0x446   : > { %v2331_v9 = vadd.f32 %v2330_v61, %v2140_v51 }
 0x44d   : > { %v2333_v10 = vpop.f32.mrf.mxu1 }
 0x455   : > { %v2307_v63 = vpop.f32.mrf.mxu0 }
 0x456   : > { %v2308_v15 = vadd.f32 %v2307_v63, %v2117_v46 }
 0x45b   : > { %v2445_v53 = vpop.f32.mrf.mxu2 }
 0x45c   : > { %v2468_v27 = vpop.f32.mrf.mxu3  ;;  %v2446_v63 = vadd.f32 %v2445_v53, %v6529_v2 }
 0x45e   : > { %v2310_v45 = vpop.f32.mrf.mxu0 }
 0x461   : > { %v6545_v31 = vpop.f32.mrf.mxu1 }
 0x464   : > { %v2448_v54 = vpop.f32.mrf.mxu2 }
 0x465   : > { %v2471_v29 = vpop.f32.mrf.mxu3 }
 0x466   : > { %v6547_v4 = vpop.f32.mrf.mxu0 }
 0x46a   : > { %v6549_v8 = vpop.f32.mrf.mxu1 }
 0x46e   : > { %v2671_v33 = vpop.f32.mrf.mxu2  ;;  %v6551_v58 = vpop.f32.mrf.mxu0 }
 0x46f   : > { %v2794_v25 = vadd.f32 %v2671_v33, %v2354_v3  ;;  %v2694_v44 = vpop.f32.mrf.mxu3  ;;  %v2334_v3 = vadd.f32 %v2333_v10, %v2143_v22 }
 0x470   : > { %v2795_v21 = vadd.f32 %v2694_v44, %v2377_v35 }
 0x471   : > { %v2820_v50 = vadd.f32 %v6553_v36, %v2794_v25  ;;  %v2311_v25 = vadd.f32 %v2310_v45, %v2120_v13  ;;  %v2449_v45 = vadd.f32 %v2448_v54, %v6535_v23  ;;  %v2423_v23 = vadd.f32 %v6545_v31, %v6533_v5 }
 0x472   : > { %v2821_v62 = vadd.f32 %v6553_v36, %v2795_v21  ;;  %v2648_v48 = vpop.f32.mrf.mxu1  ;;  %v2400_v5 = vadd.f32 %v6547_v4, %v6539_v47  ;;  %v2835_v4 = vld [vmem:[%s6870_s3 + $0xb8] sm:$0xff] }
 0x473   : > { %v2793_v49 = vadd.f32 %v2648_v48, %v2331_v9  ;;  %2846 = vrot.lane.b32.xlu0 %v2820_v50, %s4254_s6 }
 0x474   : > { %2850 = vrot.lane.b32.xlu1 %v2821_v62, %s4254_s6 }
 0x475   : > { %v6560_v57 = vadd.f32 %v6553_v36, %v2793_v49 }
 0x476   : > { %v2674_v56 = vpop.f32.mrf.mxu2  ;;  %v2625_v51 = vpop.f32.mrf.mxu0 }
 0x477   : > { %v2802_v32 = vadd.f32 %v2674_v56, %v2357_v1  ;;  %v2697_v28 = vpop.f32.mrf.mxu3  ;;  %2842 = vrot.lane.b32.xlu2 %v6560_v57, %s4254_s6  ;;  %v2792_v21 = vadd.f32 %v2625_v51, %v2308_v15 }
 0x478   : > { %v2803_v61 = vadd.f32 %v2697_v28, %v2380_v16 }
 0x479   : > { %v2828_v35 = vadd.f32 %v6564_v26, %v2802_v32  ;;  %v2818_v46 = vadd.f32 %v6553_v36, %v2792_v21 }
 0x47a   : > { %v2829_v33 = vadd.f32 %v6564_v26, %v2803_v61  ;;  %v2651_v12 = vpop.f32.mrf.mxu1 }
 0x47b   : > { %v2801_v43 = vadd.f32 %v2651_v12, %v2334_v3  ;;  %3237 = vrot.lane.b32.xlu0 %v2820_v50, %s4255_s7  ;;  %2960 = vmatpush.msra.mxu2 %v2828_v35 }
 0x47c   : > { %3241 = vrot.lane.b32.xlu1 %v2821_v62, %s4255_s7  ;;  %2980 = vmatpush.msra.mxu3 %v2829_v33 }
 0x47d   : > { %v6571_v34 = vadd.f32 %v6564_v26, %v2801_v43  ;;  %2961 = vmatpush.msra.mxu2 %v2820_v50  ;;  %v2469_v50 = vadd.f32 %v2468_v27, %v6531_v37  ;;  %v2426_v37 = vadd.f32 %v6549_v8, %v6541_v17  ;;  %v2403_v17 = vadd.f32 %v6551_v58, %v6543_v55  ;;  %v2837_v55 = vld [vmem:[%s6870_s3 + $0xf8] sm:$0xff] }
 0x47e   : > { %2981 = vmatpush.msra.mxu3 %v2821_v62  ;;  %v2763_v22 = vpop.f32.mrf.mxu2  ;;  %v2628_v10 = vpop.f32.mrf.mxu0  ;;  %v2472_v62 = vadd.f32 %v2471_v29, %v6537_v24  ;;  %4039 = vmatmul.msk.f32.vlgmr.msra.gmra.mxu2 %vm2902_vm4, %v2835_v4 }
 0x47f   : > { %2844 = vrot.lane.b32.xlu2 %v6571_v34, %s4254_s6  ;;  %2940 = vmatpush.msra.mxu1 %v6571_v34  ;;  %v2786_v44 = vpop.f32.mrf.mxu3  ;;  %v2800_v9 = vadd.f32 %v2628_v10, %v2311_v25  ;;  %v2798_v1 = vadd.f32 %v2763_v22, %v2446_v63 }
 0x480   : > { %v2799_v28 = vadd.f32 %v2786_v44, %v2469_v50  ;;  %4040 = vmatmul.msk.f32.vlgmr.msra.gmra.mxu3 %vm2902_vm4, %v2835_v4 }
 0x481   : > { %2941 = vmatpush.msra.mxu1 %v6560_v57  ;;  %v2826_v48 = vadd.f32 %v6564_v26, %v2800_v9  ;;  %v2824_v24 = vadd.f32 %v6553_v36, %v2798_v1 }
 0x482   : > { %v2825_v53 = vadd.f32 %v6553_v36, %v2799_v28  ;;  %4038 = vmatmul.msk.f32.vlgmr.msra.gmra.mxu1 %vm2902_vm4, %v2835_v4 }
 0x483   : > { %2848 = vrot.lane.b32.xlu0 %v2828_v35, %s4254_s6  ;;  %2920 = vmatpush.msra.mxu0 %v2826_v48  ;;  %v2740_v13 = vpop.f32.mrf.mxu1 }
 0x484   : > { %2852 = vrot.lane.b32.xlu1 %v2829_v33, %s4254_s6  ;;  %v2797_v54 = vadd.f32 %v2740_v13, %v2423_v23 }
 0x485   : > { %2921 = vmatpush.msra.mxu0 %v2818_v46 }
 0x486   : > { %v2766_v49 = vpop.f32.mrf.mxu2  ;;  %v2717_v16 = vpop.f32.mrf.mxu0  ;;  %4037 = vmatmul.msk.f32.vlgmr.msra.gmra.mxu0 %vm2902_vm4, %v2835_v4 }
 0x487   : > { %2840 = vrot.lane.b32.xlu2 %v2826_v48, %s4254_s6  ;;  %v2806_v56 = vadd.f32 %v2766_v49, %v2449_v45  ;;  %v2789_v32 = vpop.f32.mrf.mxu3  ;;  %v2796_v3 = vadd.f32 %v2717_v16, %v2400_v5 }
 0x488   : > { %v2807_v51 = vadd.f32 %v2789_v32, %v2472_v62 }
 0x489   : > { %v2832_v61 = vadd.f32 %v6564_v26, %v2806_v56  ;;  %v2822_v47 = vadd.f32 %v6553_v36, %v2796_v3 }
 0x48a   : > { %v2833_v2 = vadd.f32 %v6564_v26, %v2807_v51 }
 0x48b   : > { %3239 = vrot.lane.b32.xlu0 %v2828_v35, %s4255_s7  ;;  %3040 = vmatpush.msrb.mxu2 %v2832_v61  ;;  %v2743_v27 = vpop.f32.mrf.mxu1 }
 0x48c   : > { %3243 = vrot.lane.b32.xlu1 %v2829_v33, %s4255_s7  ;;  %3060 = vmatpush.msrb.mxu3 %v2833_v2  ;;  %v2805_v29 = vadd.f32 %v2743_v27, %v2426_v37  ;;  %v2823_v33 = vadd.f32 %v6553_v36, %v2797_v54  ;;  %v2836_v27 = vld [vmem:[%s6870_s3 + $0xc0] sm:$0xff] }
 0x48d   : > { %3041 = vmatpush.msrb.mxu2 %v2824_v24 }
 0x48e   : > { %3061 = vmatpush.msrb.mxu3 %v2825_v53  ;;  %v2831_v31 = vadd.f32 %v6564_v26, %v2805_v29  ;;  %v2720_v8 = vpop.f32.mrf.mxu0  ;;  %4043 = vmatmul.msk.f32.vlgmr.msrb.gmra.mxu2 %vm2902_vm4, %v2835_v4 }
 0x48f   : > { %3229 = vrot.lane.b32.xlu2 %v2818_v46, %s4255_s7  ;;  %v2804_v35 = vadd.f32 %v2720_v8, %v2403_v17  ;;  %4044 = vmatmul.msk.f32.vlgmr.msrb.gmra.mxu3 %vm2902_vm4, %v2835_v4 }
 0x490   : > { %3020 = vmatpush.msrb.mxu1 %v2831_v31 }
 0x491   : > { %v2830_v12 = vadd.f32 %v6564_v26, %v2804_v35 }
 0x492   : > { %3021 = vmatpush.msrb.mxu1 %v2823_v33 }
 0x493   : > { %2862 = vrot.lane.b32.xlu0 %v2824_v24, %s4254_s6  ;;  %3000 = vmatpush.msrb.mxu0 %v2830_v12 }
 0x494   : > { %2838 = vrot.lane.b32.xlu1 %v2818_v46, %s4254_s6  ;;  %4042 = vmatmul.msk.f32.vlgmr.msrb.gmra.mxu1 %vm2902_vm4, %v2835_v4  ;;  %v6662_v46 = vld [vmem:[%s6870_s3 + $0xb0] sm:$0xff] }
 0x495   : > { %3001 = vmatpush.msrb.mxu0 %v2822_v47 }
 0x496   : > { %4041 = vmatmul.msk.f32.vlgmr.msrb.gmra.mxu0 %vm2902_vm4, %v2835_v4 }
 0x497   : > { %2858 = vrot.lane.b32.xlu2 %v2823_v33, %s4254_s6 }
 0x49b   : > { %2864 = vrot.lane.b32.xlu0 %v2832_v61, %s4254_s6 }
 0x49c   : > { %2866 = vrot.lane.b32.xlu1 %v2825_v53, %s4254_s6 }
 0x49f   : > { %2854 = vrot.lane.b32.xlu2 %v2822_v47, %s4254_s6 }
 0x4a3   : > { %2868 = vrot.lane.b32.xlu0 %v2833_v2, %s4254_s6 }
 0x4a4   : > { %3235 = vrot.lane.b32.xlu1 %v6571_v34, %s4255_s7 }
 0x4a7   : > { %3245 = vrot.lane.b32.xlu2 %v2822_v47, %s4255_s7 }
 0x4ab   : > { %3231 = vrot.lane.b32.xlu0 %v2826_v48, %s4255_s7 }
 0x4ac   : > { %2856 = vrot.lane.b32.xlu1 %v2830_v12, %s4254_s6 }
 0x4af   : > { %2860 = vrot.lane.b32.xlu2 %v2831_v31, %s4254_s6  ;;  %s4210_s6 = scalar_lea.hbm %s6871_s4, 16 }
 0x4b0   : > { %p4212_p1 = scmp.lt.s32.totalorder %s4210_s6, %s4206_s22 }
 0x4b2   : > { %p4213_p2 = por %p4212_p1, %p4211_p0 }
 0x4b3   : > { %3233 = vrot.lane.b32.xlu0 %v6560_v57, %s4255_s7 }
 0x4b4   : > { %3255 = vrot.lane.b32.xlu1 %v2832_v61, %s4255_s7  ;;  %p4214_p3 = pnand %p4213_p2, %p4209_p13 }
 0x4b7   : > { %3247 = vrot.lane.b32.xlu2 %v2830_v12, %s4255_s7 }
 0x4bb   : > { %3253 = vrot.lane.b32.xlu0 %v2824_v24, %s4255_s7 }
 0x4bc   : > { %3257 = vrot.lane.b32.xlu1 %v2825_v53, %s4255_s7 }
 0x4bf   : > { %3259 = vrot.lane.b32.xlu2 %v2833_v2, %s4255_s7 }
 0x4c3   : > { %3249 = vrot.lane.b32.xlu0 %v2823_v33, %s4255_s7 }
 0x4c4   : > { %3466 = vperm.xlu1 %4188, %v2837_v55  }
 0x4c7   : > { %3251 = vrot.lane.b32.xlu2 %v2831_v31, %s4255_s7 }
 0x4d1   : > { %v2843_v58 = vpop.permute.xlu2 %2842 }
 0x4d9   : > { %v2845_v36 = vpop.permute.xlu2 %2844 }
 0x4e1   : > { %v2841_v57 = vpop.permute.xlu2 %2840 }
 0x4e2   : > { %v2883_v26 = vsel %vm7126_vm14, %v2841_v57, %v2845_v36  ;;  %vm7131_vm14 = vmmov %vm7128_vm8 }
 0x4e3   : > { %4051 = vmatpush.msk.msra.mxu1 %vm4997_vm12, %v2883_v26 }
 0x4e5   : > { %v2847_v43 = vpop.permute.xlu0 %2846 }
 0x4e6   : > { %v6645_v34 = vpop.permute.xlu1 %2850  ;;  %v2880_v13 = vsel %vm7129_vm15, %v2843_v58, %v2847_v43 }
 0x4e7   : > { %v2878_v63 = vsel %vm7131_vm14, %v2847_v43, %v6645_v34  ;;  %vm7138_vm14 = vnez %v7056_v20 }
 0x4e9   : > { %v6647_v15 = vpop.permute.xlu2 %3229 }
 0x4ed   : > { %v6649_v25 = vpop.permute.xlu0 %3237 }
 0x4ee   : > { %v3242_v22 = vpop.permute.xlu1 %3241 }
 0x4f1   : > { %v6651_v10 = vpop.permute.xlu2 %2858 }
 0x4f5   : > { %v2849_v44 = vpop.permute.xlu0 %2848 }
 0x4f6   : > { %v2881_v21 = vsel %vm7127_vm13, %v2845_v36, %v2849_v44  ;;  %v2853_v9 = vpop.permute.xlu1 %2852  ;;  %vm7132_vm13 = vmmov %vm7128_vm8 }
 0x4f7   : > { %v2879_v48 = vsel %vm7128_vm8, %v2849_v44, %v2853_v9  ;;  %4056 = vmatpush.msk.msra.mxu2 %vm5001_vm9, %v2881_v21 }
 0x4f8   : > { %4061 = vmatpush.msk.msra.mxu3 %vm7130_vm2, %v2879_v48 }
 0x4f9   : > { %4058 = vmatpush.msk.msra.mxu2 %vm5001_vm9, %v2880_v13  ;;  %v2855_v45 = vpop.permute.xlu2 %2854  ;;  %vm7133_vm9 = vmmov %vm7128_vm8 }
 0x4fa   : > { %4063 = vmatpush.msk.msra.mxu3 %vm7130_vm2, %v2878_v63  ;;  %4059 = vmatmul.msk.f32.vlgmr.msra.gmra.mxu2 %vm2902_vm4, %v6662_v46 }
 0x4fb   : > { %4064 = vmatmul.msk.f32.vlgmr.msra.gmra.mxu3 %vm2902_vm4, %v6662_v46 }
 0x4fd   : > { %v3240_v50 = vpop.permute.xlu0 %3239 }
 0x4fe   : > { %v3244_v62 = vpop.permute.xlu1 %3243 }
 0x501   : > { %v6679_v49 = vpop.permute.xlu2 %3245  ;;  %v2963_v60 = vpop.f32.mrf.mxu2 }
 0x503   : > { %v2923_v52 = vpop.f32.mrf.mxu0 }
 0x505   : > { %v2863_v1 = vpop.permute.xlu0 %2862 }
 0x506   : > { %v2839_v16 = vpop.permute.xlu1 %2838  ;;  %v2872_v51 = vsel %vm7128_vm8, %v6651_v10, %v2863_v1 }
 0x507   : > { %v2882_v14 = vsel %vm7132_vm13, %v2839_v16, %v2843_v58  ;;  %vm7139_vm13 = vnez %v7059_v39 }
 0x508   : > { %4053 = vmatpush.msk.msra.mxu1 %vm4997_vm12, %v2882_v14  ;;  %vm7134_vm12 = vcmp.lt.s32.totalorder %v7037_v38, 127 }
 0x509   : > { %v2861_v59 = vpop.permute.xlu2 %2860  ;;  %4054 = vmatmul.msk.f32.vlgmr.msra.gmra.mxu1 %vm2902_vm4, %v6662_v46  ;;  %v3270_v61 = vsel %vm7134_vm12, %v3240_v50, %v3244_v62  ;;  %vm7135_vm15 = vmmov %vm7134_vm12 }
 0x50a   : > { %v3269_v2 = vsel %vm7135_vm15, %v6649_v25, %v3242_v22 }
 0x50d   : > { %v2865_v56 = vpop.permute.xlu0 %2864 }
 0x50e   : > { %v2873_v32 = vsel %vm7133_vm9, %v2861_v59, %v2865_v56  ;;  %v2867_v28 = vpop.permute.xlu1 %2866 }
 0x50f   : > { %4076 = vmatpush.msk.msrb.mxu2 %vm5204_vm6, %v2873_v32 }
 0x511   : > { %4078 = vmatpush.msk.msrb.mxu2 %vm5204_vm6, %v2872_v51  ;;  %v3248_v6 = vpop.permute.xlu2 %3247  ;;  %vm7136_vm6 = vmmov %vm7128_vm8 }
 0x512   : > { %4079 = vmatmul.msk.f32.vlgmr.msrb.gmra.mxu2 %vm2902_vm4, %v6662_v46  ;;  %vm7137_vm2 = vmmov %vm7136_vm6 }
 0x513   : > { %4096 = vmatpush.msk.msra.mxu2 %vm7071_vm10, %v3270_v61  ;;  %vm7140_vm9 = vmmov %vm7137_vm2  ;;  %v3003_v44 = vpop.f32.mrf.mxu0 }
 0x514   : > { %v2870_v53 = vsel %vm7140_vm9, %v2863_v1, %v2867_v28  ;;  %vm7141_vm8 = vmmov %vm7137_vm2 }
 0x515   : > { %4098 = vmatpush.msk.msra.mxu2 %vm7071_vm10, %v3269_v2  ;;  %v2869_v23 = vpop.permute.xlu0 %2868  ;;  %v2884_v30 = vsel %vm7141_vm8, %v2867_v28, %v2839_v16  ;;  %vm7142_vm10 = vmmov %vm7134_vm12 }
 0x516   : > { %v2871_v19 = vsel %vm7136_vm6, %v2865_v56, %v2869_v23  ;;  %v2885_v37 = vsel %vm7137_vm2, %v2869_v23, %v2841_v57  ;;  %v3236_v24 = vpop.permute.xlu1 %3235  ;;  %v3268_v54 = vsel %vm7142_vm10, %v3244_v62, %v3248_v6  ;;  %vm7143_vm12 = vmmov %vm7142_vm10 }
 0x517   : > { %4046 = vmatpush.msk.msra.mxu0 %vm7138_vm14, %v2885_v37  ;;  %4081 = vmatpush.msk.msrb.mxu3 %vm7139_vm13, %v2871_v19  ;;  %v3267_v20 = vsel %vm7143_vm12, %v3242_v22, %v6679_v49  ;;  %vm7144_vm15 = vmmov %vm7142_vm10  ;;  %vm7152_vm12 = vnez %v7089_v11  ;;  %v2983_v22 = vpop.f32.mrf.mxu3 }
 0x518   : > { %vm7145_vm6 = vmmov %vm7137_vm2 }
 0x519   : > { %4048 = vmatpush.msk.msra.mxu0 %vm7138_vm14, %v2884_v30  ;;  %4083 = vmatpush.msk.msrb.mxu3 %vm7139_vm13, %v2870_v53  ;;  %v3260_v29 = vpop.permute.xlu2 %3259  ;;  %vm7146_vm14 = vnez %v7069_v41  ;;  %vm7147_vm13 = vnez %v7053_v0  ;;  %vm7150_vm8 = vmmov %vm7142_vm10 }
 0x51a   : > { %4049 = vmatmul.msk.f32.vlgmr.msra.gmra.mxu0 %vm2902_vm4, %v6662_v46  ;;  %4084 = vmatmul.msk.f32.vlgmr.msrb.gmra.mxu3 %vm2902_vm4, %v6662_v46  ;;  %v3272_v35 = vsel %vm7150_vm8, %v3236_v24, %v3240_v50  ;;  %vm7151_vm10 = vmmov %vm7150_vm8 }
 0x51b   : > { %4099 = vmatmul.msk.f32.vlgmr.msra.gmra.mxu2 %vm2902_vm4, %v2836_v27  ;;  %4101 = vmatpush.msk.msra.mxu3 %vm7073_vm1, %v3268_v54 }
 0x51d   : > { %4103 = vmatpush.msk.msra.mxu3 %vm7073_vm1, %v3267_v20  ;;  %v3232_v39 = vpop.permute.xlu0 %3231  ;;  %vm7148_vm1 = vmmov %vm7137_vm2 }
 0x51e   : > { %v3276_v5 = vsel %vm7144_vm15, %v3260_v29, %v3232_v39  ;;  %v2857_v17 = vpop.permute.xlu1 %2856  ;;  %v2874_v42 = vsel %vm7148_vm1, %v2855_v45, %v6651_v10  ;;  %vm7149_vm9 = vmmov %vm7148_vm1  ;;  %v3274_v33 = vsel %vm7151_vm10, %v3232_v39, %v3236_v24  ;;  %v3043_v10 = vpop.f32.mrf.mxu2  ;;  %vm7167_vm10 = vcmask 1045508  }
 0x51f   : > { %v2875_v31 = vsel %vm7145_vm6, %v2857_v17, %v2861_v59  ;;  %v2877_v8 = vsel %vm7137_vm2, %v2853_v9, %v2857_v17  ;;  %4121 = vmatpush.msk.msrb.mxu3 %vm5556_vm7, %v3276_v5  ;;  %v2876_v3 = vsel %vm7149_vm9, %v6645_v34, %v2855_v45  ;;  %vm7153_vm15 = vmmov %vm7150_vm8  ;;  %v3063_v9 = vpop.f32.mrf.mxu3 }
 0x520   : > { %4066 = vmatpush.msk.msrb.mxu0 %vm7146_vm14, %v2877_v8  ;;  %4071 = vmatpush.msk.msrb.mxu1 %vm7147_vm13, %v2875_v31  ;;  %vm7154_vm6 = vmmov %vm7150_vm8 }
 0x521   : > { %v3252_v12 = vpop.permute.xlu2 %3251  ;;  %vm7155_vm2 = vmmov %vm7154_vm6 }
 0x522   : > { %4068 = vmatpush.msk.msrb.mxu0 %vm7146_vm14, %v2876_v3  ;;  %4073 = vmatpush.msk.msrb.mxu1 %vm7147_vm13, %v2874_v42  ;;  %v3266_v4 = vsel %vm7155_vm2, %v3248_v6, %v3252_v12  ;;  %vm7156_vm14 = vmmov %vm7155_vm2 }
 0x523   : > { %4069 = vmatmul.msk.f32.vlgmr.msrb.gmra.mxu0 %vm2902_vm4, %v6662_v46  ;;  %4074 = vmatmul.msk.f32.vlgmr.msrb.gmra.mxu1 %vm2902_vm4, %v6662_v46  ;;  %vm7157_vm13 = vmmov %vm7155_vm2 }
 0x524   : > { %4086 = vmatpush.msk.msra.mxu0 %vm7087_vm11, %v3274_v33  ;;  %4091 = vmatpush.msk.msra.mxu1 %vm7152_vm12, %v3272_v35  ;;  %vm7159_vm1 = vmmov %vm7155_vm2 }
 0x525   : > { %4104 = vmatmul.msk.f32.vlgmr.msra.gmra.mxu3 %vm2902_vm4, %v2836_v27  ;;  %v3234_v0 = vpop.permute.xlu0 %3233  ;;  %vm7160_vm9 = vmmov %vm7159_vm1 }
 0x526   : > { %v3271_v41 = vsel %vm7153_vm15, %v3234_v0, %v6649_v25  ;;  %v3273_v47 = vsel %vm7154_vm6, %v6647_v15, %v3234_v0  ;;  %v3256_v55 = vpop.permute.xlu1 %3255  ;;  %vm7161_vm8 = vmmov %vm7159_vm1 }
 0x527   : > { %v3262_v58 = vsel %vm7156_vm14, %v3256_v55, %v3260_v29  ;;  %v3264_v36 = vsel %vm7157_vm13, %v3252_v12, %v3256_v55  ;;  %4088 = vmatpush.msk.msra.mxu0 %vm7087_vm11, %v3273_v47  ;;  %4093 = vmatpush.msk.msra.mxu1 %vm7152_vm12, %v3271_v41  ;;  %vm7158_vm11 = vmmov %vm7155_vm2  ;;  %vm7168_vm12 = vcmask 1043456  }
 0x528   : > { %4116 = vmatpush.msk.msrb.mxu2 %vm5552_vm5, %v3262_v58 }
 0x529   : > { %4106 = vmatpush.msk.msrb.mxu0 %vm5502_vm3, %v3266_v4  ;;  %4111 = vmatpush.msk.msrb.mxu1 %vm5536_vm0, %v3264_v36 }
 0x52b   : > { %4089 = vmatmul.msk.f32.vlgmr.msra.gmra.mxu0 %vm2902_vm4, %v2836_v27  ;;  %4094 = vmatmul.msk.f32.vlgmr.msra.gmra.mxu1 %vm2902_vm4, %v2836_v27 }
 0x52d   : > { %v3254_v57 = vpop.permute.xlu0 %3253 }
 0x52e   : > { %v3258_v26 = vpop.permute.xlu1 %3257 }
 0x52f   : > { %v3261_v7 = vsel %vm7158_vm11, %v3254_v57, %v3258_v26  ;;  %v3275_v11 = vsel %vm7159_vm1, %v3258_v26, %v6647_v15  ;;  %v2943_v15 = vpop.f32.mrf.mxu1 }
 0x530   : > { %4118 = vmatpush.msk.msrb.mxu2 %vm5552_vm5, %v3261_v7  ;;  %4123 = vmatpush.msk.msrb.mxu3 %vm5556_vm7, %v3275_v11  ;;  %vm7164_vm5 = vcmask 1046534   ;;  %vm7165_vm7 = vcmask 1044484  }
 0x531   : > { %4119 = vmatmul.msk.f32.vlgmr.msrb.gmra.mxu2 %vm2902_vm4, %v2836_v27  ;;  %4124 = vmatmul.msk.f32.vlgmr.msrb.gmra.mxu3 %vm2902_vm4, %v2836_v27 }
 0x535   : > { %v3250_v43 = vpop.permute.xlu0 %3249 }
 0x536   : > { %v3263_v34 = vsel %vm7160_vm9, %v3250_v43, %v3254_v57  ;;  %v3265_v25 = vsel %vm7161_vm8, %v6679_v49, %v3250_v43  ;;  %v3467_v28 = vpop.permute.xlu1 %3466 }
 0x537   : > { %4108 = vmatpush.msk.msrb.mxu0 %vm5502_vm3, %v3265_v25  ;;  %4113 = vmatpush.msk.msrb.mxu1 %vm5536_vm0, %v3263_v34  ;;  %v3023_v21 = vpop.f32.mrf.mxu1  ;;  %vm7162_vm0 = vcmask 1040384   ;;  %vm7163_vm3 = vcmask 1042434  }
 0x538   : > { %4109 = vmatmul.msk.f32.vlgmr.msrb.gmra.mxu0 %vm2902_vm4, %v2836_v27  ;;  %4114 = vmatmul.msk.f32.vlgmr.msrb.gmra.mxu1 %vm2902_vm4, %v2836_v27  ;;  %vm7166_vm4 = vcmask 1041408  }
 0x57d   : > { %v3126_v38 = vpop.f32.mrf.mxu2 }
 0x57e   : > { %v3146_v18 = vpop.f32.mrf.mxu3  ;;  %v3127_v56 = vadd.f32 %v3126_v38, %v2963_v60 }
 0x57f   : > { %v3147_v14 = vadd.f32 %v3146_v18, %v2983_v22 }
 0x586   : > { %v3106_v46 = vpop.f32.mrf.mxu1 }
 0x587   : > { %v3107_v62 = vadd.f32 %v3106_v46, %v2943_v15 }
 0x595   : > { %v3206_v40 = vpop.f32.mrf.mxu2 }
 0x596   : > { %v3207_v2 = vadd.f32 %v3206_v40, %v3043_v10 }
 0x597   : > { %v3086_v48 = vpop.f32.mrf.mxu0 }
 0x598   : > { %v3087_v51 = vadd.f32 %v3086_v48, %v2923_v52 }
 0x59d   : > { %v3226_v63 = vpop.f32.mrf.mxu3 }
 0x59e   : > { %v3353_v49 = vpop.f32.mrf.mxu2  ;;  %v3227_v23 = vadd.f32 %v3226_v63, %v3063_v9 }
 0x59f   : > { %v3458_v6 = vadd.f32 %v3353_v49, %v3127_v56 }
 0x5a0   : > { %v3186_v13 = vpop.f32.mrf.mxu1  ;;  %v3166_v45 = vpop.f32.mrf.mxu0 }
 0x5a1   : > { %v3167_v19 = vadd.f32 %v3166_v45, %v3003_v44  ;;  %v3187_v37 = vadd.f32 %v3186_v13, %v3023_v21  ;;  %v3471_v5 = vadd.f32 %v3467_v28, %v3458_v6 }
 0x5a3   : > { %v3486_v55 = vrot.slane %v3471_v5, 6 }
 0x5a8   : > { %v3333_v50 = vpop.f32.mrf.mxu1  ;;  %v3373_v1 = vpop.f32.mrf.mxu3 }
 0x5a9   : > { %v3313_v16 = vpop.f32.mrf.mxu0  ;;  %v3457_v59 = vadd.f32 %v3333_v50, %v3107_v62  ;;  %v3459_v32 = vadd.f32 %v3373_v1, %v3147_v14 }
 0x5aa   : > { %v3456_v53 = vadd.f32 %v3313_v16, %v3087_v51 }
 0x5ab   : > { %v3470_v61 = vadd.f32 %v3467_v28, %v3457_v59  ;;  %v3472_v24 = vadd.f32 %v3467_v28, %v3459_v32 }
 0x5ac   : > { %v3469_v33 = vadd.f32 %v3467_v28, %v3456_v53 }
 0x5ad   : > { %v3485_v17 = vrot.slane %v3470_v61, 7  ;;  %v3487_v35 = vrot.slane %v3472_v24, 5 }
 0x5af   : > { %v3492_v4 = vsel %vm7162_vm0, %v3469_v33, %v3485_v17  ;;  %v3493_v57 = vsel %vm7163_vm3, %v3486_v55, %v3487_v35 }
 0x5b0   : > { %v3494_v11 = vsel %vm7166_vm4, %v3492_v4, %v3493_v57 }
 0x5b4   : > { %v3433_v30 = vpop.f32.mrf.mxu2  ;;  %v3453_v27 = vpop.f32.mrf.mxu3 }
 0x5b5   : > { %v3462_v54 = vadd.f32 %v3433_v30, %v3207_v2  ;;  %v3463_v29 = vadd.f32 %v3453_v27, %v3227_v23  ;;  %v3393_v20 = vpop.f32.mrf.mxu0  ;;  %v3413_v39 = vpop.f32.mrf.mxu1 }
 0x5b6   : > { %v3460_v31 = vadd.f32 %v3393_v20, %v3167_v19  ;;  %v3461_v8 = vadd.f32 %v3413_v39, %v3187_v37 }
 0x5b7   : > { %v3475_v42 = vadd.f32 %v3467_v28, %v3462_v54  ;;  %v3476_v3 = vadd.f32 %v3467_v28, %v3463_v29 }
 0x5b8   : > { %v3473_v12 = vadd.f32 %v3467_v28, %v3460_v31  ;;  %v3474_v0 = vadd.f32 %v3467_v28, %v3461_v8 }
 0x5b9   : > { %v3490_v41 = vrot.slane %v3475_v42, 2  ;;  %v3491_v47 = vrot.slane %v3476_v3, 1 }
 0x5ba   : > { %v3488_v58 = vrot.slane %v3473_v12, 4  ;;  %v3489_v36 = vrot.slane %v3474_v0, 3 }
 0x5bb   : > { %v3496_v26 = vsel %vm7164_vm5, %v3490_v41, %v3491_v47 }
 0x5bc   : > { %v3495_v7 = vsel %vm7165_vm7, %v3488_v58, %v3489_v36 }
 0x5bd   : > { %v3497_v43 = vsel %vm7167_vm10, %v3495_v7, %v3496_v26 }
 0x5be   : > { %v3498_v34 = vsel %vm7168_vm12, %v3494_v11, %v3497_v43 }
 0x5bf   : > { %3500 = vst [vmem:[%s201_s19] sm:$0xff] %v3498_v34 }
 0x5c0   : > { %4217 = shalt.err (!%p4214_p3)
}
 0x5c1   : > { %4145 = dma.vmem_to_hbm [thread:$0]  (%p4320_p5), %s3515_s12, 128, %s3517_s13, %s3502_s14  }
 0x5c2 PF: > { %p4151_p4 = scmp.ge.s32.totalorder %s4252_s18, 2  ;;  %s3528_s29 = sand.u32 1, %s4240_s15  }
 0x5c3   : > { %s3529_s30 = scalar_lea.sflag [#allocation3], %s3528_s29 }
 0x5c4   : > { %p4148_p7 = pnand %p4151_p4, %p4324_p6 }
 0x5c6   : > { %p4149_p8 = pneg %p4148_p7 }
 0x5c8   : > { %4235 = dma.done.wait (%p4149_p8), %s3529_s30, 128  }
 0x5c9   : > { %4237 = vsyncadd (%p4149_p8), %s3529_s30, 4294967168  ;;  %p14_p9 = scmp.ge.s32.totalorder %s4307_s21, 4   ;;  %s7169_s15 = smov %s4244_s16 }
 0x5ca   : > { %s7170_s16 = smov %s4248_s17  ;;  %s7171_s17 = smov %s4318_s24 }
 0x5cb   : > { %s7172_s18 = smov %s4307_s21  ;;  %16 = sbr.rel (!%p14_p9) target bundleno = 3 (0x3), region = 75 }
 0x5d0   :  { %3535 = vsyncpa [#allocation3], 1 }
 0x5d1   :  { %3537 = vsyncpa [#allocation3 + $0x1], 1 }

</bundles_post_ra>
